<compile_context>
chip_gen: v6e
topology: v6e:2x2x1
jax: 0.10.0
libtpu: 0.0.40
codegen_flags: <defaults>
</compile_context>

<pallas_src>
import numpy as np
import jax
import jax.numpy as jnp
from jax.experimental import pallas as pl
from jax.experimental.pallas import tpu as pltpu


# -----------------------------------------------------------------------------
# Model configuration (48x48 single-channel input, as implied by the module)
# -----------------------------------------------------------------------------
_CONV_CFG = [(1, 8, 6), (8, 16, 4), (16, 32, 2), (32, 64, 2)]   # (Cin, Cout, k)
_FC_CFG = [(64, 128), (128, 64), (64, 16), (16, 1)]             # fc1..fc4
_TAIL_BATCH = 8                                                 # images / block
_VMEM_LIMIT = 32 * 1024 * 1024


def _round_up(x, m):
    return (x + m - 1) // m * m


# -----------------------------------------------------------------------------
# Pallas kernels
# -----------------------------------------------------------------------------

def _conv_relu_pool_kernel(p_ref, w_ref, b_ref, o_ref):
    """Fused conv (as im2col GEMM) + bias + ReLU + 2x2 max-pool.

    p_ref: (4, TP, K) bf16 -- im2col patches for the 4 positions of every
           2x2 pool window (TP is a multiple of 128).
    w_ref: (K, Cout) bf16, b_ref: (1, Cout) f32, o_ref: (TP, Cout) bf16.
    """
    four, tp, kdim = p_ref.shape
    cout = w_ref.shape[1]

    # One GEMM for all 4 pool branches (same RHS pushed once into the MXU).
    p = p_ref[...].reshape(four * tp, kdim)                   # aligned merge
    z = jnp.dot(p, w_ref[...], preferred_element_type=jnp.float32)
    z = z.reshape(four, tp, cout)                             # aligned split

    # 2x2 max pool == elementwise max over the 4 branches.
    zmax = jnp.maximum(jnp.maximum(z[0], z[1]), jnp.maximum(z[2], z[3]))

    # Bias + ReLU hoisted after the max (b shared, ReLU monotone => exact).
    o_ref[...] = jnp.maximum(zmax + b_ref[...], 0.0).astype(o_ref.dtype)


def _tail_kernel(p3_ref, w3_ref, b3_ref, w4_ref, b4_ref,
                 fw1_ref, fb1_ref, fw2_ref, fb2_ref,
                 fw3_ref, fb3_ref, fw4_ref, fb4_ref, o_ref):
    """Fused conv3 + conv4 (both with 2x2 max-pool) + fc1..fc4 + sigmoid.

    p3_ref: (NB, 4, 16, 64) bf16 conv3 im2col patches (4 pool branches,
            16 = 4x4 pooled positions, K = 2*2*16).
    o_ref : (NB, 1) f32.
    """
    nb = p3_ref.shape[0]

    # ---- conv3: one GEMM over (images x 4 branches x 16 positions) ----------
    p3 = p3_ref[...]                                           # (nb,4,16,64)
    z3 = jnp.dot(p3.reshape(nb * 4 * 16, 64), w3_ref[...],
                 preferred_element_type=jnp.float32)           # (nb*64, 32)
    z3 = z3.reshape(nb, 4, 16, 32)
    z3 = jnp.maximum(jnp.maximum(z3[:, 0], z3[:, 1]),
                     jnp.maximum(z3[:, 2], z3[:, 3]))          # 2x2 max pool
    y3 = jnp.maximum(z3 + b3_ref[...], 0.0).astype(jnp.bfloat16)  # (nb,16,32)

    # ---- conv4 (k=2) + 2x2 pool, in-kernel im2col from VMEM-resident y3 -----
    # y3 rows are spatial positions i*4+j of the 4x4 conv3-pooled grid.
    w4 = w4_ref[...]                                           # (4, 32, 64)
    branches = []
    for di in range(2):                 # the 4 conv positions inside the pool
        for dj in range(2):
            acc = None
            for a in range(2):          # conv4 kernel taps
                for b in range(2):
                    row = (di + a) * 4 + (dj + b)
                    t = jnp.dot(y3[:, row, :], w4[a * 2 + b],
                                preferred_element_type=jnp.float32)
                    acc = t if acc is None else acc + t
            branches.append(acc)                               # (nb, 64)
    z4 = jnp.maximum(jnp.maximum(branches[0], branches[1]),
                     jnp.maximum(branches[2], branches[3]))    # 2x2 max pool
    h = jnp.maximum(z4 + b4_ref[...], 0.0)                     # (nb, 64) f32

    # ---- fc1..fc4, each followed by sigmoid ---------------------------------
    def sig(z):
        # sigmoid via exp (EUP) + approx reciprocal (EUP), no VPU divide.
        return pl.reciprocal(1.0 + jnp.exp(-z), approx=True)

    h = sig(jnp.dot(h.astype(jnp.bfloat16), fw1_ref[...],
                    preferred_element_type=jnp.float32) + fb1_ref[...])
    h = sig(jnp.dot(h.astype(jnp.bfloat16), fw2_ref[...],
                    preferred_element_type=jnp.float32) + fb2_ref[...])
    h = sig(jnp.dot(h.astype(jnp.bfloat16), fw3_ref[...],
                    preferred_element_type=jnp.float32) + fb3_ref[...])
    h = sig(jnp.dot(h.astype(jnp.bfloat16), fw4_ref[...],
                    preferred_element_type=jnp.float32) + fb4_ref[...])
    o_ref[...] = h                                             # (nb, 1)


# -----------------------------------------------------------------------------
# pallas_call wrappers
# -----------------------------------------------------------------------------

def conv_relu_pool(patches, w, b, *, tile_p):
    """patches: (4, P_pad, K) bf16; w: (K, Cout) bf16; b: (1, Cout) f32."""
    _, p_pad, kdim = patches.shape
    cout = w.shape[1]
    return pl.pallas_call(
        _conv_relu_pool_kernel,
        out_shape=jax.ShapeDtypeStruct((p_pad, cout), jnp.bfloat16),
        grid=(p_pad // tile_p,),
        in_specs=[
            pl.BlockSpec((4, tile_p, kdim), lambda i: (0, i, 0)),
            pl.BlockSpec((kdim, cout), lambda i: (0, 0)),
            pl.BlockSpec((1, cout), lambda i: (0, 0)),
        ],
        out_specs=pl.BlockSpec((tile_p, cout), lambda i: (i, 0)),
        compiler_params=pltpu.CompilerParams(
            dimension_semantics=("parallel",),
            vmem_limit_bytes=_VMEM_LIMIT),
    )(patches, w, b)


def conv_tail_mlp(p3, params):
    """p3: (N, 4, 16, 64) bf16 conv3 patches -> (N, 1) f32 network output."""
    n = p3.shape[0]
    n_pad = _round_up(n, _TAIL_BATCH)
    if n_pad != n:
        p3 = jnp.pad(p3, ((0, n_pad - n), (0, 0), (0, 0), (0, 0)))

    w3, b3 = params["conv3"]
    w4, b4 = params["conv4"]
    args = [p3, w3, b3, w4, b4]
    for w, b in params["fc"]:
        args += [w, b]

    def whole(a):
        nd = a.ndim
        return pl.BlockSpec(a.shape, lambda g: (0,) * nd)

    in_specs = [pl.BlockSpec((_TAIL_BATCH,) + p3.shape[1:],
                             lambda g: (g, 0, 0, 0))]
    in_specs += [whole(a) for a in args[1:]]

    out = pl.pallas_call(
        _tail_kernel,
        out_shape=jax.ShapeDtypeStruct((n_pad, 1), jnp.float32),
        grid=(n_pad // _TAIL_BATCH,),
        in_specs=in_specs,
        out_specs=pl.BlockSpec((_TAIL_BATCH, 1), lambda g: (g, 0)),
        compiler_params=pltpu.CompilerParams(
            dimension_semantics=("parallel",),
            vmem_limit_bytes=_VMEM_LIMIT),
    )(*args)
    return out[:n]


# -----------------------------------------------------------------------------
# XLA glue: im2col patches grouped per 2x2-pool-window position
# -----------------------------------------------------------------------------

def pool_conv_patches(x, k):
    """x: (N, H, W, C) -> patches (N, 4, Hp*Wp, k*k*C), plus (Hp, Wp).

    patches[n, q, i*Wp + j, :] is the flattened (kh, kw, c) conv patch at conv
    position (2i+di, 2j+dj), q enumerating (di, dj) in {0,1}^2.
    """
    N, H, W, C = x.shape
    Hc, Wc = H - k + 1, W - k + 1
    Hp, Wp = Hc // 2, Wc // 2                       # MaxPool2d(2,2), floor
    ar_k = jnp.arange(k)
    groups = []
    for di in range(2):
        for dj in range(2):
            rows = (2 * jnp.arange(Hp) + di)[:, None] + ar_k[None, :]  # (Hp,k)
            cols = (2 * jnp.arange(Wp) + dj)[:, None] + ar_k[None, :]  # (Wp,k)
            p = x[:, rows]                          # (N, Hp, k, W, C)
            p = p[:, :, :, cols]                    # (N, Hp, k, Wp, k, C)
            p = jnp.transpose(p, (0, 1, 3, 2, 4, 5))  # (N, Hp, Wp, kh, kw, C)
            groups.append(p.reshape(N, Hp * Wp, k * k * C))
    return jnp.stack(groups, axis=1), (Hp, Wp)


# -----------------------------------------------------------------------------
# Parameters + forward
# -----------------------------------------------------------------------------

def init_params(key):
    def uniform(kk, shape, fan_in):
        bound = 1.0 / np.sqrt(fan_in)
        return jax.random.uniform(kk, shape, jnp.float32, -bound, bound)

    keys = jax.random.split(key, 2 * (len(_CONV_CFG) + len(_FC_CFG)))
    ki = 0
    conv_w, conv_b = [], []
    for cin, cout, k in _CONV_CFG:
        fan_in = cin * k * k
        conv_w.append(uniform(keys[ki], (k, k, cin, cout), fan_in))   # HWIO
        conv_b.append(uniform(keys[ki + 1], (1, cout), fan_in))
        ki += 2
    fcs = []
    for fin, fout in _FC_CFG:
        w = uniform(keys[ki], (fin, fout), fin)
        b = uniform(keys[ki + 1], (1, fout), fin)
        fcs.append((w.astype(jnp.bfloat16), b))
        ki += 2

    return {
        # conv1 / conv2: packed (K, Cout) bf16 weights + f32 bias
        "conv12": [(conv_w[i].reshape(-1, _CONV_CFG[i][1]).astype(jnp.bfloat16),
                    conv_b[i]) for i in range(2)],
        # conv3: (64, 32); conv4 kept per-(kh, kw): (4, 32, 64)
        "conv3": (conv_w[2].reshape(-1, 32).astype(jnp.bfloat16), conv_b[2]),
        "conv4": (conv_w[3].reshape(4, 32, 64).astype(jnp.bfloat16), conv_b[3]),
        "fc": fcs,
    }


def ei_net_forward(x_nchw, params):
    """x_nchw: (N, 1, 48, 48) float32 (PyTorch NCHW convention) -> (N, 1)."""
    x = jnp.transpose(x_nchw, (0, 2, 3, 1)).astype(jnp.bfloat16)   # NHWC bf16
    n = x.shape[0]

    # conv1, conv2: XLA im2col glue + Pallas fused GEMM/bias/ReLU/2x2-pool
    for (w, b), (_, cout, k) in zip(params["conv12"], _CONV_CFG[:2]):
        p4, (hp, wp) = pool_conv_patches(x, k)          # (N, 4, P', K)
        P = n * hp * wp
        kdim = p4.shape[-1]
        pat = jnp.transpose(p4, (1, 0, 2, 3)).reshape(4, P, kdim)
        tile_p = min(512, _round_up(P, 128))
        p_pad = _round_up(P, tile_p)
        if p_pad != P:
            pat = jnp.pad(pat, ((0, 0), (0, p_pad - P), (0, 0)))
        y = conv_relu_pool(pat, w, b, tile_p=tile_p)    # (P_pad, Cout) bf16
        x = y[:P].reshape(n, hp, wp, cout)

    # conv3 + conv4 + fc1..fc4 + sigmoid, fused in a single Pallas call.
    p3, _ = pool_conv_patches(x, 2)                     # (N, 4, 16, 64) bf16
    return conv_tail_mlp(p3, params)                    # (N, 1) f32


if __name__ == "__main__":
    key = jax.random.PRNGKey(0)
    kx, kp = jax.random.split(key)

    # input_shape = (48, 48); batch = 2, single input channel (NCHW)
    x = jax.random.normal(kx, (2, 1, 48, 48), jnp.float32)
    params = init_params(kp)

    fwd = jax.jit(ei_net_forward)
    out = jax.block_until_ready(fwd(x, params))

    assert out.shape == (2, 1), out.shape
    assert bool(jnp.all(jnp.isfinite(out)))
    print("KERNEL_OK")
</pallas_src>

<mosaic_0001>
module attributes {stable_mosaic.version = 11 : i64} {
  func.func @_conv_relu_pool_kernel(%arg0: i32, %arg1: memref<4x512x36xbf16, #tpu.memory_space<vmem>>, %arg2: memref<36x8xbf16, #tpu.memory_space<vmem>>, %arg3: memref<1x8xf32, #tpu.memory_space<vmem>>, %arg4: memref<512x8xbf16, #tpu.memory_space<vmem>>) attributes {dimension_semantics = [#tpu.dimension_semantics<parallel>], iteration_bounds = array<i64: 2>, scalar_prefetch = 0 : i64, scratch_operands = 0 : i64, tpu.core_type = #tpu.core_type<tc>, window_params = [{transform_indices = @transform_0, window_bounds = array<i64: 4, 512, 36>}, {pipeline_mode = #tpu.pipeline_mode<synchronous>, transform_indices = @transform_1, window_bounds = array<i64: 36, 8>}, {pipeline_mode = #tpu.pipeline_mode<synchronous>, transform_indices = @transform_2, window_bounds = array<i64: 1, 8>}, {transform_indices = @transform_3, window_bounds = array<i64: 512, 8>}]} {
    %c0 = arith.constant 0 : index
    %c0_0 = arith.constant 0 : index
    %c0_1 = arith.constant 0 : index
    %0 = vector.load %arg1[%c0, %c0_0, %c0_1] : memref<4x512x36xbf16, #tpu.memory_space<vmem>>, vector<4x512x36xbf16>
    %1 = vector.shape_cast %0 : vector<4x512x36xbf16> to vector<2048x36xbf16>
    %c0_2 = arith.constant 0 : index
    %c0_3 = arith.constant 0 : index
    %2 = vector.load %arg2[%c0_2, %c0_3] : memref<36x8xbf16, #tpu.memory_space<vmem>>, vector<36x8xbf16>
    %cst = arith.constant dense<0.000000e+00> : vector<2048x8xf32>
    %3 = tpu.matmul %1, %2, %cst {dimension_numbers = #tpu.dot_dimension_numbers<[1], [0], [0], [1], [0, 0, 1, 1], [], []>} : vector<2048x36xbf16>, vector<36x8xbf16>, vector<2048x8xf32> -> vector<2048x8xf32>
    %4 = vector.shape_cast %3 : vector<2048x8xf32> to vector<4x512x8xf32>
    %5 = vector.extract_strided_slice %4 {offsets = [0, 0, 0], sizes = [1, 512, 8], strides = [1, 1, 1]} : vector<4x512x8xf32> to vector<1x512x8xf32>
    %6 = vector.shape_cast %5 : vector<1x512x8xf32> to vector<512x8xf32>
    %7 = vector.extract_strided_slice %4 {offsets = [1, 0, 0], sizes = [1, 512, 8], strides = [1, 1, 1]} : vector<4x512x8xf32> to vector<1x512x8xf32>
    %8 = vector.shape_cast %7 : vector<1x512x8xf32> to vector<512x8xf32>
    %9 = arith.maximumf %6, %8 : vector<512x8xf32>
    %10 = vector.extract_strided_slice %4 {offsets = [2, 0, 0], sizes = [1, 512, 8], strides = [1, 1, 1]} : vector<4x512x8xf32> to vector<1x512x8xf32>
    %11 = vector.shape_cast %10 : vector<1x512x8xf32> to vector<512x8xf32>
    %12 = vector.extract_strided_slice %4 {offsets = [3, 0, 0], sizes = [1, 512, 8], strides = [1, 1, 1]} : vector<4x512x8xf32> to vector<1x512x8xf32>
    %13 = vector.shape_cast %12 : vector<1x512x8xf32> to vector<512x8xf32>
    %14 = arith.maximumf %11, %13 : vector<512x8xf32>
    %15 = arith.maximumf %9, %14 : vector<512x8xf32>
    %c0_4 = arith.constant 0 : index
    %c0_5 = arith.constant 0 : index
    %16 = vector.load %arg3[%c0_4, %c0_5] : memref<1x8xf32, #tpu.memory_space<vmem>>, vector<1x8xf32>
    %17 = vector.broadcast %16 : vector<1x8xf32> to vector<512x8xf32>
    %18 = arith.addf %15, %17 : vector<512x8xf32>
    %cst_6 = arith.constant 0.000000e+00 : f32
    %19 = vector.broadcast %cst_6 : f32 to vector<512x8xf32>
    %20 = arith.maximumf %18, %19 : vector<512x8xf32>
    %21 = arith.truncf %20 : vector<512x8xf32> to vector<512x8xbf16>
    %c0_7 = arith.constant 0 : index
    %c0_8 = arith.constant 0 : index
    %22 = vector.load %arg4[%c0_7, %c0_8] : memref<512x8xbf16, #tpu.memory_space<vmem>>, vector<512x8xbf16>
    tpu.vector_store %arg4[%c0_7, %c0_8], %21 {strides = array<i32>} : memref<512x8xbf16, #tpu.memory_space<vmem>>, vector<512x8xbf16>,
    return
  }
  func.func @transform_0(%arg0: i32) -> (i32, i32, i32) {
    %c0_i32 = arith.constant 0 : i32
    %c0_i32_0 = arith.constant 0 : i32
    %c0_i32_1 = arith.constant 0 : i32
    return %c0_i32, %arg0, %c0_i32_0 : i32, i32, i32
  }
  func.func @transform_1(%arg0: i32) -> (i32, i32) {
    %c0_i32 = arith.constant 0 : i32
    %c0_i32_0 = arith.constant 0 : i32
    %c0_i32_1 = arith.constant 0 : i32
    return %c0_i32, %c0_i32_0 : i32, i32
  }
  func.func @transform_2(%arg0: i32) -> (i32, i32) {
    %c0_i32 = arith.constant 0 : i32
    %c0_i32_0 = arith.constant 0 : i32
    %c0_i32_1 = arith.constant 0 : i32
    return %c0_i32, %c0_i32_0 : i32, i32
  }
  func.func @transform_3(%arg0: i32) -> (i32, i32) {
    %c0_i32 = arith.constant 0 : i32
    %c0_i32_0 = arith.constant 0 : i32
    return %arg0, %c0_i32 : i32, i32
  }
}

module attributes {stable_mosaic.version = 11 : i64} {
  func.func @_conv_relu_pool_kernel(%arg0: i32, %arg1: memref<4x256x128xbf16, #tpu.memory_space<vmem>>, %arg2: memref<128x16xbf16, #tpu.memory_space<vmem>>, %arg3: memref<1x16xf32, #tpu.memory_space<vmem>>, %arg4: memref<256x16xbf16, #tpu.memory_space<vmem>>) attributes {dimension_semantics = [#tpu.dimension_semantics<parallel>], iteration_bounds = array<i64: 1>, scalar_prefetch = 0 : i64, scratch_operands = 0 : i64, tpu.core_type = #tpu.core_type<tc>, window_params = [{transform_indices = @transform_0, window_bounds = array<i64: 4, 256, 128>}, {pipeline_mode = #tpu.pipeline_mode<synchronous>, transform_indices = @transform_1, window_bounds = array<i64: 128, 16>}, {pipeline_mode = #tpu.pipeline_mode<synchronous>, transform_indices = @transform_2, window_bounds = array<i64: 1, 16>}, {transform_indices = @transform_3, window_bounds = array<i64: 256, 16>}]} {
    %c0 = arith.constant 0 : index
    %c0_0 = arith.constant 0 : index
    %c0_1 = arith.constant 0 : index
    %0 = vector.load %arg1[%c0, %c0_0, %c0_1] : memref<4x256x128xbf16, #tpu.memory_space<vmem>>, vector<4x256x128xbf16>
    %1 = vector.shape_cast %0 : vector<4x256x128xbf16> to vector<1024x128xbf16>
    %c0_2 = arith.constant 0 : index
    %c0_3 = arith.constant 0 : index
    %2 = vector.load %arg2[%c0_2, %c0_3] : memref<128x16xbf16, #tpu.memory_space<vmem>>, vector<128x16xbf16>
    %cst = arith.constant dense<0.000000e+00> : vector<1024x16xf32>
    %3 = tpu.matmul %1, %2, %cst {dimension_numbers = #tpu.dot_dimension_numbers<[1], [0], [0], [1], [0, 0, 1, 1], [], []>} : vector<1024x128xbf16>, vector<128x16xbf16>, vector<1024x16xf32> -> vector<1024x16xf32>
    %4 = vector.shape_cast %3 : vector<1024x16xf32> to vector<4x256x16xf32>
    %5 = vector.extract_strided_slice %4 {offsets = [0, 0, 0], sizes = [1, 256, 16], strides = [1, 1, 1]} : vector<4x256x16xf32> to vector<1x256x16xf32>
    %6 = vector.shape_cast %5 : vector<1x256x16xf32> to vector<256x16xf32>
    %7 = vector.extract_strided_slice %4 {offsets = [1, 0, 0], sizes = [1, 256, 16], strides = [1, 1, 1]} : vector<4x256x16xf32> to vector<1x256x16xf32>
    %8 = vector.shape_cast %7 : vector<1x256x16xf32> to vector<256x16xf32>
    %9 = arith.maximumf %6, %8 : vector<256x16xf32>
    %10 = vector.extract_strided_slice %4 {offsets = [2, 0, 0], sizes = [1, 256, 16], strides = [1, 1, 1]} : vector<4x256x16xf32> to vector<1x256x16xf32>
    %11 = vector.shape_cast %10 : vector<1x256x16xf32> to vector<256x16xf32>
    %12 = vector.extract_strided_slice %4 {offsets = [3, 0, 0], sizes = [1, 256, 16], strides = [1, 1, 1]} : vector<4x256x16xf32> to vector<1x256x16xf32>
    %13 = vector.shape_cast %12 : vector<1x256x16xf32> to vector<256x16xf32>
    %14 = arith.maximumf %11, %13 : vector<256x16xf32>
    %15 = arith.maximumf %9, %14 : vector<256x16xf32>
    %c0_4 = arith.constant 0 : index
    %c0_5 = arith.constant 0 : index
    %16 = vector.load %arg3[%c0_4, %c0_5] : memref<1x16xf32, #tpu.memory_space<vmem>>, vector<1x16xf32>
    %17 = vector.broadcast %16 : vector<1x16xf32> to vector<256x16xf32>
    %18 = arith.addf %15, %17 : vector<256x16xf32>
    %cst_6 = arith.constant 0.000000e+00 : f32
    %19 = vector.broadcast %cst_6 : f32 to vector<256x16xf32>
    %20 = arith.maximumf %18, %19 : vector<256x16xf32>
    %21 = arith.truncf %20 : vector<256x16xf32> to vector<256x16xbf16>
    %c0_7 = arith.constant 0 : index
    %c0_8 = arith.constant 0 : index
    %22 = vector.load %arg4[%c0_7, %c0_8] : memref<256x16xbf16, #tpu.memory_space<vmem>>, vector<256x16xbf16>
    tpu.vector_store %arg4[%c0_7, %c0_8], %21 {strides = array<i32>} : memref<256x16xbf16, #tpu.memory_space<vmem>>, vector<256x16xbf16>,
    return
  }
  func.func @transform_0(%arg0: i32) -> (i32, i32, i32) {
    %c0_i32 = arith.constant 0 : i32
    %c0_i32_0 = arith.constant 0 : i32
    %c0_i32_1 = arith.constant 0 : i32
    return %c0_i32, %arg0, %c0_i32_0 : i32, i32, i32
  }
  func.func @transform_1(%arg0: i32) -> (i32, i32) {
    %c0_i32 = arith.constant 0 : i32
    %c0_i32_0 = arith.constant 0 : i32
    %c0_i32_1 = arith.constant 0 : i32
    return %c0_i32, %c0_i32_0 : i32, i32
  }
  func.func @transform_2(%arg0: i32) -> (i32, i32) {
    %c0_i32 = arith.constant 0 : i32
    %c0_i32_0 = arith.constant 0 : i32
    %c0_i32_1 = arith.constant 0 : i32
    return %c0_i32, %c0_i32_0 : i32, i32
  }
  func.func @transform_3(%arg0: i32) -> (i32, i32) {
    %c0_i32 = arith.constant 0 : i32
    %c0_i32_0 = arith.constant 0 : i32
    return %arg0, %c0_i32 : i32, i32
  }
}

module attributes {stable_mosaic.version = 11 : i64} {
  func.func @_tail_kernel(%arg0: i32, %arg1: memref<8x4x16x64xbf16, #tpu.memory_space<vmem>>, %arg2: memref<64x32xbf16, #tpu.memory_space<vmem>>, %arg3: memref<1x32xf32, #tpu.memory_space<vmem>>, %arg4: memref<4x32x64xbf16, #tpu.memory_space<vmem>>, %arg5: memref<1x64xf32, #tpu.memory_space<vmem>>, %arg6: memref<64x128xbf16, #tpu.memory_space<vmem>>, %arg7: memref<1x128xf32, #tpu.memory_space<vmem>>, %arg8: memref<128x64xbf16, #tpu.memory_space<vmem>>, %arg9: memref<1x64xf32, #tpu.memory_space<vmem>>, %arg10: memref<64x16xbf16, #tpu.memory_space<vmem>>, %arg11: memref<1x16xf32, #tpu.memory_space<vmem>>, %arg12: memref<16x1xbf16, #tpu.memory_space<vmem>>, %arg13: memref<1x1xf32, #tpu.memory_space<vmem>>, %arg14: memref<8x1xf32, #tpu.memory_space<vmem>>) attributes {dimension_semantics = [#tpu.dimension_semantics<parallel>], iteration_bounds = array<i64: 1>, scalar_prefetch = 0 : i64, scratch_operands = 0 : i64, tpu.core_type = #tpu.core_type<tc>, window_params = [{transform_indices = @transform_0, window_bounds = array<i64: 8, 4, 16, 64>}, {pipeline_mode = #tpu.pipeline_mode<synchronous>, transform_indices = @transform_1, window_bounds = array<i64: 64, 32>}, {pipeline_mode = #tpu.pipeline_mode<synchronous>, transform_indices = @transform_2, window_bounds = array<i64: 1, 32>}, {pipeline_mode = #tpu.pipeline_mode<synchronous>, transform_indices = @transform_3, window_bounds = array<i64: 4, 32, 64>}, {pipeline_mode = #tpu.pipeline_mode<synchronous>, transform_indices = @transform_4, window_bounds = array<i64: 1, 64>}, {pipeline_mode = #tpu.pipeline_mode<synchronous>, transform_indices = @transform_5, window_bounds = array<i64: 64, 128>}, {pipeline_mode = #tpu.pipeline_mode<synchronous>, transform_indices = @transform_6, window_bounds = array<i64: 1, 128>}, {pipeline_mode = #tpu.pipeline_mode<synchronous>, transform_indices = @transform_7, window_bounds = array<i64: 128, 64>}, {pipeline_mode = #tpu.pipeline_mode<synchronous>, transform_indices = @transform_8, window_bounds = array<i64: 1, 64>}, {pipeline_mode = #tpu.pipeline_mode<synchronous>, transform_indices = @transform_9, window_bounds = array<i64: 64, 16>}, {pipeline_mode = #tpu.pipeline_mode<synchronous>, transform_indices = @transform_10, window_bounds = array<i64: 1, 16>}, {pipeline_mode = #tpu.pipeline_mode<synchronous>, transform_indices = @transform_11, window_bounds = array<i64: 16, 1>}, {pipeline_mode = #tpu.pipeline_mode<synchronous>, transform_indices = @transform_12, window_bounds = array<i64: 1, 1>}, {transform_indices = @transform_13, window_bounds = array<i64: 8, 1>}]} {
    %c0 = arith.constant 0 : index
    %c0_0 = arith.constant 0 : index
    %c0_1 = arith.constant 0 : index
    %c0_2 = arith.constant 0 : index
    %0 = vector.load %arg1[%c0, %c0_0, %c0_1, %c0_2] : memref<8x4x16x64xbf16, #tpu.memory_space<vmem>>, vector<8x4x16x64xbf16>
    %1 = vector.shape_cast %0 : vector<8x4x16x64xbf16> to vector<512x64xbf16>
    %c0_3 = arith.constant 0 : index
    %c0_4 = arith.constant 0 : index
    %2 = vector.load %arg2[%c0_3, %c0_4] : memref<64x32xbf16, #tpu.memory_space<vmem>>, vector<64x32xbf16>
    %cst = arith.constant dense<0.000000e+00> : vector<512x32xf32>
    %3 = tpu.matmul %1, %2, %cst {dimension_numbers = #tpu.dot_dimension_numbers<[1], [0], [0], [1], [0, 0, 1, 1], [], []>} : vector<512x64xbf16>, vector<64x32xbf16>, vector<512x32xf32> -> vector<512x32xf32>
    %4 = vector.shape_cast %3 : vector<512x32xf32> to vector<8x4x16x32xf32>
    %5 = vector.extract_strided_slice %4 {offsets = [0, 0, 0, 0], sizes = [8, 1, 16, 32], strides = [1, 1, 1, 1]} : vector<8x4x16x32xf32> to vector<8x1x16x32xf32>
    %6 = vector.shape_cast %5 : vector<8x1x16x32xf32> to vector<8x16x32xf32>
    %7 = vector.extract_strided_slice %4 {offsets = [0, 1, 0, 0], sizes = [8, 1, 16, 32], strides = [1, 1, 1, 1]} : vector<8x4x16x32xf32> to vector<8x1x16x32xf32>
    %8 = vector.shape_cast %7 : vector<8x1x16x32xf32> to vector<8x16x32xf32>
    %9 = arith.maximumf %6, %8 : vector<8x16x32xf32>
    %10 = vector.extract_strided_slice %4 {offsets = [0, 2, 0, 0], sizes = [8, 1, 16, 32], strides = [1, 1, 1, 1]} : vector<8x4x16x32xf32> to vector<8x1x16x32xf32>
    %11 = vector.shape_cast %10 : vector<8x1x16x32xf32> to vector<8x16x32xf32>
    %12 = vector.extract_strided_slice %4 {offsets = [0, 3, 0, 0], sizes = [8, 1, 16, 32], strides = [1, 1, 1, 1]} : vector<8x4x16x32xf32> to vector<8x1x16x32xf32>
    %13 = vector.shape_cast %12 : vector<8x1x16x32xf32> to vector<8x16x32xf32>
    %14 = arith.maximumf %11, %13 : vector<8x16x32xf32>
    %15 = arith.maximumf %9, %14 : vector<8x16x32xf32>
    %c0_5 = arith.constant 0 : index
    %c0_6 = arith.constant 0 : index
    %16 = vector.load %arg3[%c0_5, %c0_6] : memref<1x32xf32, #tpu.memory_space<vmem>>, vector<1x32xf32>
    %17 = vector.shape_cast %16 : vector<1x32xf32> to vector<1x1x32xf32>
    %18 = vector.broadcast %17 : vector<1x1x32xf32> to vector<8x16x32xf32>
    %19 = arith.addf %15, %18 : vector<8x16x32xf32>
    %cst_7 = arith.constant 0.000000e+00 : f32
    %20 = vector.broadcast %cst_7 : f32 to vector<8x16x32xf32>
    %21 = arith.maximumf %19, %20 : vector<8x16x32xf32>
    %22 = arith.truncf %21 : vector<8x16x32xf32> to vector<8x16x32xbf16>
    %c0_8 = arith.constant 0 : index
    %c0_9 = arith.constant 0 : index
    %c0_10 = arith.constant 0 : index
    %23 = vector.load %arg4[%c0_8, %c0_9, %c0_10] : memref<4x32x64xbf16, #tpu.memory_space<vmem>>, vector<4x32x64xbf16>
    %24 = vector.extract_strided_slice %22 {offsets = [0, 0, 0], sizes = [8, 1, 32], strides = [1, 1, 1]} : vector<8x16x32xbf16> to vector<8x1x32xbf16>
    %25 = vector.shape_cast %24 : vector<8x1x32xbf16> to vector<8x32xbf16>
    %26 = vector.extract_strided_slice %23 {offsets = [0, 0, 0], sizes = [1, 32, 64], strides = [1, 1, 1]} : vector<4x32x64xbf16> to vector<1x32x64xbf16>
    %27 = vector.shape_cast %26 : vector<1x32x64xbf16> to vector<32x64xbf16>
    %cst_11 = arith.constant dense<0.000000e+00> : vector<8x64xf32>
    %28 = tpu.matmul %25, %27, %cst_11 {dimension_numbers = #tpu.dot_dimension_numbers<[1], [0], [0], [1], [0, 0, 1, 1], [], []>} : vector<8x32xbf16>, vector<32x64xbf16>, vector<8x64xf32> -> vector<8x64xf32>
    %29 = vector.extract_strided_slice %22 {offsets = [0, 1, 0], sizes = [8, 1, 32], strides = [1, 1, 1]} : vector<8x16x32xbf16> to vector<8x1x32xbf16>
    %30 = vector.shape_cast %29 : vector<8x1x32xbf16> to vector<8x32xbf16>
    %31 = vector.extract_strided_slice %23 {offsets = [1, 0, 0], sizes = [1, 32, 64], strides = [1, 1, 1]} : vector<4x32x64xbf16> to vector<1x32x64xbf16>
    %32 = vector.shape_cast %31 : vector<1x32x64xbf16> to vector<32x64xbf16>
    %cst_12 = arith.constant dense<0.000000e+00> : vector<8x64xf32>
    %33 = tpu.matmul %30, %32, %cst_12 {dimension_numbers = #tpu.dot_dimension_numbers<[1], [0], [0], [1], [0, 0, 1, 1], [], []>} : vector<8x32xbf16>, vector<32x64xbf16>, vector<8x64xf32> -> vector<8x64xf32>
    %34 = arith.addf %28, %33 : vector<8x64xf32>
    %35 = vector.extract_strided_slice %22 {offsets = [0, 4, 0], sizes = [8, 1, 32], strides = [1, 1, 1]} : vector<8x16x32xbf16> to vector<8x1x32xbf16>
    %36 = vector.shape_cast %35 : vector<8x1x32xbf16> to vector<8x32xbf16>
    %37 = vector.extract_strided_slice %23 {offsets = [2, 0, 0], sizes = [1, 32, 64], strides = [1, 1, 1]} : vector<4x32x64xbf16> to vector<1x32x64xbf16>
    %38 = vector.shape_cast %37 : vector<1x32x64xbf16> to vector<32x64xbf16>
    %cst_13 = arith.constant dense<0.000000e+00> : vector<8x64xf32>
    %39 = tpu.matmul %36, %38, %cst_13 {dimension_numbers = #tpu.dot_dimension_numbers<[1], [0], [0], [1], [0, 0, 1, 1], [], []>} : vector<8x32xbf16>, vector<32x64xbf16>, vector<8x64xf32> -> vector<8x64xf32>
    %40 = arith.addf %34, %39 : vector<8x64xf32>
    %41 = vector.extract_strided_slice %22 {offsets = [0, 5, 0], sizes = [8, 1, 32], strides = [1, 1, 1]} : vector<8x16x32xbf16> to vector<8x1x32xbf16>
    %42 = vector.shape_cast %41 : vector<8x1x32xbf16> to vector<8x32xbf16>
    %43 = vector.extract_strided_slice %23 {offsets = [3, 0, 0], sizes = [1, 32, 64], strides = [1, 1, 1]} : vector<4x32x64xbf16> to vector<1x32x64xbf16>
    %44 = vector.shape_cast %43 : vector<1x32x64xbf16> to vector<32x64xbf16>
    %cst_14 = arith.constant dense<0.000000e+00> : vector<8x64xf32>
    %45 = tpu.matmul %42, %44, %cst_14 {dimension_numbers = #tpu.dot_dimension_numbers<[1], [0], [0], [1], [0, 0, 1, 1], [], []>} : vector<8x32xbf16>, vector<32x64xbf16>, vector<8x64xf32> -> vector<8x64xf32>
    %46 = arith.addf %40, %45 : vector<8x64xf32>
    %47 = vector.extract_strided_slice %22 {offsets = [0, 1, 0], sizes = [8, 1, 32], strides = [1, 1, 1]} : vector<8x16x32xbf16> to vector<8x1x32xbf16>
    %48 = vector.shape_cast %47 : vector<8x1x32xbf16> to vector<8x32xbf16>
    %49 = vector.extract_strided_slice %23 {offsets = [0, 0, 0], sizes = [1, 32, 64], strides = [1, 1, 1]} : vector<4x32x64xbf16> to vector<1x32x64xbf16>
    %50 = vector.shape_cast %49 : vector<1x32x64xbf16> to vector<32x64xbf16>
    %cst_15 = arith.constant dense<0.000000e+00> : vector<8x64xf32>
    %51 = tpu.matmul %48, %50, %cst_15 {dimension_numbers = #tpu.dot_dimension_numbers<[1], [0], [0], [1], [0, 0, 1, 1], [], []>} : vector<8x32xbf16>, vector<32x64xbf16>, vector<8x64xf32> -> vector<8x64xf32>
    %52 = vector.extract_strided_slice %22 {offsets = [0, 2, 0], sizes = [8, 1, 32], strides = [1, 1, 1]} : vector<8x16x32xbf16> to vector<8x1x32xbf16>
    %53 = vector.shape_cast %52 : vector<8x1x32xbf16> to vector<8x32xbf16>
    %54 = vector.extract_strided_slice %23 {offsets = [1, 0, 0], sizes = [1, 32, 64], strides = [1, 1, 1]} : vector<4x32x64xbf16> to vector<1x32x64xbf16>
    %55 = vector.shape_cast %54 : vector<1x32x64xbf16> to vector<32x64xbf16>
    %cst_16 = arith.constant dense<0.000000e+00> : vector<8x64xf32>
    %56 = tpu.matmul %53, %55, %cst_16 {dimension_numbers = #tpu.dot_dimension_numbers<[1], [0], [0], [1], [0, 0, 1, 1], [], []>} : vector<8x32xbf16>, vector<32x64xbf16>, vector<8x64xf32> -> vector<8x64xf32>
    %57 = arith.addf %51, %56 : vector<8x64xf32>
    %58 = vector.extract_strided_slice %22 {offsets = [0, 5, 0], sizes = [8, 1, 32], strides = [1, 1, 1]} : vector<8x16x32xbf16> to vector<8x1x32xbf16>
    %59 = vector.shape_cast %58 : vector<8x1x32xbf16> to vector<8x32xbf16>
    %60 = vector.extract_strided_slice %23 {offsets = [2, 0, 0], sizes = [1, 32, 64], strides = [1, 1, 1]} : vector<4x32x64xbf16> to vector<1x32x64xbf16>
    %61 = vector.shape_cast %60 : vector<1x32x64xbf16> to vector<32x64xbf16>
    %cst_17 = arith.constant dense<0.000000e+00> : vector<8x64xf32>
    %62 = tpu.matmul %59, %61, %cst_17 {dimension_numbers = #tpu.dot_dimension_numbers<[1], [0], [0], [1], [0, 0, 1, 1], [], []>} : vector<8x32xbf16>, vector<32x64xbf16>, vector<8x64xf32> -> vector<8x64xf32>
    %63 = arith.addf %57, %62 : vector<8x64xf32>
    %64 = vector.extract_strided_slice %22 {offsets = [0, 6, 0], sizes = [8, 1, 32], strides = [1, 1, 1]} : vector<8x16x32xbf16> to vector<8x1x32xbf16>
    %65 = vector.shape_cast %64 : vector<8x1x32xbf16> to vector<8x32xbf16>
    %66 = vector.extract_strided_slice %23 {offsets = [3, 0, 0], sizes = [1, 32, 64], strides = [1, 1, 1]} : vector<4x32x64xbf16> to vector<1x32x64xbf16>
    %67 = vector.shape_cast %66 : vector<1x32x64xbf16> to vector<32x64xbf16>
    %cst_18 = arith.constant dense<0.000000e+00> : vector<8x64xf32>
    %68 = tpu.matmul %65, %67, %cst_18 {dimension_numbers = #tpu.dot_dimension_numbers<[1], [0], [0], [1], [0, 0, 1, 1], [], []>} : vector<8x32xbf16>, vector<32x64xbf16>, vector<8x64xf32> -> vector<8x64xf32>
    %69 = arith.addf %63, %68 : vector<8x64xf32>
    %70 = vector.extract_strided_slice %22 {offsets = [0, 4, 0], sizes = [8, 1, 32], strides = [1, 1, 1]} : vector<8x16x32xbf16> to vector<8x1x32xbf16>
    %71 = vector.shape_cast %70 : vector<8x1x32xbf16> to vector<8x32xbf16>
    %72 = vector.extract_strided_slice %23 {offsets = [0, 0, 0], sizes = [1, 32, 64], strides = [1, 1, 1]} : vector<4x32x64xbf16> to vector<1x32x64xbf16>
    %73 = vector.shape_cast %72 : vector<1x32x64xbf16> to vector<32x64xbf16>
    %cst_19 = arith.constant dense<0.000000e+00> : vector<8x64xf32>
    %74 = tpu.matmul %71, %73, %cst_19 {dimension_numbers = #tpu.dot_dimension_numbers<[1], [0], [0], [1], [0, 0, 1, 1], [], []>} : vector<8x32xbf16>, vector<32x64xbf16>, vector<8x64xf32> -> vector<8x64xf32>
    %75 = vector.extract_strided_slice %22 {offsets = [0, 5, 0], sizes = [8, 1, 32], strides = [1, 1, 1]} : vector<8x16x32xbf16> to vector<8x1x32xbf16>
    %76 = vector.shape_cast %75 : vector<8x1x32xbf16> to vector<8x32xbf16>
    %77 = vector.extract_strided_slice %23 {offsets = [1, 0, 0], sizes = [1, 32, 64], strides = [1, 1, 1]} : vector<4x32x64xbf16> to vector<1x32x64xbf16>
    %78 = vector.shape_cast %77 : vector<1x32x64xbf16> to vector<32x64xbf16>
    %cst_20 = arith.constant dense<0.000000e+00> : vector<8x64xf32>
    %79 = tpu.matmul %76, %78, %cst_20 {dimension_numbers = #tpu.dot_dimension_numbers<[1], [0], [0], [1], [0, 0, 1, 1], [], []>} : vector<8x32xbf16>, vector<32x64xbf16>, vector<8x64xf32> -> vector<8x64xf32>
    %80 = arith.addf %74, %79 : vector<8x64xf32>
    %81 = vector.extract_strided_slice %22 {offsets = [0, 8, 0], sizes = [8, 1, 32], strides = [1, 1, 1]} : vector<8x16x32xbf16> to vector<8x1x32xbf16>
    %82 = vector.shape_cast %81 : vector<8x1x32xbf16> to vector<8x32xbf16>
    %83 = vector.extract_strided_slice %23 {offsets = [2, 0, 0], sizes = [1, 32, 64], strides = [1, 1, 1]} : vector<4x32x64xbf16> to vector<1x32x64xbf16>
    %84 = vector.shape_cast %83 : vector<1x32x64xbf16> to vector<32x64xbf16>
    %cst_21 = arith.constant dense<0.000000e+00> : vector<8x64xf32>
    %85 = tpu.matmul %82, %84, %cst_21 {dimension_numbers = #tpu.dot_dimension_numbers<[1], [0], [0], [1], [0, 0, 1, 1], [], []>} : vector<8x32xbf16>, vector<32x64xbf16>, vector<8x64xf32> -> vector<8x64xf32>
    %86 = arith.addf %80, %85 : vector<8x64xf32>
    %87 = vector.extract_strided_slice %22 {offsets = [0, 9, 0], sizes = [8, 1, 32], strides = [1, 1, 1]} : vector<8x16x32xbf16> to vector<8x1x32xbf16>
    %88 = vector.shape_cast %87 : vector<8x1x32xbf16> to vector<8x32xbf16>
    %89 = vector.extract_strided_slice %23 {offsets = [3, 0, 0], sizes = [1, 32, 64], strides = [1, 1, 1]} : vector<4x32x64xbf16> to vector<1x32x64xbf16>
    %90 = vector.shape_cast %89 : vector<1x32x64xbf16> to vector<32x64xbf16>
    %cst_22 = arith.constant dense<0.000000e+00> : vector<8x64xf32>
    %91 = tpu.matmul %88, %90, %cst_22 {dimension_numbers = #tpu.dot_dimension_numbers<[1], [0], [0], [1], [0, 0, 1, 1], [], []>} : vector<8x32xbf16>, vector<32x64xbf16>, vector<8x64xf32> -> vector<8x64xf32>
    %92 = arith.addf %86, %91 : vector<8x64xf32>
    %93 = vector.extract_strided_slice %22 {offsets = [0, 5, 0], sizes = [8, 1, 32], strides = [1, 1, 1]} : vector<8x16x32xbf16> to vector<8x1x32xbf16>
    %94 = vector.shape_cast %93 : vector<8x1x32xbf16> to vector<8x32xbf16>
    %95 = vector.extract_strided_slice %23 {offsets = [0, 0, 0], sizes = [1, 32, 64], strides = [1, 1, 1]} : vector<4x32x64xbf16> to vector<1x32x64xbf16>
    %96 = vector.shape_cast %95 : vector<1x32x64xbf16> to vector<32x64xbf16>
    %cst_23 = arith.constant dense<0.000000e+00> : vector<8x64xf32>
    %97 = tpu.matmul %94, %96, %cst_23 {dimension_numbers = #tpu.dot_dimension_numbers<[1], [0], [0], [1], [0, 0, 1, 1], [], []>} : vector<8x32xbf16>, vector<32x64xbf16>, vector<8x64xf32> -> vector<8x64xf32>
    %98 = vector.extract_strided_slice %22 {offsets = [0, 6, 0], sizes = [8, 1, 32], strides = [1, 1, 1]} : vector<8x16x32xbf16> to vector<8x1x32xbf16>
    %99 = vector.shape_cast %98 : vector<8x1x32xbf16> to vector<8x32xbf16>
    %100 = vector.extract_strided_slice %23 {offsets = [1, 0, 0], sizes = [1, 32, 64], strides = [1, 1, 1]} : vector<4x32x64xbf16> to vector<1x32x64xbf16>
    %101 = vector.shape_cast %100 : vector<1x32x64xbf16> to vector<32x64xbf16>
    %cst_24 = arith.constant dense<0.000000e+00> : vector<8x64xf32>
    %102 = tpu.matmul %99, %101, %cst_24 {dimension_numbers = #tpu.dot_dimension_numbers<[1], [0], [0], [1], [0, 0, 1, 1], [], []>} : vector<8x32xbf16>, vector<32x64xbf16>, vector<8x64xf32> -> vector<8x64xf32>
    %103 = arith.addf %97, %102 : vector<8x64xf32>
    %104 = vector.extract_strided_slice %22 {offsets = [0, 9, 0], sizes = [8, 1, 32], strides = [1, 1, 1]} : vector<8x16x32xbf16> to vector<8x1x32xbf16>
    %105 = vector.shape_cast %104 : vector<8x1x32xbf16> to vector<8x32xbf16>
    %106 = vector.extract_strided_slice %23 {offsets = [2, 0, 0], sizes = [1, 32, 64], strides = [1, 1, 1]} : vector<4x32x64xbf16> to vector<1x32x64xbf16>
    %107 = vector.shape_cast %106 : vector<1x32x64xbf16> to vector<32x64xbf16>
    %cst_25 = arith.constant dense<0.000000e+00> : vector<8x64xf32>
    %108 = tpu.matmul %105, %107, %cst_25 {dimension_numbers = #tpu.dot_dimension_numbers<[1], [0], [0], [1], [0, 0, 1, 1], [], []>} : vector<8x32xbf16>, vector<32x64xbf16>, vector<8x64xf32> -> vector<8x64xf32>
    %109 = arith.addf %103, %108 : vector<8x64xf32>
    %110 = vector.extract_strided_slice %22 {offsets = [0, 10, 0], sizes = [8, 1, 32], strides = [1, 1, 1]} : vector<8x16x32xbf16> to vector<8x1x32xbf16>
    %111 = vector.shape_cast %110 : vector<8x1x32xbf16> to vector<8x32xbf16>
    %112 = vector.extract_strided_slice %23 {offsets = [3, 0, 0], sizes = [1, 32, 64], strides = [1, 1, 1]} : vector<4x32x64xbf16> to vector<1x32x64xbf16>
    %113 = vector.shape_cast %112 : vector<1x32x64xbf16> to vector<32x64xbf16>
    %cst_26 = arith.constant dense<0.000000e+00> : vector<8x64xf32>
    %114 = tpu.matmul %111, %113, %cst_26 {dimension_numbers = #tpu.dot_dimension_numbers<[1], [0], [0], [1], [0, 0, 1, 1], [], []>} : vector<8x32xbf16>, vector<32x64xbf16>, vector<8x64xf32> -> vector<8x64xf32>
    %115 = arith.addf %109, %114 : vector<8x64xf32>
    %116 = arith.maximumf %46, %69 : vector<8x64xf32>
    %117 = arith.maximumf %92, %115 : vector<8x64xf32>
    %118 = arith.maximumf %116, %117 : vector<8x64xf32>
    %c0_27 = arith.constant 0 : index
    %c0_28 = arith.constant 0 : index
    %119 = vector.load %arg5[%c0_27, %c0_28] : memref<1x64xf32, #tpu.memory_space<vmem>>, vector<1x64xf32>
    %120 = vector.broadcast %119 : vector<1x64xf32> to vector<8x64xf32>
    %121 = arith.addf %118, %120 : vector<8x64xf32>
    %cst_29 = arith.constant 0.000000e+00 : f32
    %122 = vector.broadcast %cst_29 : f32 to vector<8x64xf32>
    %123 = arith.maximumf %121, %122 : vector<8x64xf32>
    %124 = arith.truncf %123 : vector<8x64xf32> to vector<8x64xbf16>
    %c0_30 = arith.constant 0 : index
    %c0_31 = arith.constant 0 : index
    %125 = vector.load %arg6[%c0_30, %c0_31] : memref<64x128xbf16, #tpu.memory_space<vmem>>, vector<64x128xbf16>
    %cst_32 = arith.constant dense<0.000000e+00> : vector<8x128xf32>
    %126 = tpu.matmul %124, %125, %cst_32 {dimension_numbers = #tpu.dot_dimension_numbers<[1], [0], [0], [1], [0, 0, 1, 1], [], []>} : vector<8x64xbf16>, vector<64x128xbf16>, vector<8x128xf32> -> vector<8x128xf32>
    %c0_33 = arith.constant 0 : index
    %c0_34 = arith.constant 0 : index
    %127 = vector.load %arg7[%c0_33, %c0_34] : memref<1x128xf32, #tpu.memory_space<vmem>>, vector<1x128xf32>
    %128 = vector.broadcast %127 : vector<1x128xf32> to vector<8x128xf32>
    %129 = arith.addf %126, %128 : vector<8x128xf32>
    %cst_35 = arith.constant 0.000000e+00 : f32
    %130 = vector.broadcast %cst_35 : f32 to vector<8x128xf32>
    %131 = arith.subf %130, %129 : vector<8x128xf32>
    %132 = math.exp %131 : vector<8x128xf32>
    %cst_36 = arith.constant 1.000000e+00 : f32
    %133 = vector.broadcast %cst_36 : f32 to vector<8x128xf32>
    %134 = arith.addf %133, %132 : vector<8x128xf32>
    %135 = tpu.reciprocal %134 {approx = true} : vector<8x128xf32> -> vector<8x128xf32>
    %136 = arith.truncf %135 : vector<8x128xf32> to vector<8x128xbf16>
    %c0_37 = arith.constant 0 : index
    %c0_38 = arith.constant 0 : index
    %137 = vector.load %arg8[%c0_37, %c0_38] : memref<128x64xbf16, #tpu.memory_space<vmem>>, vector<128x64xbf16>
    %cst_39 = arith.constant dense<0.000000e+00> : vector<8x64xf32>
    %138 = tpu.matmul %136, %137, %cst_39 {dimension_numbers = #tpu.dot_dimension_numbers<[1], [0], [0], [1], [0, 0, 1, 1], [], []>} : vector<8x128xbf16>, vector<128x64xbf16>, vector<8x64xf32> -> vector<8x64xf32>
    %c0_40 = arith.constant 0 : index
    %c0_41 = arith.constant 0 : index
    %139 = vector.load %arg9[%c0_40, %c0_41] : memref<1x64xf32, #tpu.memory_space<vmem>>, vector<1x64xf32>
    %140 = vector.broadcast %139 : vector<1x64xf32> to vector<8x64xf32>
    %141 = arith.addf %138, %140 : vector<8x64xf32>
    %cst_42 = arith.constant 0.000000e+00 : f32
    %142 = vector.broadcast %cst_42 : f32 to vector<8x64xf32>
    %143 = arith.subf %142, %141 : vector<8x64xf32>
    %144 = math.exp %143 : vector<8x64xf32>
    %cst_43 = arith.constant 1.000000e+00 : f32
    %145 = vector.broadcast %cst_43 : f32 to vector<8x64xf32>
    %146 = arith.addf %145, %144 : vector<8x64xf32>
    %147 = tpu.reciprocal %146 {approx = true} : vector<8x64xf32> -> vector<8x64xf32>
    %148 = arith.truncf %147 : vector<8x64xf32> to vector<8x64xbf16>
    %c0_44 = arith.constant 0 : index
    %c0_45 = arith.constant 0 : index
    %149 = vector.load %arg10[%c0_44, %c0_45] : memref<64x16xbf16, #tpu.memory_space<vmem>>, vector<64x16xbf16>
    %cst_46 = arith.constant dense<0.000000e+00> : vector<8x16xf32>
    %150 = tpu.matmul %148, %149, %cst_46 {dimension_numbers = #tpu.dot_dimension_numbers<[1], [0], [0], [1], [0, 0, 1, 1], [], []>} : vector<8x64xbf16>, vector<64x16xbf16>, vector<8x16xf32> -> vector<8x16xf32>
    %c0_47 = arith.constant 0 : index
    %c0_48 = arith.constant 0 : index
    %151 = vector.load %arg11[%c0_47, %c0_48] : memref<1x16xf32, #tpu.memory_space<vmem>>, vector<1x16xf32>
    %152 = vector.broadcast %151 : vector<1x16xf32> to vector<8x16xf32>
    %153 = arith.addf %150, %152 : vector<8x16xf32>
    %cst_49 = arith.constant 0.000000e+00 : f32
    %154 = vector.broadcast %cst_49 : f32 to vector<8x16xf32>
    %155 = arith.subf %154, %153 : vector<8x16xf32>
    %156 = math.exp %155 : vector<8x16xf32>
    %cst_50 = arith.constant 1.000000e+00 : f32
    %157 = vector.broadcast %cst_50 : f32 to vector<8x16xf32>
    %158 = arith.addf %157, %156 : vector<8x16xf32>
    %159 = tpu.reciprocal %158 {approx = true} : vector<8x16xf32> -> vector<8x16xf32>
    %160 = arith.truncf %159 : vector<8x16xf32> to vector<8x16xbf16>
    %c0_51 = arith.constant 0 : index
    %c0_52 = arith.constant 0 : index
    %161 = vector.load %arg12[%c0_51, %c0_52] : memref<16x1xbf16, #tpu.memory_space<vmem>>, vector<16x1xbf16>
    %cst_53 = arith.constant dense<0.000000e+00> : vector<8x1xf32>
    %162 = tpu.matmul %160, %161, %cst_53 {dimension_numbers = #tpu.dot_dimension_numbers<[1], [0], [0], [1], [0, 0, 1, 1], [], []>} : vector<8x16xbf16>, vector<16x1xbf16>, vector<8x1xf32> -> vector<8x1xf32>
    %c0_54 = arith.constant 0 : index
    %c0_55 = arith.constant 0 : index
    %163 = vector.load %arg13[%c0_54, %c0_55] : memref<1x1xf32, #tpu.memory_space<vmem>>, vector<1x1xf32>
    %164 = vector.broadcast %163 : vector<1x1xf32> to vector<8x1xf32>
    %165 = arith.addf %162, %164 : vector<8x1xf32>
    %cst_56 = arith.constant 0.000000e+00 : f32
    %166 = vector.broadcast %cst_56 : f32 to vector<8x1xf32>
    %167 = arith.subf %166, %165 : vector<8x1xf32>
    %168 = math.exp %167 : vector<8x1xf32>
    %cst_57 = arith.constant 1.000000e+00 : f32
    %169 = vector.broadcast %cst_57 : f32 to vector<8x1xf32>
    %170 = arith.addf %169, %168 : vector<8x1xf32>
    %171 = tpu.reciprocal %170 {approx = true} : vector<8x1xf32> -> vector<8x1xf32>
    %c0_58 = arith.constant 0 : index
    %c0_59 = arith.constant 0 : index
    %172 = vector.load %arg14[%c0_58, %c0_59] : memref<8x1xf32, #tpu.memory_space<vmem>>, vector<8x1xf32>
    tpu.vector_store %arg14[%c0_58, %c0_59], %171 {strides = array<i32>} : memref<8x1xf32, #tpu.memory_space<vmem>>, vector<8x1xf32>,
    return
  }
  func.func @transform_0(%arg0: i32) -> (i32, i32, i32, i32) {
    %c0_i32 = arith.constant 0 : i32
    %c0_i32_0 = arith.constant 0 : i32
    %c0_i32_1 = arith.constant 0 : i32
    %c0_i32_2 = arith.constant 0 : i32
    return %arg0, %c0_i32, %c0_i32_0, %c0_i32_1 : i32, i32, i32, i32
  }
  func.func @transform_1(%arg0: i32) -> (i32, i32) {
    %c0_i32 = arith.constant 0 : i32
    %c0_i32_0 = arith.constant 0 : i32
    %c0_i32_1 = arith.constant 0 : i32
    return %c0_i32, %c0_i32_0 : i32, i32
  }
  func.func @transform_2(%arg0: i32) -> (i32, i32) {
    %c0_i32 = arith.constant 0 : i32
    %c0_i32_0 = arith.constant 0 : i32
    %c0_i32_1 = arith.constant 0 : i32
    return %c0_i32, %c0_i32_0 : i32, i32
  }
  func.func @transform_3(%arg0: i32) -> (i32, i32, i32) {
    %c0_i32 = arith.constant 0 : i32
    %c0_i32_0 = arith.constant 0 : i32
    %c0_i32_1 = arith.constant 0 : i32
    %c0_i32_2 = arith.constant 0 : i32
    return %c0_i32, %c0_i32_0, %c0_i32_1 : i32, i32, i32
  }
  func.func @transform_4(%arg0: i32) -> (i32, i32) {
    %c0_i32 = arith.constant 0 : i32
    %c0_i32_0 = arith.constant 0 : i32
    %c0_i32_1 = arith.constant 0 : i32
    return %c0_i32, %c0_i32_0 : i32, i32
  }
  func.func @transform_5(%arg0: i32) -> (i32, i32) {
    %c0_i32 = arith.constant 0 : i32
    %c0_i32_0 = arith.constant 0 : i32
    %c0_i32_1 = arith.constant 0 : i32
    return %c0_i32, %c0_i32_0 : i32, i32
  }
  func.func @transform_6(%arg0: i32) -> (i32, i32) {
    %c0_i32 = arith.constant 0 : i32
    %c0_i32_0 = arith.constant 0 : i32
    %c0_i32_1 = arith.constant 0 : i32
    return %c0_i32, %c0_i32_0 : i32, i32
  }
  func.func @transform_7(%arg0: i32) -> (i32, i32) {
    %c0_i32 = arith.constant 0 : i32
    %c0_i32_0 = arith.constant 0 : i32
    %c0_i32_1 = arith.constant 0 : i32
    return %c0_i32, %c0_i32_0 : i32, i32
  }
  func.func @transform_8(%arg0: i32) -> (i32, i32) {
    %c0_i32 = arith.constant 0 : i32
    %c0_i32_0 = arith.constant 0 : i32
    %c0_i32_1 = arith.constant 0 : i32
    return %c0_i32, %c0_i32_0 : i32, i32
  }
  func.func @transform_9(%arg0: i32) -> (i32, i32) {
    %c0_i32 = arith.constant 0 : i32
    %c0_i32_0 = arith.constant 0 : i32
    %c0_i32_1 = arith.constant 0 : i32
    return %c0_i32, %c0_i32_0 : i32, i32
  }
  func.func @transform_10(%arg0: i32) -> (i32, i32) {
    %c0_i32 = arith.constant 0 : i32
    %c0_i32_0 = arith.constant 0 : i32
    %c0_i32_1 = arith.constant 0 : i32
    return %c0_i32, %c0_i32_0 : i32, i32
  }
  func.func @transform_11(%arg0: i32) -> (i32, i32) {
    %c0_i32 = arith.constant 0 : i32
    %c0_i32_0 = arith.constant 0 : i32
    %c0_i32_1 = arith.constant 0 : i32
    return %c0_i32, %c0_i32_0 : i32, i32
  }
  func.func @transform_12(%arg0: i32) -> (i32, i32) {
    %c0_i32 = arith.constant 0 : i32
    %c0_i32_0 = arith.constant 0 : i32
    %c0_i32_1 = arith.constant 0 : i32
    return %c0_i32, %c0_i32_0 : i32, i32
  }
  func.func @transform_13(%arg0: i32) -> (i32, i32) {
    %c0_i32 = arith.constant 0 : i32
    %c0_i32_0 = arith.constant 0 : i32
    return %arg0, %c0_i32 : i32, i32
  }
}

</mosaic_0001>

<bundles_post_ra>
// kernel: ei_net_forward.3
= control target key start
LH: loop header
LB: loop body
LE: loop exit
PB: predicated region body
PF: predicated region fallthrough
CT: control target
= control target key end

     0   :  { %s5313_s12 = smov 0   ;;  %s5315_s13 = smov 0   ;;  %s6471_s0 = inlined_call_operand.vmem [shape: bf16[4,1024,36], index: 0, kind: input, shape index: {}]   ;;  %s6472_s1 = inlined_call_operand.vmem [shape: bf16[36,8], index: 1, kind: input, shape index: {}]   ;;  %s6473_s2 = inlined_call_operand.vmem [shape: f32[1,8], index: 2, kind: input, shape index: {}]   ;;  %s6474_s3 = inlined_call_operand.vmem [shape: bf16[1024,8], index: 3, kind: output, shape index: {}]  }
   0x1   :  { %s5317_s14 = smov 0  }
   0x2 LB: > { %s4310_s15 = sadd.s32 4294967295, %s5291_s14   ;;  %s5330_s16 = sadd.s32 1, %s5291_s14   ;;  %s5291_s14 = sphi %s5317_s14, %s6637_s14   ;;  %s5287_s13 = sphi %s5315_s13, %s6636_s13   ;;  %s5283_s12 = sphi %s5313_s12, %s6635_s12  }
   0x3   : > { %s17_s17 = ssub.s32 %s5291_s14, %s5330_s16  ;;  %s20_s18 = sadd.s32 1, %s5287_s13 }
   0x4   : > { %p18_p0 = scmp.eq.s32.totalorder %s17_s17, 0  ;;  %p27_p1 = scmp.ne.s32.totalorder %s5287_s13, %s5283_s12 }
   0x5   : > { %p28_p2 = scmp.eq.s32.totalorder %s5291_s14, 0  ;;  %p4313_p4 = scmp.ge.s32.totalorder %s5291_s14, 2 }
   0x6   : > { %s5339_s19 = scalar_select %p18_p0, %s5287_s13, %s20_s18  }
   0x7   : > { %p29_p3 = por %p28_p2, %p27_p1  ;;  %127 = sbr.rel (%p4313_p4) target bundleno = 80 (0x50), region = 24 }
   0xc   : > { %130 = sbr.rel (!%p29_p3) target bundleno = 80 (0x50), region = 28  ;;  %s132_s20 = sand.u32 (%p29_p3), 1, %s5287_s13  }
   0xd   : > { %s4647_s21 = sshll.u32 (%p29_p3), %s5291_s14, 8  ;;  %s4314_s22 = sshll.u32 (%p29_p3), %s132_s20, 10 }
   0xe   : > { %s5347_s25 = scalar_lea.vmem (%p29_p3), %s6471_s0, %s4647_s21  ;;  %s5352_s26 = scalar_lea.vmem (%p29_p3), [#allocation2], %s4314_s22 }
   0xf   : > { %v154_v0 = vld [vmem:[%s5347_s25] sm:$0xff] (%p29_p3)   ;;  %v158_v1 = vld [vmem:[%s5347_s25 + $0x8] sm:$0xff] (%p29_p3)   ;;  %v162_v2 = vld [vmem:[%s5347_s25 + $0x10] sm:$0xff] (%p29_p3)  }
  0x10   : > { %155 = vst [vmem:[%s5352_s26] sm:$0xff] (%p29_p3), %v154_v0   ;;  %159 = vst [vmem:[%s5352_s26 + $0x8] sm:$0xff] (%p29_p3), %v158_v1   ;;  %v166_v3 = vld [vmem:[%s5347_s25 + $0x18] sm:$0xff] (%p29_p3)   ;;  %v170_v4 = vld [vmem:[%s5347_s25 + $0x20] sm:$0xff] (%p29_p3)  }
  0x11   : > { %163 = vst [vmem:[%s5352_s26 + $0x10] sm:$0xff] %v162_v2   ;;  %v174_v5 = vld [vmem:[%s5347_s25 + $0x28] sm:$0xff]   ;;  %167 = vst [vmem:[%s5352_s26 + $0x18] sm:$0xff] %v166_v3   ;;  %v178_v6 = vld [vmem:[%s5347_s25 + $0x30] sm:$0xff]  }
  0x12   : > { %171 = vst [vmem:[%s5352_s26 + $0x20] sm:$0xff] %v170_v4   ;;  %175 = vst [vmem:[%s5352_s26 + $0x28] sm:$0xff] %v174_v5   ;;  %v182_v7 = vld [vmem:[%s5347_s25 + $0x38] sm:$0xff]   ;;  %v186_v8 = vld [vmem:[%s5347_s25 + $0x40] sm:$0xff]  }
  0x13   : > { %179 = vst [vmem:[%s5352_s26 + $0x30] sm:$0xff] %v178_v6   ;;  %183 = vst [vmem:[%s5352_s26 + $0x38] sm:$0xff] %v182_v7   ;;  %v190_v9 = vld [vmem:[%s5347_s25 + $0x48] sm:$0xff]   ;;  %v194_v10 = vld [vmem:[%s5347_s25 + $0x50] sm:$0xff]  }
  0x14   : > { %187 = vst [vmem:[%s5352_s26 + $0x40] sm:$0xff] %v186_v8   ;;  %v198_v11 = vld [vmem:[%s5347_s25 + $0x58] sm:$0xff]   ;;  %191 = vst [vmem:[%s5352_s26 + $0x48] sm:$0xff] %v190_v9   ;;  %v202_v12 = vld [vmem:[%s5347_s25 + $0x60] sm:$0xff]  }
  0x15   : > { %195 = vst [vmem:[%s5352_s26 + $0x50] sm:$0xff] %v194_v10   ;;  %199 = vst [vmem:[%s5352_s26 + $0x58] sm:$0xff] %v198_v11   ;;  %v206_v13 = vld [vmem:[%s5347_s25 + $0x68] sm:$0xff]   ;;  %v210_v14 = vld [vmem:[%s5347_s25 + $0x70] sm:$0xff]  }
  0x16   : > { %203 = vst [vmem:[%s5352_s26 + $0x60] sm:$0xff] %v202_v12   ;;  %207 = vst [vmem:[%s5352_s26 + $0x68] sm:$0xff] %v206_v13   ;;  %v214_v15 = vld [vmem:[%s5347_s25 + $0x78] sm:$0xff]   ;;  %v218_v16 = vld [vmem:[%s5347_s25 + $0x80] sm:$0xff]  }
  0x17   : > { %211 = vst [vmem:[%s5352_s26 + $0x70] sm:$0xff] %v210_v14   ;;  %v222_v17 = vld [vmem:[%s5347_s25 + $0x88] sm:$0xff]   ;;  %215 = vst [vmem:[%s5352_s26 + $0x78] sm:$0xff] %v214_v15   ;;  %v226_v18 = vld [vmem:[%s5347_s25 + $0x90] sm:$0xff]  }
  0x18   : > { %219 = vst [vmem:[%s5352_s26 + $0x80] sm:$0xff] %v218_v16   ;;  %223 = vst [vmem:[%s5352_s26 + $0x88] sm:$0xff] %v222_v17   ;;  %v230_v19 = vld [vmem:[%s5347_s25 + $0x98] sm:$0xff]   ;;  %v234_v20 = vld [vmem:[%s5347_s25 + $0xa0] sm:$0xff]  }
  0x19   : > { %227 = vst [vmem:[%s5352_s26 + $0x90] sm:$0xff] %v226_v18   ;;  %231 = vst [vmem:[%s5352_s26 + $0x98] sm:$0xff] %v230_v19   ;;  %v238_v21 = vld [vmem:[%s5347_s25 + $0xa8] sm:$0xff]   ;;  %v242_v22 = vld [vmem:[%s5347_s25 + $0xb0] sm:$0xff]  }
  0x1a   : > { %235 = vst [vmem:[%s5352_s26 + $0xa0] sm:$0xff] %v234_v20   ;;  %v246_v23 = vld [vmem:[%s5347_s25 + $0xb8] sm:$0xff]   ;;  %239 = vst [vmem:[%s5352_s26 + $0xa8] sm:$0xff] %v238_v21   ;;  %v250_v24 = vld [vmem:[%s5347_s25 + $0xc0] sm:$0xff]  }
  0x1b   : > { %243 = vst [vmem:[%s5352_s26 + $0xb0] sm:$0xff] %v242_v22   ;;  %247 = vst [vmem:[%s5352_s26 + $0xb8] sm:$0xff] %v246_v23   ;;  %v254_v25 = vld [vmem:[%s5347_s25 + $0xc8] sm:$0xff]   ;;  %v258_v26 = vld [vmem:[%s5347_s25 + $0xd0] sm:$0xff]  }
  0x1c   : > { %251 = vst [vmem:[%s5352_s26 + $0xc0] sm:$0xff] %v250_v24   ;;  %255 = vst [vmem:[%s5352_s26 + $0xc8] sm:$0xff] %v254_v25   ;;  %v262_v27 = vld [vmem:[%s5347_s25 + $0xd8] sm:$0xff]   ;;  %v266_v28 = vld [vmem:[%s5347_s25 + $0xe0] sm:$0xff]  }
  0x1d   : > { %259 = vst [vmem:[%s5352_s26 + $0xd0] sm:$0xff] %v258_v26   ;;  %v270_v29 = vld [vmem:[%s5347_s25 + $0xe8] sm:$0xff]   ;;  %263 = vst [vmem:[%s5352_s26 + $0xd8] sm:$0xff] %v262_v27   ;;  %v274_v30 = vld [vmem:[%s5347_s25 + $0xf0] sm:$0xff]  }
  0x1e   : > { %267 = vst [vmem:[%s5352_s26 + $0xe0] sm:$0xff] %v266_v28   ;;  %271 = vst [vmem:[%s5352_s26 + $0xe8] sm:$0xff] %v270_v29   ;;  %v278_v31 = vld [vmem:[%s5347_s25 + $0xf8] sm:$0xff]   ;;  %v282_v32 = vld [vmem:[%s5347_s25 + $0x200] sm:$0xff]  }
  0x1f   : > { %275 = vst [vmem:[%s5352_s26 + $0xf0] sm:$0xff] %v274_v30   ;;  %279 = vst [vmem:[%s5352_s26 + $0xf8] sm:$0xff] %v278_v31   ;;  %v286_v33 = vld [vmem:[%s5347_s25 + $0x208] sm:$0xff]   ;;  %v290_v34 = vld [vmem:[%s5347_s25 + $0x210] sm:$0xff]  }
  0x20   : > { %283 = vst [vmem:[%s5352_s26 + $0x100] sm:$0xff] %v282_v32   ;;  %v294_v35 = vld [vmem:[%s5347_s25 + $0x218] sm:$0xff]   ;;  %287 = vst [vmem:[%s5352_s26 + $0x108] sm:$0xff] %v286_v33   ;;  %v298_v36 = vld [vmem:[%s5347_s25 + $0x220] sm:$0xff]  }
  0x21   : > { %291 = vst [vmem:[%s5352_s26 + $0x110] sm:$0xff] %v290_v34   ;;  %295 = vst [vmem:[%s5352_s26 + $0x118] sm:$0xff] %v294_v35   ;;  %v302_v37 = vld [vmem:[%s5347_s25 + $0x228] sm:$0xff]   ;;  %v306_v38 = vld [vmem:[%s5347_s25 + $0x230] sm:$0xff]  }
  0x22   : > { %299 = vst [vmem:[%s5352_s26 + $0x120] sm:$0xff] %v298_v36   ;;  %303 = vst [vmem:[%s5352_s26 + $0x128] sm:$0xff] %v302_v37   ;;  %v310_v39 = vld [vmem:[%s5347_s25 + $0x238] sm:$0xff]   ;;  %v314_v40 = vld [vmem:[%s5347_s25 + $0x240] sm:$0xff]  }
  0x23   : > { %307 = vst [vmem:[%s5352_s26 + $0x130] sm:$0xff] %v306_v38   ;;  %v318_v41 = vld [vmem:[%s5347_s25 + $0x248] sm:$0xff]   ;;  %311 = vst [vmem:[%s5352_s26 + $0x138] sm:$0xff] %v310_v39   ;;  %v322_v42 = vld [vmem:[%s5347_s25 + $0x250] sm:$0xff]  }
  0x24   : > { %315 = vst [vmem:[%s5352_s26 + $0x140] sm:$0xff] %v314_v40   ;;  %319 = vst [vmem:[%s5352_s26 + $0x148] sm:$0xff] %v318_v41   ;;  %v326_v43 = vld [vmem:[%s5347_s25 + $0x258] sm:$0xff]   ;;  %v330_v44 = vld [vmem:[%s5347_s25 + $0x260] sm:$0xff]  }
  0x25   : > { %323 = vst [vmem:[%s5352_s26 + $0x150] sm:$0xff] %v322_v42   ;;  %327 = vst [vmem:[%s5352_s26 + $0x158] sm:$0xff] %v326_v43   ;;  %v334_v45 = vld [vmem:[%s5347_s25 + $0x268] sm:$0xff]   ;;  %v338_v46 = vld [vmem:[%s5347_s25 + $0x270] sm:$0xff]  }
  0x26   : > { %331 = vst [vmem:[%s5352_s26 + $0x160] sm:$0xff] %v330_v44   ;;  %v342_v47 = vld [vmem:[%s5347_s25 + $0x278] sm:$0xff]   ;;  %335 = vst [vmem:[%s5352_s26 + $0x168] sm:$0xff] %v334_v45   ;;  %v346_v48 = vld [vmem:[%s5347_s25 + $0x280] sm:$0xff]  }
  0x27   : > { %339 = vst [vmem:[%s5352_s26 + $0x170] sm:$0xff] %v338_v46   ;;  %343 = vst [vmem:[%s5352_s26 + $0x178] sm:$0xff] %v342_v47   ;;  %v350_v49 = vld [vmem:[%s5347_s25 + $0x288] sm:$0xff]   ;;  %v354_v50 = vld [vmem:[%s5347_s25 + $0x290] sm:$0xff]  }
  0x28   : > { %347 = vst [vmem:[%s5352_s26 + $0x180] sm:$0xff] %v346_v48   ;;  %351 = vst [vmem:[%s5352_s26 + $0x188] sm:$0xff] %v350_v49   ;;  %v358_v51 = vld [vmem:[%s5347_s25 + $0x298] sm:$0xff]   ;;  %v362_v52 = vld [vmem:[%s5347_s25 + $0x2a0] sm:$0xff]  }
  0x29   : > { %355 = vst [vmem:[%s5352_s26 + $0x190] sm:$0xff] %v354_v50   ;;  %v366_v53 = vld [vmem:[%s5347_s25 + $0x2a8] sm:$0xff]   ;;  %359 = vst [vmem:[%s5352_s26 + $0x198] sm:$0xff] %v358_v51   ;;  %v370_v54 = vld [vmem:[%s5347_s25 + $0x2b0] sm:$0xff]  }
  0x2a   : > { %363 = vst [vmem:[%s5352_s26 + $0x1a0] sm:$0xff] %v362_v52   ;;  %367 = vst [vmem:[%s5352_s26 + $0x1a8] sm:$0xff] %v366_v53   ;;  %v374_v55 = vld [vmem:[%s5347_s25 + $0x2b8] sm:$0xff]   ;;  %v378_v56 = vld [vmem:[%s5347_s25 + $0x2c0] sm:$0xff]  }
  0x2b   : > { %371 = vst [vmem:[%s5352_s26 + $0x1b0] sm:$0xff] %v370_v54   ;;  %375 = vst [vmem:[%s5352_s26 + $0x1b8] sm:$0xff] %v374_v55   ;;  %v382_v57 = vld [vmem:[%s5347_s25 + $0x2c8] sm:$0xff]   ;;  %v386_v58 = vld [vmem:[%s5347_s25 + $0x2d0] sm:$0xff]  }
  0x2c   : > { %379 = vst [vmem:[%s5352_s26 + $0x1c0] sm:$0xff] %v378_v56   ;;  %v390_v59 = vld [vmem:[%s5347_s25 + $0x2d8] sm:$0xff]   ;;  %383 = vst [vmem:[%s5352_s26 + $0x1c8] sm:$0xff] %v382_v57   ;;  %v394_v60 = vld [vmem:[%s5347_s25 + $0x2e0] sm:$0xff]  }
  0x2d   : > { %387 = vst [vmem:[%s5352_s26 + $0x1d0] sm:$0xff] %v386_v58   ;;  %391 = vst [vmem:[%s5352_s26 + $0x1d8] sm:$0xff] %v390_v59   ;;  %v398_v61 = vld [vmem:[%s5347_s25 + $0x2e8] sm:$0xff]   ;;  %v402_v62 = vld [vmem:[%s5347_s25 + $0x2f0] sm:$0xff]  }
  0x2e   : > { %395 = vst [vmem:[%s5352_s26 + $0x1e0] sm:$0xff] %v394_v60   ;;  %399 = vst [vmem:[%s5352_s26 + $0x1e8] sm:$0xff] %v398_v61   ;;  %v406_v63 = vld [vmem:[%s5347_s25 + $0x2f8] sm:$0xff]   ;;  %v410_v0 = vld [vmem:[%s5347_s25 + $0x400] sm:$0xff]  }
  0x2f   : > { %403 = vst [vmem:[%s5352_s26 + $0x1f0] sm:$0xff] %v402_v62   ;;  %v414_v1 = vld [vmem:[%s5347_s25 + $0x408] sm:$0xff]   ;;  %407 = vst [vmem:[%s5352_s26 + $0x1f8] sm:$0xff] %v406_v63   ;;  %v418_v2 = vld [vmem:[%s5347_s25 + $0x410] sm:$0xff]  }
  0x30   : > { %411 = vst [vmem:[%s5352_s26 + $0x200] sm:$0xff] %v410_v0   ;;  %415 = vst [vmem:[%s5352_s26 + $0x208] sm:$0xff] %v414_v1   ;;  %v422_v3 = vld [vmem:[%s5347_s25 + $0x418] sm:$0xff]   ;;  %v426_v4 = vld [vmem:[%s5347_s25 + $0x420] sm:$0xff]  }
  0x31   : > { %419 = vst [vmem:[%s5352_s26 + $0x210] sm:$0xff] %v418_v2   ;;  %423 = vst [vmem:[%s5352_s26 + $0x218] sm:$0xff] %v422_v3   ;;  %v430_v5 = vld [vmem:[%s5347_s25 + $0x428] sm:$0xff]   ;;  %v434_v6 = vld [vmem:[%s5347_s25 + $0x430] sm:$0xff]  }
  0x32   : > { %427 = vst [vmem:[%s5352_s26 + $0x220] sm:$0xff] %v426_v4   ;;  %v438_v7 = vld [vmem:[%s5347_s25 + $0x438] sm:$0xff]   ;;  %431 = vst [vmem:[%s5352_s26 + $0x228] sm:$0xff] %v430_v5   ;;  %v442_v8 = vld [vmem:[%s5347_s25 + $0x440] sm:$0xff]  }
  0x33   : > { %435 = vst [vmem:[%s5352_s26 + $0x230] sm:$0xff] %v434_v6   ;;  %439 = vst [vmem:[%s5352_s26 + $0x238] sm:$0xff] %v438_v7   ;;  %v446_v9 = vld [vmem:[%s5347_s25 + $0x448] sm:$0xff]   ;;  %v450_v10 = vld [vmem:[%s5347_s25 + $0x450] sm:$0xff]  }
  0x34   : > { %443 = vst [vmem:[%s5352_s26 + $0x240] sm:$0xff] %v442_v8   ;;  %447 = vst [vmem:[%s5352_s26 + $0x248] sm:$0xff] %v446_v9   ;;  %v454_v11 = vld [vmem:[%s5347_s25 + $0x458] sm:$0xff]   ;;  %v458_v12 = vld [vmem:[%s5347_s25 + $0x460] sm:$0xff]  }
  0x35   : > { %451 = vst [vmem:[%s5352_s26 + $0x250] sm:$0xff] %v450_v10   ;;  %v462_v13 = vld [vmem:[%s5347_s25 + $0x468] sm:$0xff]   ;;  %455 = vst [vmem:[%s5352_s26 + $0x258] sm:$0xff] %v454_v11   ;;  %v466_v14 = vld [vmem:[%s5347_s25 + $0x470] sm:$0xff]  }
  0x36   : > { %459 = vst [vmem:[%s5352_s26 + $0x260] sm:$0xff] %v458_v12   ;;  %463 = vst [vmem:[%s5352_s26 + $0x268] sm:$0xff] %v462_v13   ;;  %v470_v15 = vld [vmem:[%s5347_s25 + $0x478] sm:$0xff]   ;;  %v474_v16 = vld [vmem:[%s5347_s25 + $0x480] sm:$0xff]  }
  0x37   : > { %467 = vst [vmem:[%s5352_s26 + $0x270] sm:$0xff] %v466_v14   ;;  %471 = vst [vmem:[%s5352_s26 + $0x278] sm:$0xff] %v470_v15   ;;  %v478_v17 = vld [vmem:[%s5347_s25 + $0x488] sm:$0xff]   ;;  %v482_v18 = vld [vmem:[%s5347_s25 + $0x490] sm:$0xff]  }
  0x38   : > { %475 = vst [vmem:[%s5352_s26 + $0x280] sm:$0xff] %v474_v16   ;;  %v486_v19 = vld [vmem:[%s5347_s25 + $0x498] sm:$0xff]   ;;  %479 = vst [vmem:[%s5352_s26 + $0x288] sm:$0xff] %v478_v17   ;;  %v490_v20 = vld [vmem:[%s5347_s25 + $0x4a0] sm:$0xff]  }
  0x39   : > { %483 = vst [vmem:[%s5352_s26 + $0x290] sm:$0xff] %v482_v18   ;;  %487 = vst [vmem:[%s5352_s26 + $0x298] sm:$0xff] %v486_v19   ;;  %v494_v21 = vld [vmem:[%s5347_s25 + $0x4a8] sm:$0xff]   ;;  %v498_v22 = vld [vmem:[%s5347_s25 + $0x4b0] sm:$0xff]  }
  0x3a   : > { %491 = vst [vmem:[%s5352_s26 + $0x2a0] sm:$0xff] %v490_v20   ;;  %495 = vst [vmem:[%s5352_s26 + $0x2a8] sm:$0xff] %v494_v21   ;;  %v502_v23 = vld [vmem:[%s5347_s25 + $0x4b8] sm:$0xff]   ;;  %v506_v24 = vld [vmem:[%s5347_s25 + $0x4c0] sm:$0xff]  }
  0x3b   : > { %499 = vst [vmem:[%s5352_s26 + $0x2b0] sm:$0xff] %v498_v22   ;;  %v510_v25 = vld [vmem:[%s5347_s25 + $0x4c8] sm:$0xff]   ;;  %503 = vst [vmem:[%s5352_s26 + $0x2b8] sm:$0xff] %v502_v23   ;;  %v514_v26 = vld [vmem:[%s5347_s25 + $0x4d0] sm:$0xff]  }
  0x3c   : > { %507 = vst [vmem:[%s5352_s26 + $0x2c0] sm:$0xff] %v506_v24   ;;  %511 = vst [vmem:[%s5352_s26 + $0x2c8] sm:$0xff] %v510_v25   ;;  %v518_v27 = vld [vmem:[%s5347_s25 + $0x4d8] sm:$0xff]   ;;  %v522_v28 = vld [vmem:[%s5347_s25 + $0x4e0] sm:$0xff]  }
  0x3d   : > { %515 = vst [vmem:[%s5352_s26 + $0x2d0] sm:$0xff] %v514_v26   ;;  %519 = vst [vmem:[%s5352_s26 + $0x2d8] sm:$0xff] %v518_v27   ;;  %v526_v29 = vld [vmem:[%s5347_s25 + $0x4e8] sm:$0xff]   ;;  %v530_v30 = vld [vmem:[%s5347_s25 + $0x4f0] sm:$0xff]  }
  0x3e   : > { %523 = vst [vmem:[%s5352_s26 + $0x2e0] sm:$0xff] %v522_v28   ;;  %v534_v31 = vld [vmem:[%s5347_s25 + $0x4f8] sm:$0xff]   ;;  %527 = vst [vmem:[%s5352_s26 + $0x2e8] sm:$0xff] %v526_v29   ;;  %v538_v32 = vld [vmem:[%s5347_s25 + $0x600] sm:$0xff]  }
  0x3f   : > { %531 = vst [vmem:[%s5352_s26 + $0x2f0] sm:$0xff] %v530_v30   ;;  %535 = vst [vmem:[%s5352_s26 + $0x2f8] sm:$0xff] %v534_v31   ;;  %v542_v33 = vld [vmem:[%s5347_s25 + $0x608] sm:$0xff]   ;;  %v546_v34 = vld [vmem:[%s5347_s25 + $0x610] sm:$0xff]  }
  0x40   : > { %539 = vst [vmem:[%s5352_s26 + $0x300] sm:$0xff] %v538_v32   ;;  %543 = vst [vmem:[%s5352_s26 + $0x308] sm:$0xff] %v542_v33   ;;  %v550_v35 = vld [vmem:[%s5347_s25 + $0x618] sm:$0xff]   ;;  %v554_v36 = vld [vmem:[%s5347_s25 + $0x620] sm:$0xff]  }
  0x41   : > { %547 = vst [vmem:[%s5352_s26 + $0x310] sm:$0xff] %v546_v34   ;;  %v558_v37 = vld [vmem:[%s5347_s25 + $0x628] sm:$0xff]   ;;  %551 = vst [vmem:[%s5352_s26 + $0x318] sm:$0xff] %v550_v35   ;;  %v562_v38 = vld [vmem:[%s5347_s25 + $0x630] sm:$0xff]  }
  0x42   : > { %555 = vst [vmem:[%s5352_s26 + $0x320] sm:$0xff] %v554_v36   ;;  %559 = vst [vmem:[%s5352_s26 + $0x328] sm:$0xff] %v558_v37   ;;  %v566_v39 = vld [vmem:[%s5347_s25 + $0x638] sm:$0xff]   ;;  %v570_v40 = vld [vmem:[%s5347_s25 + $0x640] sm:$0xff]  }
  0x43   : > { %563 = vst [vmem:[%s5352_s26 + $0x330] sm:$0xff] %v562_v38   ;;  %567 = vst [vmem:[%s5352_s26 + $0x338] sm:$0xff] %v566_v39   ;;  %v574_v41 = vld [vmem:[%s5347_s25 + $0x648] sm:$0xff]   ;;  %v578_v42 = vld [vmem:[%s5347_s25 + $0x650] sm:$0xff]  }
  0x44   : > { %571 = vst [vmem:[%s5352_s26 + $0x340] sm:$0xff] %v570_v40   ;;  %v582_v43 = vld [vmem:[%s5347_s25 + $0x658] sm:$0xff]   ;;  %575 = vst [vmem:[%s5352_s26 + $0x348] sm:$0xff] %v574_v41   ;;  %v586_v44 = vld [vmem:[%s5347_s25 + $0x660] sm:$0xff]  }
  0x45   : > { %579 = vst [vmem:[%s5352_s26 + $0x350] sm:$0xff] %v578_v42   ;;  %583 = vst [vmem:[%s5352_s26 + $0x358] sm:$0xff] %v582_v43   ;;  %v590_v45 = vld [vmem:[%s5347_s25 + $0x668] sm:$0xff]   ;;  %v594_v46 = vld [vmem:[%s5347_s25 + $0x670] sm:$0xff]  }
  0x46   : > { %587 = vst [vmem:[%s5352_s26 + $0x360] sm:$0xff] %v586_v44   ;;  %591 = vst [vmem:[%s5352_s26 + $0x368] sm:$0xff] %v590_v45   ;;  %v598_v47 = vld [vmem:[%s5347_s25 + $0x678] sm:$0xff]   ;;  %v602_v48 = vld [vmem:[%s5347_s25 + $0x680] sm:$0xff]  }
  0x47   : > { %595 = vst [vmem:[%s5352_s26 + $0x370] sm:$0xff] %v594_v46   ;;  %v606_v49 = vld [vmem:[%s5347_s25 + $0x688] sm:$0xff]   ;;  %599 = vst [vmem:[%s5352_s26 + $0x378] sm:$0xff] %v598_v47   ;;  %v610_v50 = vld [vmem:[%s5347_s25 + $0x690] sm:$0xff]  }
  0x48   : > { %603 = vst [vmem:[%s5352_s26 + $0x380] sm:$0xff] %v602_v48   ;;  %607 = vst [vmem:[%s5352_s26 + $0x388] sm:$0xff] %v606_v49   ;;  %v614_v51 = vld [vmem:[%s5347_s25 + $0x698] sm:$0xff]   ;;  %v618_v52 = vld [vmem:[%s5347_s25 + $0x6a0] sm:$0xff]  }
  0x49   : > { %611 = vst [vmem:[%s5352_s26 + $0x390] sm:$0xff] %v610_v50   ;;  %615 = vst [vmem:[%s5352_s26 + $0x398] sm:$0xff] %v614_v51   ;;  %v622_v53 = vld [vmem:[%s5347_s25 + $0x6a8] sm:$0xff]   ;;  %v626_v54 = vld [vmem:[%s5347_s25 + $0x6b0] sm:$0xff]  }
  0x4a   : > { %619 = vst [vmem:[%s5352_s26 + $0x3a0] sm:$0xff] %v618_v52   ;;  %v630_v55 = vld [vmem:[%s5347_s25 + $0x6b8] sm:$0xff]   ;;  %623 = vst [vmem:[%s5352_s26 + $0x3a8] sm:$0xff] %v622_v53   ;;  %v634_v56 = vld [vmem:[%s5347_s25 + $0x6c0] sm:$0xff]  }
  0x4b   : > { %627 = vst [vmem:[%s5352_s26 + $0x3b0] sm:$0xff] %v626_v54   ;;  %631 = vst [vmem:[%s5352_s26 + $0x3b8] sm:$0xff] %v630_v55   ;;  %v638_v57 = vld [vmem:[%s5347_s25 + $0x6c8] sm:$0xff]   ;;  %v642_v58 = vld [vmem:[%s5347_s25 + $0x6d0] sm:$0xff]  }
  0x4c   : > { %635 = vst [vmem:[%s5352_s26 + $0x3c0] sm:$0xff] %v634_v56   ;;  %639 = vst [vmem:[%s5352_s26 + $0x3c8] sm:$0xff] %v638_v57   ;;  %v646_v59 = vld [vmem:[%s5347_s25 + $0x6d8] sm:$0xff]   ;;  %v650_v60 = vld [vmem:[%s5347_s25 + $0x6e0] sm:$0xff]  }
  0x4d   : > { %643 = vst [vmem:[%s5352_s26 + $0x3d0] sm:$0xff] %v642_v58   ;;  %v654_v61 = vld [vmem:[%s5347_s25 + $0x6e8] sm:$0xff]   ;;  %647 = vst [vmem:[%s5352_s26 + $0x3d8] sm:$0xff] %v646_v59   ;;  %v658_v62 = vld [vmem:[%s5347_s25 + $0x6f0] sm:$0xff]  }
  0x4e   : > { %651 = vst [vmem:[%s5352_s26 + $0x3e0] sm:$0xff] %v650_v60   ;;  %655 = vst [vmem:[%s5352_s26 + $0x3e8] sm:$0xff] %v654_v61   ;;  %v662_v63 = vld [vmem:[%s5347_s25 + $0x6f8] sm:$0xff]  }
  0x4f   : > { %659 = vst [vmem:[%s5352_s26 + $0x3f0] sm:$0xff] %v658_v62   ;;  %663 = vst [vmem:[%s5352_s26 + $0x3f8] sm:$0xff] %v662_v63  }
  0x50 PF: > { %p4317_p5 = scmp.ge.s32.totalorder %s5291_s14, 1  ;;  %p1200_p6 = scmp.lt.s32.totalorder %s5291_s14, 3 }
  0x52   : > { %p1201_p7 = pnand %p4317_p5, %p1200_p6 }
  0x54   : > { %1204 = sbr.rel (%p1201_p7) target bundleno = 561 (0x231), region = 69 }
  0x59   : > { %v5137_v0 = vld [vmem:[%s6472_s1 + $0x10] ss:$0 sps:$4 sm:$0x33]   ;;  %vm2539_vm0 = vcmask 1041408   ;;  %v5138_v1 = vld [vmem:[%s6472_s1 + $0x8] sm:$0xff]   ;;  %s1207_s4 = sand.u32 1, %s5283_s12  }
  0x5a   : > { %5111 = vmatprep.subr.msk.bf16.mxu0 %vm2539_vm0, %v5137_v0  ;;  %5112 = vmatprep.subr.msk.bf16.mxu1 %vm2539_vm0, %v5137_v0  ;;  %v2541_v2 = vsel %vm2539_vm0, %v5137_v0, 0  ;;  %s4318_s5 = sshll.u32 %s1207_s4, 10  ;;  %v5139_v3 = vld [vmem:[%s6472_s1] sm:$0xff]   ;;  %vm2154_vm1 = vcmask 293888   ;;  %s4319_s9 = sshll.u32 %s4310_s15, 6  ;;  %vm4183_vm2 = vcmask 60416  }
  0x5b   : > { %4844 = vmatpush3.bf16.msra.mxu0 %v2541_v2  ;;  %5108 = vmatpush3.bf16.msra.mxu1 %v2541_v2  ;;  %s5619_s8 = scalar_lea.vmem [#allocation2], %s4318_s5  ;;  %p1232_p8 = scmp.lt.s32.totalorder %s4319_s9, 127 }
  0x5c   : > { %4845 = vmatprep.subr.bf16.mxu0 %v5138_v1  ;;  %5106 = vmatprep.subr.bf16.mxu1 %v5138_v1  ;;  %v5140_v4 = vld [vmem:[%s5619_s8] sm:$0xff]   ;;  %v5142_v6 = vld [vmem:[%s5619_s8 + $0x8] sm:$0xff]   ;;  %v5144_v8 = vld [vmem:[%s5619_s8 + $0x10] sm:$0xff]  }
  0x5d   : > { %v5141_v5 = vld [vmem:[%s5619_s8 + $0x200] sm:$0xff]   ;;  %4849 = vmatprep.mubr.msk.bf16.mxu0 %vm2154_vm1, %v5140_v4  ;;  %v5143_v7 = vld [vmem:[%s5619_s8 + $0x208] sm:$0xff]   ;;  %v5145_v9 = vld [vmem:[%s5619_s8 + $0x210] sm:$0xff]   ;;  %s6639_s9 = smov (!%p1232_p8, %s4319_s9), 127 }
  0x5e   : > { %4977 = vmatprep.mubr.msk.bf16.mxu1 %vm2154_vm1, %v5141_v5  ;;  %v5146_v10 = vld [vmem:[%s5619_s8 + $0x18] sm:$0xff]   ;;  %v5148_v12 = vld [vmem:[%s5619_s8 + $0x20] sm:$0xff]   ;;  %v5150_v14 = vld [vmem:[%s5619_s8 + $0x28] sm:$0xff]   ;;  %s4320_s12 = sshll.u32 %s6639_s9, 2 }
  0x5f   : > { %4846 = vmatpush3.bf16.msra.mxu0 %v5138_v1  ;;  %5109 = vmatpush3.bf16.msra.mxu1 %v5138_v1  ;;  %v5147_v11 = vld [vmem:[%s5619_s8 + $0x218] sm:$0xff]   ;;  %v5149_v13 = vld [vmem:[%s5619_s8 + $0x220] sm:$0xff]   ;;  %v5151_v15 = vld [vmem:[%s5619_s8 + $0x228] sm:$0xff]   ;;  %s6152_s17 = scalar_lea.vmem %s6474_s3, %s4320_s12 }
  0x60   : > { %4847 = vmatprep.subr.bf16.mxu0 %v5139_v3  ;;  %5107 = vmatprep.subr.bf16.mxu1 %v5139_v3  ;;  %v5152_v16 = vld [vmem:[%s5619_s8 + $0x30] sm:$0xff]   ;;  %v5154_v18 = vld [vmem:[%s5619_s8 + $0x38] sm:$0xff]   ;;  %v5156_v20 = vld [vmem:[%s5619_s8 + $0x40] sm:$0xff]  }
  0x61   : > { %v5153_v17 = vld [vmem:[%s5619_s8 + $0x230] sm:$0xff]   ;;  %v5155_v19 = vld [vmem:[%s5619_s8 + $0x238] sm:$0xff]   ;;  %v5157_v21 = vld [vmem:[%s5619_s8 + $0x240] sm:$0xff]  }
  0x62   : > { %v5158_v22 = vld [vmem:[%s5619_s8 + $0x48] sm:$0xff]   ;;  %v5160_v24 = vld [vmem:[%s5619_s8 + $0x50] sm:$0xff]   ;;  %v5162_v26 = vld [vmem:[%s5619_s8 + $0x58] sm:$0xff]  }
  0x63   : > { %4848 = vmatpush3.bf16.msra.mxu0 %v5139_v3  ;;  %5110 = vmatpush3.bf16.msra.mxu1 %v5139_v3  ;;  %v5159_v23 = vld [vmem:[%s5619_s8 + $0x248] sm:$0xff]   ;;  %v5161_v25 = vld [vmem:[%s5619_s8 + $0x250] sm:$0xff]   ;;  %v5163_v27 = vld [vmem:[%s5619_s8 + $0x258] sm:$0xff]  }
  0x64   : > { %v5164_v28 = vld [vmem:[%s5619_s8 + $0x60] sm:$0xff]   ;;  %v5166_v30 = vld [vmem:[%s5619_s8 + $0x68] sm:$0xff]   ;;  %v5168_v32 = vld [vmem:[%s5619_s8 + $0x70] sm:$0xff]  }
  0x65   : > { %v5165_v29 = vld [vmem:[%s5619_s8 + $0x260] sm:$0xff]   ;;  %v5167_v31 = vld [vmem:[%s5619_s8 + $0x268] sm:$0xff]   ;;  %v5169_v33 = vld [vmem:[%s5619_s8 + $0x270] sm:$0xff]  }
  0x66   : > { %4850 = vmatmul.mubr.msk.bf16.vlgmr.msra.gmra.mxu0 %vm2154_vm1, %v5142_v6  ;;  %4978 = vmatmul.mubr.msk.bf16.vlgmr.msra.gmra.mxu1 %vm2154_vm1, %v5143_v7  ;;  %v5170_v34 = vld [vmem:[%s5619_s8 + $0x78] sm:$0xff]   ;;  %v5172_v36 = vld [vmem:[%s5619_s8 + $0x80] sm:$0xff]   ;;  %v5174_v38 = vld [vmem:[%s5619_s8 + $0x88] sm:$0xff]  }
  0x67   : > { %4853 = vmatprep.mubr.msk.bf16.mxu0 %vm2154_vm1, %v5144_v8  ;;  %4981 = vmatprep.mubr.msk.bf16.mxu1 %vm2154_vm1, %v5145_v9  ;;  %v5171_v35 = vld [vmem:[%s5619_s8 + $0x278] sm:$0xff]   ;;  %v5173_v37 = vld [vmem:[%s5619_s8 + $0x280] sm:$0xff]   ;;  %v5175_v39 = vld [vmem:[%s5619_s8 + $0x288] sm:$0xff]  }
  0x68   : > { %v5176_v40 = vld [vmem:[%s5619_s8 + $0x90] sm:$0xff]   ;;  %v5178_v42 = vld [vmem:[%s5619_s8 + $0x98] sm:$0xff]   ;;  %v5180_v44 = vld [vmem:[%s5619_s8 + $0xa0] sm:$0xff]  }
  0x69   : > { %v5177_v41 = vld [vmem:[%s5619_s8 + $0x290] sm:$0xff]   ;;  %v5179_v43 = vld [vmem:[%s5619_s8 + $0x298] sm:$0xff]   ;;  %v5181_v45 = vld [vmem:[%s5619_s8 + $0x2a0] sm:$0xff]  }
  0x6a   : > { %v5182_v46 = vld [vmem:[%s5619_s8 + $0xa8] sm:$0xff]   ;;  %v5184_v48 = vld [vmem:[%s5619_s8 + $0xb0] sm:$0xff]   ;;  %v5186_v50 = vld [vmem:[%s5619_s8 + $0xb8] sm:$0xff]  }
  0x6b   : > { %v5183_v47 = vld [vmem:[%s5619_s8 + $0x2a8] sm:$0xff]   ;;  %v5185_v49 = vld [vmem:[%s5619_s8 + $0x2b0] sm:$0xff]   ;;  %v5187_v51 = vld [vmem:[%s5619_s8 + $0x2b8] sm:$0xff]  }
  0x6c   : > { %v5188_v52 = vld [vmem:[%s5619_s8 + $0xc0] sm:$0xff]   ;;  %v5190_v54 = vld [vmem:[%s5619_s8 + $0xc8] sm:$0xff]   ;;  %v5192_v56 = vld [vmem:[%s5619_s8 + $0xd0] sm:$0xff]  }
  0x6d   : > { %v5189_v53 = vld [vmem:[%s5619_s8 + $0x2c0] sm:$0xff]   ;;  %v5191_v55 = vld [vmem:[%s5619_s8 + $0x2c8] sm:$0xff]   ;;  %v5193_v57 = vld [vmem:[%s5619_s8 + $0x2d0] sm:$0xff]  }
  0x6e   : > { %4854 = vmatmul.mubr.msk.bf16.gmra.mxu0 %vm2154_vm1, %v5146_v10  ;;  %4982 = vmatmul.mubr.msk.bf16.gmra.mxu1 %vm2154_vm1, %v5147_v11  ;;  %v5194_v58 = vld [vmem:[%s5619_s8 + $0xd8] sm:$0xff]   ;;  %v5196_v60 = vld [vmem:[%s5619_s8 + $0xe0] sm:$0xff]   ;;  %v5198_v62 = vld [vmem:[%s5619_s8 + $0xe8] sm:$0xff]  }
  0x6f   : > { %4857 = vmatprep.mubr.msk.bf16.mxu0 %vm2154_vm1, %v5148_v12  ;;  %4985 = vmatprep.mubr.msk.bf16.mxu1 %vm2154_vm1, %v5149_v13  ;;  %v5195_v59 = vld [vmem:[%s5619_s8 + $0x2d8] sm:$0xff]   ;;  %v5197_v61 = vld [vmem:[%s5619_s8 + $0x2e0] sm:$0xff]   ;;  %v5199_v63 = vld [vmem:[%s5619_s8 + $0x2e8] sm:$0xff]  }
  0x70   : > { %v5200_v0 = vld [vmem:[%s5619_s8 + $0xf0] sm:$0xff]   ;;  %v5202_v2 = vld [vmem:[%s5619_s8 + $0xf8] sm:$0xff]   ;;  %v5204_v4 = vld [vmem:[%s5619_s8 + $0x100] sm:$0xff]  }
  0x71   : > { %v5201_v1 = vld [vmem:[%s5619_s8 + $0x2f0] sm:$0xff]   ;;  %v5203_v3 = vld [vmem:[%s5619_s8 + $0x2f8] sm:$0xff]   ;;  %v5205_v5 = vld [vmem:[%s5619_s8 + $0x300] sm:$0xff]  }
  0x72   : > { %v5206_v6 = vld [vmem:[%s5619_s8 + $0x108] sm:$0xff]   ;;  %v5208_v8 = vld [vmem:[%s5619_s8 + $0x110] sm:$0xff]   ;;  %v5210_v10 = vld [vmem:[%s5619_s8 + $0x118] sm:$0xff]  }
  0x73   : > { %v5207_v7 = vld [vmem:[%s5619_s8 + $0x308] sm:$0xff]   ;;  %v5209_v9 = vld [vmem:[%s5619_s8 + $0x310] sm:$0xff]   ;;  %v5211_v11 = vld [vmem:[%s5619_s8 + $0x318] sm:$0xff]  }
  0x74   : > { %v5212_v12 = vld [vmem:[%s5619_s8 + $0x120] sm:$0xff]  }
  0x75   : > { %v5213_v13 = vld [vmem:[%s5619_s8 + $0x320] sm:$0xff]  }
  0x76   : > { %4858 = vmatmul.mubr.msk.bf16.gmra.mxu0 %vm2154_vm1, %v5150_v14  ;;  %4986 = vmatmul.mubr.msk.bf16.gmra.mxu1 %vm2154_vm1, %v5151_v15  ;;  %v5214_v14 = vld [vmem:[%s5619_s8 + $0x128] sm:$0xff]  }
  0x77   : > { %4861 = vmatprep.mubr.msk.bf16.mxu0 %vm2154_vm1, %v5152_v16  ;;  %4989 = vmatprep.mubr.msk.bf16.mxu1 %vm2154_vm1, %v5153_v17  ;;  %v5215_v15 = vld [vmem:[%s5619_s8 + $0x328] sm:$0xff]   ;;  %v5216_v16 = vld [vmem:[%s5619_s8 + $0x130] sm:$0xff]  }
  0x78   : > { %v5217_v17 = vld [vmem:[%s5619_s8 + $0x330] sm:$0xff]  }
  0x7e   : > { %4862 = vmatmul.mubr.msk.bf16.gmra.mxu0 %vm2154_vm1, %v5154_v18  ;;  %4990 = vmatmul.mubr.msk.bf16.gmra.mxu1 %vm2154_vm1, %v5155_v19  ;;  %v5218_v18 = vld [vmem:[%s5619_s8 + $0x138] sm:$0xff]  }
  0x7f   : > { %4865 = vmatprep.mubr.msk.bf16.mxu0 %vm2154_vm1, %v5156_v20  ;;  %4993 = vmatprep.mubr.msk.bf16.mxu1 %vm2154_vm1, %v5157_v21  ;;  %v5219_v19 = vld [vmem:[%s5619_s8 + $0x338] sm:$0xff]   ;;  %v5220_v20 = vld [vmem:[%s5619_s8 + $0x140] sm:$0xff]  }
  0x80   : > { %v5221_v21 = vld [vmem:[%s5619_s8 + $0x340] sm:$0xff]  }
  0x86   : > { %4866 = vmatmul.mubr.msk.bf16.gmra.mxu0 %vm2154_vm1, %v5158_v22  ;;  %4994 = vmatmul.mubr.msk.bf16.gmra.mxu1 %vm2154_vm1, %v5159_v23  ;;  %v5222_v22 = vld [vmem:[%s5619_s8 + $0x148] sm:$0xff]  }
  0x87   : > { %4869 = vmatprep.mubr.msk.bf16.mxu0 %vm2154_vm1, %v5160_v24  ;;  %4997 = vmatprep.mubr.msk.bf16.mxu1 %vm2154_vm1, %v5161_v25  ;;  %v5223_v23 = vld [vmem:[%s5619_s8 + $0x348] sm:$0xff]   ;;  %v5224_v24 = vld [vmem:[%s5619_s8 + $0x150] sm:$0xff]  }
  0x88   : > { %v5225_v25 = vld [vmem:[%s5619_s8 + $0x350] sm:$0xff]  }
  0x8e   : > { %4870 = vmatmul.mubr.msk.bf16.gmra.mxu0 %vm2154_vm1, %v5162_v26  ;;  %4998 = vmatmul.mubr.msk.bf16.gmra.mxu1 %vm2154_vm1, %v5163_v27  ;;  %v5226_v26 = vld [vmem:[%s5619_s8 + $0x158] sm:$0xff]  }
  0x8f   : > { %4873 = vmatprep.mubr.msk.bf16.mxu0 %vm2154_vm1, %v5164_v28  ;;  %5001 = vmatprep.mubr.msk.bf16.mxu1 %vm2154_vm1, %v5165_v29  ;;  %v5227_v27 = vld [vmem:[%s5619_s8 + $0x358] sm:$0xff]   ;;  %v5228_v28 = vld [vmem:[%s5619_s8 + $0x160] sm:$0xff]  }
  0x90   : > { %v5229_v29 = vld [vmem:[%s5619_s8 + $0x360] sm:$0xff]  }
  0x96   : > { %4874 = vmatmul.mubr.msk.bf16.gmra.mxu0 %vm2154_vm1, %v5166_v30  ;;  %5002 = vmatmul.mubr.msk.bf16.gmra.mxu1 %vm2154_vm1, %v5167_v31  ;;  %v5230_v30 = vld [vmem:[%s5619_s8 + $0x168] sm:$0xff]  }
  0x97   : > { %4877 = vmatprep.mubr.msk.bf16.mxu0 %vm2154_vm1, %v5168_v32  ;;  %5005 = vmatprep.mubr.msk.bf16.mxu1 %vm2154_vm1, %v5169_v33  ;;  %v5231_v31 = vld [vmem:[%s5619_s8 + $0x368] sm:$0xff]   ;;  %v5232_v32 = vld [vmem:[%s5619_s8 + $0x170] sm:$0xff]  }
  0x98   : > { %v5233_v33 = vld [vmem:[%s5619_s8 + $0x370] sm:$0xff]  }
  0x9e   : > { %4878 = vmatmul.mubr.msk.bf16.gmra.mxu0 %vm2154_vm1, %v5170_v34  ;;  %5006 = vmatmul.mubr.msk.bf16.gmra.mxu1 %vm2154_vm1, %v5171_v35  ;;  %v5234_v34 = vld [vmem:[%s5619_s8 + $0x178] sm:$0xff]  }
  0x9f   : > { %4881 = vmatprep.mubr.msk.bf16.mxu0 %vm2154_vm1, %v5172_v36  ;;  %5009 = vmatprep.mubr.msk.bf16.mxu1 %vm2154_vm1, %v5173_v37  ;;  %v5235_v35 = vld [vmem:[%s5619_s8 + $0x378] sm:$0xff]   ;;  %v5236_v36 = vld [vmem:[%s5619_s8 + $0x180] sm:$0xff]  }
  0xa0   : > { %v5237_v37 = vld [vmem:[%s5619_s8 + $0x380] sm:$0xff]  }
  0xa6   : > { %4882 = vmatmul.mubr.msk.bf16.gmra.mxu0 %vm2154_vm1, %v5174_v38  ;;  %5010 = vmatmul.mubr.msk.bf16.gmra.mxu1 %vm2154_vm1, %v5175_v39  ;;  %v5238_v38 = vld [vmem:[%s5619_s8 + $0x188] sm:$0xff]  }
  0xa7   : > { %4885 = vmatprep.mubr.msk.bf16.mxu0 %vm2154_vm1, %v5176_v40  ;;  %5013 = vmatprep.mubr.msk.bf16.mxu1 %vm2154_vm1, %v5177_v41  ;;  %v5239_v39 = vld [vmem:[%s5619_s8 + $0x388] sm:$0xff]   ;;  %v5240_v40 = vld [vmem:[%s5619_s8 + $0x190] sm:$0xff]  }
  0xa8   : > { %v5241_v41 = vld [vmem:[%s5619_s8 + $0x390] sm:$0xff]  }
  0xae   : > { %4886 = vmatmul.mubr.msk.bf16.gmra.mxu0 %vm2154_vm1, %v5178_v42  ;;  %5014 = vmatmul.mubr.msk.bf16.gmra.mxu1 %vm2154_vm1, %v5179_v43 }
  0xaf   : > { %4889 = vmatprep.mubr.msk.bf16.mxu0 %vm2154_vm1, %v5180_v44  ;;  %5017 = vmatprep.mubr.msk.bf16.mxu1 %vm2154_vm1, %v5181_v45 }
  0xb6   : > { %4890 = vmatmul.mubr.msk.bf16.gmra.mxu0 %vm2154_vm1, %v5182_v46  ;;  %5018 = vmatmul.mubr.msk.bf16.gmra.mxu1 %vm2154_vm1, %v5183_v47 }
  0xb7   : > { %4893 = vmatprep.mubr.msk.bf16.mxu0 %vm2154_vm1, %v5184_v48  ;;  %5021 = vmatprep.mubr.msk.bf16.mxu1 %vm2154_vm1, %v5185_v49  ;;  %v5242_v48 = vld [vmem:[%s5619_s8 + $0x198] sm:$0xff]  }
  0xb8   : > { %v5243_v49 = vld [vmem:[%s5619_s8 + $0x398] sm:$0xff]  }
  0xbe   : > { %4894 = vmatmul.mubr.msk.bf16.gmra.mxu0 %vm2154_vm1, %v5186_v50  ;;  %5022 = vmatmul.mubr.msk.bf16.gmra.mxu1 %vm2154_vm1, %v5187_v51  ;;  %v5244_v50 = vld [vmem:[%s5619_s8 + $0x1a0] sm:$0xff]  }
  0xbf   : > { %4897 = vmatprep.mubr.msk.bf16.mxu0 %vm2154_vm1, %v5188_v52  ;;  %5025 = vmatprep.mubr.msk.bf16.mxu1 %vm2154_vm1, %v5189_v53  ;;  %v5245_v51 = vld [vmem:[%s5619_s8 + $0x3a0] sm:$0xff]  }
  0xc6   : > { %4898 = vmatmul.mubr.msk.bf16.gmra.mxu0 %vm2154_vm1, %v5190_v54  ;;  %5026 = vmatmul.mubr.msk.bf16.gmra.mxu1 %vm2154_vm1, %v5191_v55 }
  0xc7   : > { %4901 = vmatprep.mubr.msk.bf16.mxu0 %vm2154_vm1, %v5192_v56  ;;  %5029 = vmatprep.mubr.msk.bf16.mxu1 %vm2154_vm1, %v5193_v57 }
  0xce   : > { %4902 = vmatmul.mubr.msk.bf16.gmra.mxu0 %vm2154_vm1, %v5194_v58  ;;  %5030 = vmatmul.mubr.msk.bf16.gmra.mxu1 %vm2154_vm1, %v5195_v59 }
  0xcf   : > { %4905 = vmatprep.mubr.msk.bf16.mxu0 %vm2154_vm1, %v5196_v60  ;;  %5033 = vmatprep.mubr.msk.bf16.mxu1 %vm2154_vm1, %v5197_v61  ;;  %v5246_v60 = vld [vmem:[%s5619_s8 + $0x1a8] sm:$0xff]  }
  0xd0   : > { %v5247_v61 = vld [vmem:[%s5619_s8 + $0x3a8] sm:$0xff]  }
  0xd6   : > { %4906 = vmatmul.mubr.msk.bf16.gmra.mxu0 %vm2154_vm1, %v5198_v62  ;;  %5034 = vmatmul.mubr.msk.bf16.gmra.mxu1 %vm2154_vm1, %v5199_v63  ;;  %v5248_v62 = vld [vmem:[%s5619_s8 + $0x1b0] sm:$0xff]  }
  0xd7   : > { %4909 = vmatprep.mubr.msk.bf16.mxu0 %vm2154_vm1, %v5200_v0  ;;  %5037 = vmatprep.mubr.msk.bf16.mxu1 %vm2154_vm1, %v5201_v1  ;;  %v5249_v63 = vld [vmem:[%s5619_s8 + $0x3b0] sm:$0xff]  }
  0xde   : > { %4910 = vmatmul.mubr.msk.bf16.gmra.mxu0 %vm2154_vm1, %v5202_v2  ;;  %5038 = vmatmul.mubr.msk.bf16.gmra.mxu1 %vm2154_vm1, %v5203_v3 }
  0xdf   : > { %4913 = vmatprep.mubr.msk.bf16.mxu0 %vm2154_vm1, %v5204_v4  ;;  %5041 = vmatprep.mubr.msk.bf16.mxu1 %vm2154_vm1, %v5205_v5 }
  0xe6   : > { %4914 = vmatmul.mubr.msk.bf16.gmra.mxu0 %vm2154_vm1, %v5206_v6  ;;  %5042 = vmatmul.mubr.msk.bf16.gmra.mxu1 %vm2154_vm1, %v5207_v7 }
  0xe7   : > { %4917 = vmatprep.mubr.msk.bf16.mxu0 %vm2154_vm1, %v5208_v8  ;;  %5045 = vmatprep.mubr.msk.bf16.mxu1 %vm2154_vm1, %v5209_v9  ;;  %v5250_v8 = vld [vmem:[%s5619_s8 + $0x1b8] sm:$0xff]  }
  0xe8   : > { %v5251_v9 = vld [vmem:[%s5619_s8 + $0x3b8] sm:$0xff]  }
  0xee   : > { %4918 = vmatmul.mubr.msk.bf16.gmra.mxu0 %vm2154_vm1, %v5210_v10  ;;  %5046 = vmatmul.mubr.msk.bf16.gmra.mxu1 %vm2154_vm1, %v5211_v11  ;;  %v5252_v10 = vld [vmem:[%s5619_s8 + $0x1c0] sm:$0xff]  }
  0xef   : > { %4921 = vmatprep.mubr.msk.bf16.mxu0 %vm2154_vm1, %v5212_v12  ;;  %5049 = vmatprep.mubr.msk.bf16.mxu1 %vm2154_vm1, %v5213_v13  ;;  %v5253_v11 = vld [vmem:[%s5619_s8 + $0x3c0] sm:$0xff]  }
  0xf6   : > { %4922 = vmatmul.mubr.msk.bf16.gmra.mxu0 %vm2154_vm1, %v5214_v14  ;;  %5050 = vmatmul.mubr.msk.bf16.gmra.mxu1 %vm2154_vm1, %v5215_v15 }
  0xf7   : > { %4925 = vmatprep.mubr.msk.bf16.mxu0 %vm2154_vm1, %v5216_v16  ;;  %5053 = vmatprep.mubr.msk.bf16.mxu1 %vm2154_vm1, %v5217_v17 }
  0xfe   : > { %4926 = vmatmul.mubr.msk.bf16.gmra.mxu0 %vm2154_vm1, %v5218_v18  ;;  %5054 = vmatmul.mubr.msk.bf16.gmra.mxu1 %vm2154_vm1, %v5219_v19 }
  0xff   : > { %4929 = vmatprep.mubr.msk.bf16.mxu0 %vm2154_vm1, %v5220_v20  ;;  %5057 = vmatprep.mubr.msk.bf16.mxu1 %vm2154_vm1, %v5221_v21  ;;  %v5254_v20 = vld [vmem:[%s5619_s8 + $0x1c8] sm:$0xff]  }
 0x100   : > { %v5255_v21 = vld [vmem:[%s5619_s8 + $0x3c8] sm:$0xff]  }
 0x106   : > { %4930 = vmatmul.mubr.msk.bf16.gmra.mxu0 %vm2154_vm1, %v5222_v22  ;;  %5058 = vmatmul.mubr.msk.bf16.gmra.mxu1 %vm2154_vm1, %v5223_v23  ;;  %v5256_v22 = vld [vmem:[%s5619_s8 + $0x1d0] sm:$0xff]  }
 0x107   : > { %4933 = vmatprep.mubr.msk.bf16.mxu0 %vm2154_vm1, %v5224_v24  ;;  %5061 = vmatprep.mubr.msk.bf16.mxu1 %vm2154_vm1, %v5225_v25  ;;  %v5257_v23 = vld [vmem:[%s5619_s8 + $0x3d0] sm:$0xff]  }
 0x10e   : > { %4934 = vmatmul.mubr.msk.bf16.gmra.mxu0 %vm2154_vm1, %v5226_v26  ;;  %5062 = vmatmul.mubr.msk.bf16.gmra.mxu1 %vm2154_vm1, %v5227_v27 }
 0x10f   : > { %4937 = vmatprep.mubr.msk.bf16.mxu0 %vm2154_vm1, %v5228_v28  ;;  %5065 = vmatprep.mubr.msk.bf16.mxu1 %vm2154_vm1, %v5229_v29 }
 0x116   : > { %4938 = vmatmul.mubr.msk.bf16.gmra.mxu0 %vm2154_vm1, %v5230_v30  ;;  %5066 = vmatmul.mubr.msk.bf16.gmra.mxu1 %vm2154_vm1, %v5231_v31 }
 0x117   : > { %4941 = vmatprep.mubr.msk.bf16.mxu0 %vm2154_vm1, %v5232_v32  ;;  %5069 = vmatprep.mubr.msk.bf16.mxu1 %vm2154_vm1, %v5233_v33  ;;  %v5258_v32 = vld [vmem:[%s5619_s8 + $0x1d8] sm:$0xff]  }
 0x118   : > { %v5259_v33 = vld [vmem:[%s5619_s8 + $0x3d8] sm:$0xff]  }
 0x11e   : > { %4942 = vmatmul.mubr.msk.bf16.gmra.mxu0 %vm2154_vm1, %v5234_v34  ;;  %5070 = vmatmul.mubr.msk.bf16.gmra.mxu1 %vm2154_vm1, %v5235_v35  ;;  %v5260_v34 = vld [vmem:[%s5619_s8 + $0x1e0] sm:$0xff]  }
 0x11f   : > { %4945 = vmatprep.mubr.msk.bf16.mxu0 %vm2154_vm1, %v5236_v36  ;;  %5073 = vmatprep.mubr.msk.bf16.mxu1 %vm2154_vm1, %v5237_v37  ;;  %v5261_v35 = vld [vmem:[%s5619_s8 + $0x3e0] sm:$0xff]  }
 0x126   : > { %v5821_v42 = vpop.f32.mrf.mxu0  ;;  %4946 = vmatmul.mubr.msk.bf16.gmra.mxu0 %vm2154_vm1, %v5238_v38  ;;  %v5824_v43 = vpop.f32.mrf.mxu1  ;;  %5074 = vmatmul.mubr.msk.bf16.gmra.mxu1 %vm2154_vm1, %v5239_v39 }
 0x127   : > { %4949 = vmatprep.mubr.msk.bf16.mxu0 %vm2154_vm1, %v5240_v40  ;;  %5077 = vmatprep.mubr.msk.bf16.mxu1 %vm2154_vm1, %v5241_v41 }
 0x128   : > { %v5829_v44 = vpop.f32.mrf.mxu0  ;;  %v5831_v45 = vpop.f32.mrf.mxu1 }
 0x12a   : > { %v5833_v46 = vpop.f32.mrf.mxu0  ;;  %v5835_v47 = vpop.f32.mrf.mxu1 }
 0x12c   : > { %v5841_v52 = vpop.f32.mrf.mxu0  ;;  %v5843_v53 = vpop.f32.mrf.mxu1 }
 0x12e   : > { %v5845_v54 = vpop.f32.mrf.mxu0  ;;  %4950 = vmatmul.mubr.msk.bf16.gmra.mxu0 %vm2154_vm1, %v5242_v48  ;;  %v5848_v55 = vpop.f32.mrf.mxu1  ;;  %5078 = vmatmul.mubr.msk.bf16.gmra.mxu1 %vm2154_vm1, %v5243_v49 }
 0x12f   : > { %4953 = vmatprep.mubr.msk.bf16.mxu0 %vm2154_vm1, %v5244_v50  ;;  %5081 = vmatprep.mubr.msk.bf16.mxu1 %vm2154_vm1, %v5245_v51  ;;  %v5262_v50 = vld [vmem:[%s5619_s8 + $0x1e8] sm:$0xff]  }
 0x130   : > { %v5853_v56 = vpop.f32.mrf.mxu0  ;;  %v5855_v57 = vpop.f32.mrf.mxu1  ;;  %v5263_v51 = vld [vmem:[%s5619_s8 + $0x3e8] sm:$0xff]  }
 0x132   : > { %v5857_v58 = vpop.f32.mrf.mxu0  ;;  %v5859_v59 = vpop.f32.mrf.mxu1 }
 0x134   : > { %v5865_v0 = vpop.f32.mrf.mxu0  ;;  %v5867_v1 = vpop.f32.mrf.mxu1 }
 0x136   : > { %v5869_v2 = vpop.f32.mrf.mxu0  ;;  %4954 = vmatmul.mubr.msk.bf16.gmra.mxu0 %vm2154_vm1, %v5246_v60  ;;  %v5872_v3 = vpop.f32.mrf.mxu1  ;;  %5082 = vmatmul.mubr.msk.bf16.gmra.mxu1 %vm2154_vm1, %v5247_v61  ;;  %v5264_v60 = vld [vmem:[%s5619_s8 + $0x1f0] sm:$0xff]  }
 0x137   : > { %4957 = vmatprep.mubr.msk.bf16.mxu0 %vm2154_vm1, %v5248_v62  ;;  %5085 = vmatprep.mubr.msk.bf16.mxu1 %vm2154_vm1, %v5249_v63  ;;  %v5265_v61 = vld [vmem:[%s5619_s8 + $0x3f0] sm:$0xff]  }
 0x138   : > { %v5877_v4 = vpop.f32.mrf.mxu0  ;;  %v5879_v5 = vpop.f32.mrf.mxu1 }
 0x13a   : > { %v5881_v6 = vpop.f32.mrf.mxu0  ;;  %v5883_v7 = vpop.f32.mrf.mxu1 }
 0x13c   : > { %v5889_v12 = vpop.f32.mrf.mxu0  ;;  %v5891_v13 = vpop.f32.mrf.mxu1 }
 0x13e   : > { %v5893_v14 = vpop.f32.mrf.mxu0  ;;  %4958 = vmatmul.mubr.msk.bf16.gmra.mxu0 %vm2154_vm1, %v5250_v8  ;;  %v5896_v15 = vpop.f32.mrf.mxu1  ;;  %5086 = vmatmul.mubr.msk.bf16.gmra.mxu1 %vm2154_vm1, %v5251_v9 }
 0x13f   : > { %4961 = vmatprep.mubr.msk.bf16.mxu0 %vm2154_vm1, %v5252_v10  ;;  %5089 = vmatprep.mubr.msk.bf16.mxu1 %vm2154_vm1, %v5253_v11 }
 0x140   : > { %v5901_v16 = vpop.f32.mrf.mxu0  ;;  %v5903_v17 = vpop.f32.mrf.mxu1 }
 0x142   : > { %v5905_v18 = vpop.f32.mrf.mxu0  ;;  %v5907_v19 = vpop.f32.mrf.mxu1 }
 0x144   : > { %v5913_v24 = vpop.f32.mrf.mxu0  ;;  %v5915_v25 = vpop.f32.mrf.mxu1 }
 0x146   : > { %v5917_v26 = vpop.f32.mrf.mxu0  ;;  %4962 = vmatmul.mubr.msk.bf16.gmra.mxu0 %vm2154_vm1, %v5254_v20  ;;  %v5920_v27 = vpop.f32.mrf.mxu1  ;;  %5090 = vmatmul.mubr.msk.bf16.gmra.mxu1 %vm2154_vm1, %v5255_v21 }
 0x147   : > { %4965 = vmatprep.mubr.msk.bf16.mxu0 %vm2154_vm1, %v5256_v22  ;;  %5093 = vmatprep.mubr.msk.bf16.mxu1 %vm2154_vm1, %v5257_v23  ;;  %v5266_v22 = vld [vmem:[%s5619_s8 + $0x1f8] sm:$0xff]  }
 0x148   : > { %v5925_v28 = vpop.f32.mrf.mxu0  ;;  %v5927_v29 = vpop.f32.mrf.mxu1  ;;  %v5267_v23 = vld [vmem:[%s5619_s8 + $0x3f8] sm:$0xff]  }
 0x14a   : > { %v5929_v30 = vpop.f32.mrf.mxu0  ;;  %v5931_v31 = vpop.f32.mrf.mxu1 }
 0x14c   : > { %v5937_v36 = vpop.f32.mrf.mxu0  ;;  %v5939_v37 = vpop.f32.mrf.mxu1 }
 0x14e   : > { %v5941_v38 = vpop.f32.mrf.mxu0  ;;  %4966 = vmatmul.mubr.msk.bf16.gmra.mxu0 %vm2154_vm1, %v5258_v32  ;;  %v5944_v39 = vpop.f32.mrf.mxu1  ;;  %5094 = vmatmul.mubr.msk.bf16.gmra.mxu1 %vm2154_vm1, %v5259_v33 }
 0x14f   : > { %4969 = vmatprep.mubr.msk.bf16.mxu0 %vm2154_vm1, %v5260_v34  ;;  %5097 = vmatprep.mubr.msk.bf16.mxu1 %vm2154_vm1, %v5261_v35 }
 0x150   : > { %v5949_v40 = vpop.f32.mrf.mxu0  ;;  %v5951_v41 = vpop.f32.mrf.mxu1 }
 0x152   : > { %v5953_v48 = vpop.f32.mrf.mxu0  ;;  %v5955_v49 = vpop.f32.mrf.mxu1 }
 0x154   : > { %v5961_v62 = vpop.f32.mrf.mxu0  ;;  %v5963_v63 = vpop.f32.mrf.mxu1 }
 0x156   : > { %v5965_v8 = vpop.f32.mrf.mxu0  ;;  %4970 = vmatmul.mubr.msk.bf16.gmra.mxu0 %vm2154_vm1, %v5262_v50  ;;  %v5968_v9 = vpop.f32.mrf.mxu1  ;;  %5098 = vmatmul.mubr.msk.bf16.gmra.mxu1 %vm2154_vm1, %v5263_v51 }
 0x157   : > { %6475 = vst [vmem:[#allocation3_spill] sm:$0xff] %v5965_v8  ;;  %6476 = vst [vmem:[#allocation4_spill] sm:$0xff] %v5968_v9  ;;  %4973 = vmatprep.mubr.msk.bf16.mxu0 %vm2154_vm1, %v5264_v60  ;;  %5101 = vmatprep.mubr.msk.bf16.mxu1 %vm2154_vm1, %v5265_v61 }
 0x158   : > { %v5973_v10 = vpop.f32.mrf.mxu0  ;;  %v5975_v11 = vpop.f32.mrf.mxu1 }
 0x159   : > { %6477 = vst [vmem:[#allocation5_spill] sm:$0xff] %v5973_v10  ;;  %6478 = vst [vmem:[#allocation6_spill] sm:$0xff] %v5975_v11 }
 0x15a   : > { %v5977_v20 = vpop.f32.mrf.mxu0  ;;  %v5979_v21 = vpop.f32.mrf.mxu1 }
 0x15b   : > { %6479 = vst [vmem:[#allocation7_spill] sm:$0xff] %v5977_v20  ;;  %6480 = vst [vmem:[#allocation8_spill] sm:$0xff] %v5979_v21 }
 0x15c   : > { %v5983_v32 = vpop.f32.mrf.mxu0  ;;  %v5985_v33 = vpop.f32.mrf.mxu1 }
 0x15d   : > { %6481 = vst [vmem:[#allocation9_spill] sm:$0xff] %v5983_v32  ;;  %6482 = vst [vmem:[#allocation10_spill] sm:$0xff] %v5985_v33 }
 0x15e   : > { %v5987_v34 = vpop.f32.mrf.mxu0  ;;  %4974 = vmatmul.mubr.msk.bf16.gmra.mxu0 %vm2154_vm1, %v5266_v22  ;;  %v5990_v35 = vpop.f32.mrf.mxu1  ;;  %5102 = vmatmul.mubr.msk.bf16.gmra.mxu1 %vm2154_vm1, %v5267_v23 }
 0x15f   : > { %6483 = vst [vmem:[#allocation11_spill] sm:$0xff] %v5987_v34  ;;  %6484 = vst [vmem:[#allocation12_spill] sm:$0xff] %v5990_v35 }
 0x160   : > { %v5993_v50 = vpop.f32.mrf.mxu0  ;;  %v5995_v51 = vpop.f32.mrf.mxu1 }
 0x161   : > { %6485 = vst [vmem:[#allocation13_spill] sm:$0xff] %v5993_v50  ;;  %6486 = vst [vmem:[#allocation14_spill] sm:$0xff] %v5995_v51 }
 0x162   : > { %v5997_v60 = vpop.f32.mrf.mxu0  ;;  %v5999_v61 = vpop.f32.mrf.mxu1 }
 0x163   : > { %6487 = vst [vmem:[#allocation15_spill] sm:$0xff] %v5997_v60  ;;  %6488 = vst [vmem:[#allocation16_spill] sm:$0xff] %v5999_v61 }
 0x164   : > { %v6001_v21 = vpop.f32.mrf.mxu0  ;;  %v6003_v32 = vpop.f32.mrf.mxu1 }
 0x165   : > { %6489 = vst [vmem:[#allocation17_spill] sm:$0xff] %v6001_v21  ;;  %6490 = vst [vmem:[#allocation18_spill] sm:$0xff] %v6003_v32 }
 0x166   : > { %v6005_v33 = vpop.f32.mrf.mxu0  ;;  %v6007_v34 = vpop.f32.mrf.mxu1 }
 0x167   : > { %6491 = vst [vmem:[#allocation19_spill] sm:$0xff] %v6005_v33  ;;  %6492 = vst [vmem:[#allocation20_spill] sm:$0xff] %v6007_v34 }
 0x168   : > { %v6009_v22 = vpop.f32.mrf.mxu0  ;;  %v6011_v35 = vpop.f32.mrf.mxu1 }
 0x169   : > { %6493 = vst [vmem:[#allocation21_spill] sm:$0xff] %v6009_v22  ;;  %6494 = vst [vmem:[#allocation22_spill] sm:$0xff] %v6011_v35 }
 0x16a   : > { %v6013_v23 = vpop.f32.mrf.mxu0  ;;  %v6015_v50 = vpop.f32.mrf.mxu1 }
 0x16b   : > { %6495 = vst [vmem:[#allocation23_spill] sm:$0xff] %v6013_v23  ;;  %6496 = vst [vmem:[#allocation24_spill] sm:$0xff] %v6015_v50 }
 0x16c   : > { %v6017_v51 = vpop.f32.mrf.mxu0  ;;  %v6019_v60 = vpop.f32.mrf.mxu1 }
 0x16d   : > { %6497 = vst [vmem:[#allocation25_spill] sm:$0xff] %v6017_v51  ;;  %6498 = vst [vmem:[#allocation26_spill] sm:$0xff] %v6019_v60 }
 0x16e   : > { %v6021_v61 = vpop.f32.mrf.mxu0  ;;  %v6023_v21 = vpop.f32.mrf.mxu1 }
 0x16f   : > { %6499 = vst [vmem:[#allocation27_spill] sm:$0xff] %v6021_v61  ;;  %6500 = vst [vmem:[#allocation28_spill] sm:$0xff] %v6023_v21 }
 0x170   : > { %v6025_v32 = vpop.f32.mrf.mxu0  ;;  %v6027_v33 = vpop.f32.mrf.mxu1 }
 0x171   : > { %6501 = vst [vmem:[#allocation29_spill] sm:$0xff] %v6025_v32  ;;  %6502 = vst [vmem:[#allocation30_spill] sm:$0xff] %v6027_v33 }
 0x172   : > { %v6029_v34 = vpop.f32.mrf.mxu0  ;;  %v6031_v22 = vpop.f32.mrf.mxu1 }
 0x173   : > { %6503 = vst [vmem:[#allocation31_spill] sm:$0xff] %v6029_v34  ;;  %6504 = vst [vmem:[#allocation32_spill] sm:$0xff] %v6031_v22 }
 0x174   : > { %v6033_v35 = vpop.f32.mrf.mxu0  ;;  %v6035_v23 = vpop.f32.mrf.mxu1 }
 0x175   : > { %6505 = vst [vmem:[#allocation33_spill] sm:$0xff] %v6033_v35  ;;  %6506 = vst [vmem:[#allocation34_spill] sm:$0xff] %v6035_v23 }
 0x176   : > { %v6037_v50 = vpop.f32.mrf.mxu0  ;;  %v6039_v51 = vpop.f32.mrf.mxu1 }
 0x177   : > { %6507 = vst [vmem:[#allocation35_spill] sm:$0xff] %v6037_v50  ;;  %6508 = vst [vmem:[#allocation36_spill] sm:$0xff] %v6039_v51 }
 0x178   : > { %v6041_v60 = vpop.f32.mrf.mxu0  ;;  %v6043_v61 = vpop.f32.mrf.mxu1 }
 0x179   : > { %6509 = vst [vmem:[#allocation37_spill] sm:$0xff] %v6041_v60  ;;  %6510 = vst [vmem:[#allocation38_spill] sm:$0xff] %v6043_v61 }
 0x17a   : > { %v6045_v21 = vpop.f32.mrf.mxu0  ;;  %v6047_v32 = vpop.f32.mrf.mxu1 }
 0x17b   : > { %6511 = vst [vmem:[#allocation39_spill] sm:$0xff] %v6045_v21  ;;  %6512 = vst [vmem:[#allocation40_spill] sm:$0xff] %v6047_v32 }
 0x17c   : > { %v6049_v33 = vpop.f32.mrf.mxu0  ;;  %v6051_v34 = vpop.f32.mrf.mxu1 }
 0x17d   : > { %6513 = vst [vmem:[#allocation41_spill] sm:$0xff] %v6049_v33  ;;  %6514 = vst [vmem:[#allocation42_spill] sm:$0xff] %v6051_v34 }
 0x17e   : > { %v6053_v22 = vpop.f32.mrf.mxu0  ;;  %v6055_v35 = vpop.f32.mrf.mxu1 }
 0x17f   : > { %6515 = vst [vmem:[#allocation43_spill] sm:$0xff] %v6053_v22  ;;  %6516 = vst [vmem:[#allocation44_spill] sm:$0xff] %v6055_v35 }
 0x180   : > { %v6057_v23 = vpop.f32.mrf.mxu0  ;;  %v6059_v50 = vpop.f32.mrf.mxu1 }
 0x181   : > { %6517 = vst [vmem:[#allocation45_spill] sm:$0xff] %v6057_v23  ;;  %6518 = vst [vmem:[#allocation46_spill] sm:$0xff] %v6059_v50 }
 0x182   : > { %v6061_v51 = vpop.f32.mrf.mxu0  ;;  %v6063_v60 = vpop.f32.mrf.mxu1 }
 0x183   : > { %6519 = vst [vmem:[#allocation47_spill] sm:$0xff] %v6061_v51  ;;  %6520 = vst [vmem:[#allocation48_spill] sm:$0xff] %v6063_v60 }
 0x184   : > { %v6065_v61 = vpop.f32.mrf.mxu0  ;;  %v6067_v21 = vpop.f32.mrf.mxu1 }
 0x185   : > { %6521 = vst [vmem:[#allocation49_spill] sm:$0xff] %v6065_v61  ;;  %6522 = vst [vmem:[#allocation50_spill] sm:$0xff] %v6067_v21 }
 0x186   : > { %v6069_v32 = vpop.f32.mrf.mxu0  ;;  %v6071_v33 = vpop.f32.mrf.mxu1 }
 0x187   : > { %6523 = vst [vmem:[#allocation51_spill] sm:$0xff] %v6069_v32  ;;  %6524 = vst [vmem:[#allocation52_spill] sm:$0xff] %v6071_v33 }
 0x188   : > { %v6073_v34 = vpop.f32.mrf.mxu0  ;;  %v6075_v22 = vpop.f32.mrf.mxu1 }
 0x189   : > { %6525 = vst [vmem:[#allocation53_spill] sm:$0xff] %v6073_v34  ;;  %6526 = vst [vmem:[#allocation54_spill] sm:$0xff] %v6075_v22 }
 0x18a   : > { %v6077_v35 = vpop.f32.mrf.mxu0  ;;  %v6079_v23 = vpop.f32.mrf.mxu1 }
 0x18b   : > { %6527 = vst [vmem:[#allocation55_spill] sm:$0xff] %v6077_v35  ;;  %6528 = vst [vmem:[#allocation56_spill] sm:$0xff] %v6079_v23 }
 0x18c   : > { %v6081_v50 = vpop.f32.mrf.mxu0  ;;  %v6083_v51 = vpop.f32.mrf.mxu1 }
 0x18d   : > { %6529 = vst [vmem:[#allocation57_spill] sm:$0xff] %v6081_v50  ;;  %6530 = vst [vmem:[#allocation58_spill] sm:$0xff] %v6083_v51 }
 0x18e   : > { %v6085_v60 = vpop.f32.mrf.mxu0  ;;  %v6087_v61 = vpop.f32.mrf.mxu1 }
 0x18f   : > { %6531 = vst [vmem:[#allocation59_spill] sm:$0xff] %v6085_v60  ;;  %6532 = vst [vmem:[#allocation60_spill] sm:$0xff] %v6087_v61 }
 0x190   : > { %v6089_v21 = vpop.f32.mrf.mxu0  ;;  %v6091_v32 = vpop.f32.mrf.mxu1 }
 0x191   : > { %6533 = vst [vmem:[#allocation61_spill] sm:$0xff] %v6089_v21  ;;  %6534 = vst [vmem:[#allocation62_spill] sm:$0xff] %v6091_v32 }
 0x192   : > { %v6093_v33 = vpop.f32.mrf.mxu0  ;;  %v6095_v22 = vpop.f32.mrf.mxu1 }
 0x193   : > { %6535 = vst [vmem:[#allocation63_spill] sm:$0xff] %v6093_v33  ;;  %6536 = vst [vmem:[#allocation64_spill] sm:$0xff] %v6095_v22 }
 0x194   : > { %v6097_v35 = vpop.f32.mrf.mxu0  ;;  %v6099_v23 = vpop.f32.mrf.mxu1 }
 0x195   : > { %6537 = vst [vmem:[#allocation65_spill] sm:$0xff] %v6097_v35  ;;  %6538 = vst [vmem:[#allocation66_spill] sm:$0xff] %v6099_v23 }
 0x196   : > { %v6101_v50 = vpop.f32.mrf.mxu0  ;;  %v6103_v51 = vpop.f32.mrf.mxu1 }
 0x197   : > { %6539 = vst [vmem:[#allocation67_spill] sm:$0xff] %v6101_v50  ;;  %6540 = vst [vmem:[#allocation68_spill] sm:$0xff] %v6103_v51 }
 0x198   : > { %v6105_v60 = vpop.f32.mrf.mxu0  ;;  %v6107_v61 = vpop.f32.mrf.mxu1 }
 0x199   : > { %6541 = vst [vmem:[#allocation69_spill] sm:$0xff] %v6105_v60  ;;  %6542 = vst [vmem:[#allocation70_spill] sm:$0xff] %v6107_v61 }
 0x19a   : > { %v6109_v21 = vpop.f32.mrf.mxu0  ;;  %v6111_v32 = vpop.f32.mrf.mxu1 }
 0x19b   : > { %6543 = vst [vmem:[#allocation71_spill] sm:$0xff] %v6109_v21  ;;  %6544 = vst [vmem:[#allocation72_spill] sm:$0xff] %v6111_v32 }
 0x19c   : > { %v6113_v33 = vpop.f32.mrf.mxu0  ;;  %v6115_v34 = vpop.f32.mrf.mxu1 }
 0x19d   : > { %6545 = vst [vmem:[#allocation73_spill] sm:$0xff] %v6113_v33  ;;  %6546 = vst [vmem:[#allocation74_spill] sm:$0xff] %v6115_v34 }
 0x19e   : > { %v6117_v22 = vpop.f32.mrf.mxu0  ;;  %v6119_v35 = vpop.f32.mrf.mxu1 }
 0x19f   : > { %6547 = vst [vmem:[#allocation75_spill] sm:$0xff] %v6117_v22  ;;  %6548 = vst [vmem:[#allocation76_spill] sm:$0xff] %v6119_v35 }
 0x1a0   : > { %v6121_v23 = vpop.f32.mrf.mxu0  ;;  %v6123_v50 = vpop.f32.mrf.mxu1 }
 0x1a1   : > { %6549 = vst [vmem:[#allocation77_spill] sm:$0xff] %v6121_v23  ;;  %6550 = vst [vmem:[#allocation78_spill] sm:$0xff] %v6123_v50  ;;  %v6140_v50 = vld [vmem:[%s6473_s2] ss:$0 sm:$0xff] }
 0x1a2   : > { %v6127_v60 = vpop.f32.mrf.mxu0  ;;  %v6129_v61 = vpop.f32.mrf.mxu1 }
 0x1a3   : > { %6551 = vst [vmem:[#allocation79_spill] sm:$0xff] %v6127_v60  ;;  %6552 = vst [vmem:[#allocation80_spill] sm:$0xff] %v6129_v61 }
 0x1a4   : > { %v6131_v32 = vpop.f32.mrf.mxu0  ;;  %v6133_v33 = vpop.f32.mrf.mxu1 }
 0x1a5   : > { %6553 = vst [vmem:[#allocation81_spill] sm:$0xff] %v6131_v32  ;;  %6554 = vst [vmem:[#allocation82_spill] sm:$0xff] %v6133_v33 }
 0x1a6   : > { %v4915_v34 = vpop.f32.mrf.mxu0  ;;  %v5043_v21 = vpop.f32.mrf.mxu1 }
 0x1a7   : > { %v3602_v22 = vmax.f32 %v5821_v42, %v4915_v34  ;;  %v3666_v23 = vmax.f32 %v5824_v43, %v5043_v21 }
 0x1a8   : > { %v2833_v60 = vpop.f32.mrf.mxu0  ;;  %v3345_v35 = vpop.f32.mrf.mxu1 }
 0x1a9   : > { %v3730_v61 = vmax.f32 %v3602_v22, %v3666_v23  ;;  %v3600_v51 = vmax.f32 %v5829_v44, %v2833_v60  ;;  %v3664_v32 = vmax.f32 %v5831_v45, %v3345_v35 }
 0x1aa   : > { %v4916_v33 = vpop.f32.mrf.mxu0  ;;  %v5044_v20 = vpop.f32.mrf.mxu1 }
 0x1ab   : > { %v3801_v42 = vadd.f32 %v6140_v50, %v3730_v61  ;;  %v3728_v34 = vmax.f32 %v3600_v51, %v3664_v32  ;;  %v3603_v43 = vmax.f32 %v5833_v46, %v4916_v33  ;;  %v3667_v21 = vmax.f32 %v5835_v47, %v5044_v20 }
 0x1ac   : > { %v2836_v11 = vpop.f32.mrf.mxu0  ;;  %v3348_v10 = vpop.f32.mrf.mxu1 }
 0x1ad   : > { %v3865_v9 = vmax.f32 %v3801_v42, 0.0  ;;  %v3799_v8 = vadd.f32 %v6140_v50, %v3728_v34  ;;  %v3731_v22 = vmax.f32 %v3603_v43, %v3667_v21  ;;  %v3601_v44 = vmax.f32 %v5841_v52, %v2836_v11 }
 0x1ae   : > { %v3665_v45 = vmax.f32 %v5843_v53, %v3348_v10  ;;  %v4919_v46 = vpop.f32.mrf.mxu0  ;;  %v5047_v32 = vpop.f32.mrf.mxu1 }
 0x1af   : > { %v4650_v47 = vpack.c.bf16 %v3865_v9, %v3865_v9  ;;  %v3863_v20 = vmax.f32 %v3799_v8, 0.0  ;;  %v3802_v33 = vadd.f32 %v6140_v50, %v3731_v22  ;;  %v3606_v35 = vmax.f32 %v5845_v54, %v4919_v46 }
 0x1b0   : > { %v3729_v51 = vmax.f32 %v3601_v44, %v3665_v45  ;;  %v3670_v52 = vmax.f32 %v5848_v55, %v5047_v32  ;;  %v2849_v11 = vpop.f32.mrf.mxu0  ;;  %v3361_v60 = vpop.f32.mrf.mxu1 }
 0x1b1   : > { %4186 = vst.msk [vmem:[%s6152_s17 + $0x8] sm:$0xf] %vm4183_vm2, %v4650_v47  ;;  %v4648_v61 = vpack.c.bf16 %v3863_v20, %v3863_v20  ;;  %v3866_v23 = vmax.f32 %v3802_v33, 0.0  ;;  %v3604_v53 = vmax.f32 %v5853_v56, %v2849_v11  ;;  %v3668_v9 = vmax.f32 %v5855_v57, %v3361_v60 }
 0x1b2   : > { %v3800_v8 = vadd.f32 %v6140_v50, %v3729_v51  ;;  %v3734_v10 = vmax.f32 %v3606_v35, %v3670_v52  ;;  %v4920_v42 = vpop.f32.mrf.mxu0  ;;  %v5048_v34 = vpop.f32.mrf.mxu1 }
 0x1b3   : > { %4184 = vst.msk [vmem:[%s6152_s17] sm:$0xf] %vm4183_vm2, %v4648_v61  ;;  %v4651_v54 = vpack.c.bf16 %v3866_v23, %v3866_v23  ;;  %v3732_v55 = vmax.f32 %v3604_v53, %v3668_v9  ;;  %v3607_v43 = vmax.f32 %v5857_v58, %v4920_v42  ;;  %v3671_v21 = vmax.f32 %v5859_v59, %v5048_v34 }
 0x1b4   : > { %v3864_v22 = vmax.f32 %v3800_v8, 0.0  ;;  %v3805_v44 = vadd.f32 %v6140_v50, %v3734_v10  ;;  %v2852_v56 = vpop.f32.mrf.mxu0  ;;  %v3364_v45 = vpop.f32.mrf.mxu1 }
 0x1b5   : > { %4187 = vst.msk [vmem:[%s6152_s17 + $0xc] sm:$0xf] %vm4183_vm2, %v4651_v54  ;;  %v3803_v57 = vadd.f32 %v6140_v50, %v3732_v55  ;;  %v3735_v46 = vmax.f32 %v3607_v43, %v3671_v21  ;;  %v3605_v32 = vmax.f32 %v5865_v0, %v2852_v56  ;;  %v3669_v47 = vmax.f32 %v5867_v1, %v3364_v45 }
 0x1b6   : > { %v4649_v20 = vpack.c.bf16 %v3864_v22, %v3864_v22  ;;  %v3869_v33 = vmax.f32 %v3805_v44, 0.0  ;;  %v4923_v58 = vpop.f32.mrf.mxu0  ;;  %v5051_v59 = vpop.f32.mrf.mxu1 }
 0x1b7   : > { %v3867_v35 = vmax.f32 %v3803_v57, 0.0  ;;  %v3806_v51 = vadd.f32 %v6140_v50, %v3735_v46  ;;  %v3733_v52 = vmax.f32 %v3605_v32, %v3669_v47  ;;  %v3610_v11 = vmax.f32 %v5869_v2, %v4923_v58 }
 0x1b8   : > { %4185 = vst.msk [vmem:[%s6152_s17 + $0x4] sm:$0xf] %vm4183_vm2, %v4649_v20  ;;  %v4654_v60 = vpack.c.bf16 %v3869_v33, %v3869_v33  ;;  %v3674_v61 = vmax.f32 %v5872_v3, %v5051_v59  ;;  %v2865_v0 = vpop.f32.mrf.mxu0  ;;  %v3377_v23 = vpop.f32.mrf.mxu1 }
 0x1b9   : > { %v4652_v1 = vpack.c.bf16 %v3867_v35, %v3867_v35  ;;  %v3870_v53 = vmax.f32 %v3806_v51, 0.0  ;;  %v3804_v9 = vadd.f32 %v6140_v50, %v3733_v52  ;;  %v3608_v8 = vmax.f32 %v5877_v4, %v2865_v0 }
 0x1ba   : > { %4190 = vst.msk [vmem:[%s6152_s17 + $0x18] sm:$0xf] %vm4183_vm2, %v4654_v60  ;;  %v3738_v10 = vmax.f32 %v3610_v11, %v3674_v61  ;;  %v3672_v42 = vmax.f32 %v5879_v5, %v3377_v23  ;;  %v4924_v2 = vpop.f32.mrf.mxu0  ;;  %v5052_v34 = vpop.f32.mrf.mxu1 }
 0x1bb   : > { %4188 = vst.msk [vmem:[%s6152_s17 + $0x10] sm:$0xf] %vm4183_vm2, %v4652_v1  ;;  %v4655_v54 = vpack.c.bf16 %v3870_v53, %v3870_v53  ;;  %v3868_v3 = vmax.f32 %v3804_v9, 0.0  ;;  %v3611_v55 = vmax.f32 %v5881_v6, %v4924_v2  ;;  %v3675_v43 = vmax.f32 %v5883_v7, %v5052_v34 }
 0x1bc   : > { %v3809_v21 = vadd.f32 %v6140_v50, %v3738_v10  ;;  %v3736_v22 = vmax.f32 %v3608_v8, %v3672_v42  ;;  %v2868_v4 = vpop.f32.mrf.mxu0  ;;  %v3380_v44 = vpop.f32.mrf.mxu1 }
 0x1bd   : > { %4191 = vst.msk [vmem:[%s6152_s17 + $0x1c] sm:$0xf] %vm4183_vm2, %v4655_v54  ;;  %v4653_v56 = vpack.c.bf16 %v3868_v3, %v3868_v3  ;;  %v3739_v5 = vmax.f32 %v3611_v55, %v3675_v43  ;;  %v3609_v45 = vmax.f32 %v5889_v12, %v2868_v4  ;;  %v3673_v57 = vmax.f32 %v5891_v13, %v3380_v44 }
 0x1be   : > { %v3873_v46 = vmax.f32 %v3809_v21, 0.0  ;;  %v3807_v32 = vadd.f32 %v6140_v50, %v3736_v22  ;;  %v4927_v6 = vpop.f32.mrf.mxu0  ;;  %v5055_v47 = vpop.f32.mrf.mxu1 }
 0x1bf   : > { %4189 = vst.msk [vmem:[%s6152_s17 + $0x14] sm:$0xf] %vm4183_vm2, %v4653_v56  ;;  %v3810_v7 = vadd.f32 %v6140_v50, %v3739_v5  ;;  %v3737_v20 = vmax.f32 %v3609_v45, %v3673_v57  ;;  %v3614_v33 = vmax.f32 %v5893_v14, %v4927_v6  ;;  %v3678_v58 = vmax.f32 %v5896_v15, %v5055_v47 }
 0x1c0   : > { %v4658_v59 = vpack.c.bf16 %v3873_v46, %v3873_v46  ;;  %v3871_v35 = vmax.f32 %v3807_v32, 0.0  ;;  %v2881_v12 = vpop.f32.mrf.mxu0  ;;  %v3393_v13 = vpop.f32.mrf.mxu1 }
 0x1c1   : > { %v3874_v51 = vmax.f32 %v3810_v7, 0.0  ;;  %v3808_v52 = vadd.f32 %v6140_v50, %v3737_v20  ;;  %v3742_v11 = vmax.f32 %v3614_v33, %v3678_v58  ;;  %v3612_v60 = vmax.f32 %v5901_v16, %v2881_v12 }
 0x1c2   : > { %4194 = vst.msk [vmem:[%s6152_s17 + $0x28] sm:$0xf] %vm4183_vm2, %v4658_v59  ;;  %v4656_v61 = vpack.c.bf16 %v3871_v35, %v3871_v35  ;;  %v3676_v0 = vmax.f32 %v5903_v17, %v3393_v13  ;;  %v4928_v14 = vpop.f32.mrf.mxu0  ;;  %v5056_v23 = vpop.f32.mrf.mxu1 }
 0x1c3   : > { %v4659_v15 = vpack.c.bf16 %v3874_v51, %v3874_v51  ;;  %v3872_v1 = vmax.f32 %v3808_v52, 0.0  ;;  %v3813_v53 = vadd.f32 %v6140_v50, %v3742_v11  ;;  %v3615_v9 = vmax.f32 %v5905_v18, %v4928_v14 }
 0x1c4   : > { %4192 = vst.msk [vmem:[%s6152_s17 + $0x20] sm:$0xf] %vm4183_vm2, %v4656_v61  ;;  %v3740_v8 = vmax.f32 %v3612_v60, %v3676_v0  ;;  %v3679_v10 = vmax.f32 %v5907_v19, %v5056_v23  ;;  %v2884_v16 = vpop.f32.mrf.mxu0  ;;  %v3396_v42 = vpop.f32.mrf.mxu1 }
 0x1c5   : > { %4195 = vst.msk [vmem:[%s6152_s17 + $0x2c] sm:$0xf] %vm4183_vm2, %v4659_v15  ;;  %v4657_v2 = vpack.c.bf16 %v3872_v1, %v3872_v1  ;;  %v3877_v17 = vmax.f32 %v3813_v53, 0.0  ;;  %v3613_v34 = vmax.f32 %v5913_v24, %v2884_v16  ;;  %v3677_v54 = vmax.f32 %v5915_v25, %v3396_v42 }
 0x1c6   : > { %v3811_v3 = vadd.f32 %v6140_v50, %v3740_v8  ;;  %v3743_v55 = vmax.f32 %v3615_v9, %v3679_v10  ;;  %v4931_v18 = vpop.f32.mrf.mxu0  ;;  %v5059_v43 = vpop.f32.mrf.mxu1 }
 0x1c7   : > { %4193 = vst.msk [vmem:[%s6152_s17 + $0x24] sm:$0xf] %vm4183_vm2, %v4657_v2  ;;  %v4662_v21 = vpack.c.bf16 %v3877_v17, %v3877_v17  ;;  %v3741_v19 = vmax.f32 %v3613_v34, %v3677_v54  ;;  %v3618_v22 = vmax.f32 %v5917_v26, %v4931_v18  ;;  %v3682_v4 = vmax.f32 %v5920_v27, %v5059_v43 }
 0x1c8   : > { %v3875_v44 = vmax.f32 %v3811_v3, 0.0  ;;  %v3814_v56 = vadd.f32 %v6140_v50, %v3743_v55  ;;  %v2897_v24 = vpop.f32.mrf.mxu0  ;;  %v3409_v5 = vpop.f32.mrf.mxu1 }
 0x1c9   : > { %4198 = vst.msk [vmem:[%s6152_s17 + $0x38] sm:$0xf] %vm4183_vm2, %v4662_v21  ;;  %v3812_v25 = vadd.f32 %v6140_v50, %v3741_v19  ;;  %v3746_v45 = vmax.f32 %v3618_v22, %v3682_v4  ;;  %v3616_v57 = vmax.f32 %v5925_v28, %v2897_v24  ;;  %v3680_v46 = vmax.f32 %v5927_v29, %v3409_v5  ;;  %v6555_v24 = vld [vmem:[#allocation3_spill] sm:$0xff] }
 0x1ca   : > { %v4660_v32 = vpack.c.bf16 %v3875_v44, %v3875_v44  ;;  %v3878_v6 = vmax.f32 %v3814_v56, 0.0  ;;  %v4932_v26 = vpop.f32.mrf.mxu0  ;;  %v5060_v27 = vpop.f32.mrf.mxu1 }
 0x1cb   : > { %v3876_v47 = vmax.f32 %v3812_v25, 0.0  ;;  %v3817_v7 = vadd.f32 %v6140_v50, %v3746_v45  ;;  %v3744_v20 = vmax.f32 %v3616_v57, %v3680_v46  ;;  %v3619_v33 = vmax.f32 %v5929_v30, %v4932_v26  ;;  %v6556_v45 = vld [vmem:[#allocation4_spill] sm:$0xff] }
 0x1cc   : > { %4196 = vst.msk [vmem:[%s6152_s17 + $0x30] sm:$0xf] %vm4183_vm2, %v4660_v32  ;;  %v4663_v58 = vpack.c.bf16 %v3878_v6, %v3878_v6  ;;  %v3683_v59 = vmax.f32 %v5931_v31, %v5060_v27  ;;  %v2900_v28 = vpop.f32.mrf.mxu0  ;;  %v3412_v35 = vpop.f32.mrf.mxu1  ;;  %v6557_v6 = vld [vmem:[#allocation5_spill] sm:$0xff]  ;;  %v6558_v27 = vld [vmem:[#allocation6_spill] sm:$0xff] }
 0x1cd   : > { %v4661_v29 = vpack.c.bf16 %v3876_v47, %v3876_v47  ;;  %v3881_v12 = vmax.f32 %v3817_v7, 0.0  ;;  %v3815_v13 = vadd.f32 %v6140_v50, %v3744_v20  ;;  %v3617_v51 = vmax.f32 %v5937_v36, %v2900_v28 }
 0x1ce   : > { %4199 = vst.msk [vmem:[%s6152_s17 + $0x3c] sm:$0xf] %vm4183_vm2, %v4663_v58  ;;  %v3747_v52 = vmax.f32 %v3619_v33, %v3683_v59  ;;  %v3681_v11 = vmax.f32 %v5939_v37, %v3412_v35  ;;  %v4935_v30 = vpop.f32.mrf.mxu0  ;;  %v5063_v60 = vpop.f32.mrf.mxu1  ;;  %v6559_v35 = vld [vmem:[#allocation7_spill] sm:$0xff] }
 0x1cf   : > { %4197 = vst.msk [vmem:[%s6152_s17 + $0x34] sm:$0xf] %vm4183_vm2, %v4661_v29  ;;  %v4666_v61 = vpack.c.bf16 %v3881_v12, %v3881_v12  ;;  %v3879_v31 = vmax.f32 %v3815_v13, 0.0  ;;  %v3622_v0 = vmax.f32 %v5941_v38, %v4935_v30  ;;  %v3686_v14 = vmax.f32 %v5944_v39, %v5063_v60  ;;  %v6560_v12 = vld [vmem:[#allocation8_spill] sm:$0xff] }
 0x1d0   : > { %v3818_v23 = vadd.f32 %v6140_v50, %v3747_v52  ;;  %v3745_v15 = vmax.f32 %v3617_v51, %v3681_v11  ;;  %v2913_v36 = vpop.f32.mrf.mxu0  ;;  %v3425_v1 = vpop.f32.mrf.mxu1 }
 0x1d1   : > { %4202 = vst.msk [vmem:[%s6152_s17 + $0x48] sm:$0xf] %vm4183_vm2, %v4666_v61  ;;  %v4664_v53 = vpack.c.bf16 %v3879_v31, %v3879_v31  ;;  %v3750_v37 = vmax.f32 %v3622_v0, %v3686_v14  ;;  %v3620_v9 = vmax.f32 %v5949_v40, %v2913_v36  ;;  %v3684_v8 = vmax.f32 %v5951_v41, %v3425_v1  ;;  %v6561_v31 = vld [vmem:[#allocation9_spill] sm:$0xff]  ;;  %v6562_v14 = vld [vmem:[#allocation10_spill] sm:$0xff] }
 0x1d2   : > { %v3882_v10 = vmax.f32 %v3818_v23, 0.0  ;;  %v3816_v16 = vadd.f32 %v6140_v50, %v3745_v15  ;;  %v4936_v38 = vpop.f32.mrf.mxu0  ;;  %v5064_v42 = vpop.f32.mrf.mxu1 }
 0x1d3   : > { %4200 = vst.msk [vmem:[%s6152_s17 + $0x40] sm:$0xf] %vm4183_vm2, %v4664_v53  ;;  %v3821_v39 = vadd.f32 %v6140_v50, %v3750_v37  ;;  %v3748_v2 = vmax.f32 %v3620_v9, %v3684_v8  ;;  %v3623_v17 = vmax.f32 %v5953_v48, %v4936_v38  ;;  %v3687_v34 = vmax.f32 %v5955_v49, %v5064_v42  ;;  %v6564_v42 = vld [vmem:[#allocation12_spill] sm:$0xff] }
 0x1d4   : > { %v4667_v54 = vpack.c.bf16 %v3882_v10, %v3882_v10  ;;  %v3880_v3 = vmax.f32 %v3816_v16, 0.0  ;;  %v2916_v40 = vpop.f32.mrf.mxu0  ;;  %v3428_v41 = vpop.f32.mrf.mxu1  ;;  %v6563_v10 = vld [vmem:[#allocation11_spill] sm:$0xff] }
 0x1d5   : > { %v3885_v55 = vmax.f32 %v3821_v39, 0.0  ;;  %v3819_v18 = vadd.f32 %v6140_v50, %v3748_v2  ;;  %v3751_v43 = vmax.f32 %v3623_v17, %v3687_v34  ;;  %v3621_v21 = vmax.f32 %v5961_v62, %v2916_v40  ;;  %v6565_v40 = vld [vmem:[#allocation13_spill] sm:$0xff] }
 0x1d6   : > { %4203 = vst.msk [vmem:[%s6152_s17 + $0x4c] sm:$0xf] %vm4183_vm2, %v4667_v54  ;;  %v4665_v19 = vpack.c.bf16 %v3880_v3, %v3880_v3  ;;  %v3685_v22 = vmax.f32 %v5963_v63, %v3428_v41  ;;  %v4939_v48 = vpop.f32.mrf.mxu0  ;;  %v5067_v4 = vpop.f32.mrf.mxu1 }
 0x1d7   : > { %v4670_v49 = vpack.c.bf16 %v3885_v55, %v3885_v55  ;;  %v3883_v44 = vmax.f32 %v3819_v18, 0.0  ;;  %v3822_v56 = vadd.f32 %v6140_v50, %v3751_v43  ;;  %v3626_v5 = vmax.f32 %v6555_v24, %v4939_v48  ;;  %v6566_v18 = vld [vmem:[#allocation14_spill] sm:$0xff] }
 0x1d8   : > { %4201 = vst.msk [vmem:[%s6152_s17 + $0x44] sm:$0xf] %vm4183_vm2, %v4665_v19  ;;  %v3749_v25 = vmax.f32 %v3621_v21, %v3685_v22  ;;  %v3690_v57 = vmax.f32 %v6556_v45, %v5067_v4  ;;  %v2929_v62 = vpop.f32.mrf.mxu0  ;;  %v3441_v46 = vpop.f32.mrf.mxu1  ;;  %v6567_v4 = vld [vmem:[#allocation15_spill] sm:$0xff] }
 0x1d9   : > { %4206 = vst.msk [vmem:[%s6152_s17 + $0x58] sm:$0xf] %vm4183_vm2, %v4670_v49  ;;  %v4668_v32 = vpack.c.bf16 %v3883_v44, %v3883_v44  ;;  %v3886_v63 = vmax.f32 %v3822_v56, 0.0  ;;  %v3624_v26 = vmax.f32 %v6557_v6, %v2929_v62  ;;  %v3688_v47 = vmax.f32 %v6558_v27, %v3441_v46  ;;  %v6568_v44 = vld [vmem:[#allocation16_spill] sm:$0xff]  ;;  %v6569_v46 = vld [vmem:[#allocation17_spill] sm:$0xff] }
 0x1da   : > { %v3820_v7 = vadd.f32 %v6140_v50, %v3749_v25  ;;  %v3754_v20 = vmax.f32 %v3626_v5, %v3690_v57  ;;  %v4940_v33 = vpop.f32.mrf.mxu0  ;;  %v5068_v58 = vpop.f32.mrf.mxu1 }
 0x1db   : > { %4204 = vst.msk [vmem:[%s6152_s17 + $0x50] sm:$0xf] %vm4183_vm2, %v4668_v32  ;;  %v4671_v59 = vpack.c.bf16 %v3886_v63, %v3886_v63  ;;  %v3752_v28 = vmax.f32 %v3624_v26, %v3688_v47  ;;  %v3627_v29 = vmax.f32 %v6559_v35, %v4940_v33  ;;  %v3691_v13 = vmax.f32 %v6560_v12, %v5068_v58  ;;  %v6570_v63 = vld [vmem:[#allocation18_spill] sm:$0xff]  ;;  %v6571_v58 = vld [vmem:[#allocation19_spill] sm:$0xff] }
 0x1dc   : > { %v3884_v51 = vmax.f32 %v3820_v7, 0.0  ;;  %v3825_v52 = vadd.f32 %v6140_v50, %v3754_v20  ;;  %v2932_v11 = vpop.f32.mrf.mxu0  ;;  %v3444_v30 = vpop.f32.mrf.mxu1 }
 0x1dd   : > { %4207 = vst.msk [vmem:[%s6152_s17 + $0x5c] sm:$0xf] %vm4183_vm2, %v4671_v59  ;;  %v3823_v60 = vadd.f32 %v6140_v50, %v3752_v28  ;;  %v3755_v61 = vmax.f32 %v3627_v29, %v3691_v13  ;;  %v3625_v0 = vmax.f32 %v6561_v31, %v2932_v11  ;;  %v3689_v23 = vmax.f32 %v6562_v14, %v3444_v30  ;;  %v6572_v28 = vld [vmem:[#allocation20_spill] sm:$0xff] }
 0x1de   : > { %v4669_v15 = vpack.c.bf16 %v3884_v51, %v3884_v51  ;;  %v3889_v36 = vmax.f32 %v3825_v52, 0.0  ;;  %v4943_v1 = vpop.f32.mrf.mxu0  ;;  %v5071_v53 = vpop.f32.mrf.mxu1 }
 0x1df   : > { %v3887_v37 = vmax.f32 %v3823_v60, 0.0  ;;  %v3826_v9 = vadd.f32 %v6140_v50, %v3755_v61  ;;  %v3753_v8 = vmax.f32 %v3625_v0, %v3689_v23  ;;  %v3630_v16 = vmax.f32 %v6563_v10, %v4943_v1  ;;  %v6573_v60 = vld [vmem:[#allocation21_spill] sm:$0xff]  ;;  %v6574_v0 = vld [vmem:[#allocation22_spill] sm:$0xff]  ;;  %v6576_v10 = vld [vmem:[#allocation24_spill] sm:$0xff] }
 0x1e0   : > { %4205 = vst.msk [vmem:[%s6152_s17 + $0x54] sm:$0xf] %vm4183_vm2, %v4669_v15  ;;  %v4674_v38 = vpack.c.bf16 %v3889_v36, %v3889_v36  ;;  %v3694_v39 = vmax.f32 %v6564_v42, %v5071_v53  ;;  %v2945_v2 = vpop.f32.mrf.mxu0  ;;  %v3457_v17 = vpop.f32.mrf.mxu1 }
 0x1e1   : > { %v4672_v34 = vpack.c.bf16 %v3887_v37, %v3887_v37  ;;  %v3890_v54 = vmax.f32 %v3826_v9, 0.0  ;;  %v3824_v3 = vadd.f32 %v6140_v50, %v3753_v8  ;;  %v3628_v41 = vmax.f32 %v6565_v40, %v2945_v2  ;;  %v6575_v37 = vld [vmem:[#allocation23_spill] sm:$0xff] }
 0x1e2   : > { %4210 = vst.msk [vmem:[%s6152_s17 + $0x68] sm:$0xf] %vm4183_vm2, %v4674_v38  ;;  %v3758_v55 = vmax.f32 %v3630_v16, %v3694_v39  ;;  %v3692_v43 = vmax.f32 %v6566_v18, %v3457_v17  ;;  %v4944_v21 = vpop.f32.mrf.mxu0  ;;  %v5072_v19 = vpop.f32.mrf.mxu1  ;;  %v6577_v17 = vld [vmem:[#allocation25_spill] sm:$0xff] }
 0x1e3   : > { %4208 = vst.msk [vmem:[%s6152_s17 + $0x60] sm:$0xf] %vm4183_vm2, %v4672_v34  ;;  %v4675_v22 = vpack.c.bf16 %v3890_v54, %v3890_v54  ;;  %v3888_v48 = vmax.f32 %v3824_v3, 0.0  ;;  %v3631_v49 = vmax.f32 %v6567_v4, %v4944_v21  ;;  %v3695_v56 = vmax.f32 %v6568_v44, %v5072_v19  ;;  %v6578_v54 = vld [vmem:[#allocation26_spill] sm:$0xff]  ;;  %v6579_v19 = vld [vmem:[#allocation27_spill] sm:$0xff] }
 0x1e4   : > { %v3829_v24 = vadd.f32 %v6140_v50, %v3758_v55  ;;  %v3756_v5 = vmax.f32 %v3628_v41, %v3692_v43  ;;  %v2948_v25 = vpop.f32.mrf.mxu0  ;;  %v3460_v45 = vpop.f32.mrf.mxu1 }
 0x1e5   : > { %4211 = vst.msk [vmem:[%s6152_s17 + $0x6c] sm:$0xf] %vm4183_vm2, %v4675_v22  ;;  %v4673_v57 = vpack.c.bf16 %v3888_v48, %v3888_v48  ;;  %v3759_v62 = vmax.f32 %v3631_v49, %v3695_v56  ;;  %v3629_v32 = vmax.f32 %v6569_v46, %v2948_v25  ;;  %v3693_v6 = vmax.f32 %v6570_v63, %v3460_v45  ;;  %v6580_v48 = vld [vmem:[#allocation28_spill] sm:$0xff]  ;;  %v6581_v45 = vld [vmem:[#allocation29_spill] sm:$0xff] }
 0x1e6   : > { %v3893_v26 = vmax.f32 %v3829_v24, 0.0  ;;  %v3827_v27 = vadd.f32 %v6140_v50, %v3756_v5  ;;  %v4947_v47 = vpop.f32.mrf.mxu0  ;;  %v5075_v7 = vpop.f32.mrf.mxu1 }
 0x1e7   : > { %4209 = vst.msk [vmem:[%s6152_s17 + $0x64] sm:$0xf] %vm4183_vm2, %v4673_v57  ;;  %v3830_v20 = vadd.f32 %v6140_v50, %v3759_v62  ;;  %v3757_v33 = vmax.f32 %v3629_v32, %v3693_v6  ;;  %v3634_v59 = vmax.f32 %v6571_v58, %v4947_v47  ;;  %v3698_v35 = vmax.f32 %v6572_v28, %v5075_v7  ;;  %v6582_v62 = vld [vmem:[#allocation30_spill] sm:$0xff] }
 0x1e8   : > { %v4678_v29 = vpack.c.bf16 %v3893_v26, %v3893_v26  ;;  %v3891_v12 = vmax.f32 %v3827_v27, 0.0  ;;  %v2961_v13 = vpop.f32.mrf.mxu0  ;;  %v3473_v51 = vpop.f32.mrf.mxu1 }
 0x1e9   : > { %v3894_v52 = vmax.f32 %v3830_v20, 0.0  ;;  %v3828_v11 = vadd.f32 %v6140_v50, %v3757_v33  ;;  %v3762_v30 = vmax.f32 %v3634_v59, %v3698_v35  ;;  %v3632_v61 = vmax.f32 %v6573_v60, %v2961_v13  ;;  %v6583_v20 = vld [vmem:[#allocation31_spill] sm:$0xff]  ;;  %v6584_v59 = vld [vmem:[#allocation32_spill] sm:$0xff]  ;;  %v6586_v60 = vld [vmem:[#allocation34_spill] sm:$0xff] }
 0x1ea   : > { %4214 = vst.msk [vmem:[%s6152_s17 + $0x78] sm:$0xf] %vm4183_vm2, %v4678_v29  ;;  %v4676_v31 = vpack.c.bf16 %v3891_v12, %v3891_v12  ;;  %v3696_v14 = vmax.f32 %v6574_v0, %v3473_v51  ;;  %v4948_v23 = vpop.f32.mrf.mxu0  ;;  %v5076_v15 = vpop.f32.mrf.mxu1 }
 0x1eb   : > { %v4679_v36 = vpack.c.bf16 %v3894_v52, %v3894_v52  ;;  %v3892_v1 = vmax.f32 %v3828_v11, 0.0  ;;  %v3833_v53 = vadd.f32 %v6140_v50, %v3762_v30  ;;  %v3635_v9 = vmax.f32 %v6575_v37, %v4948_v23  ;;  %v6585_v52 = vld [vmem:[#allocation33_spill] sm:$0xff] }
 0x1ec   : > { %4212 = vst.msk [vmem:[%s6152_s17 + $0x70] sm:$0xf] %vm4183_vm2, %v4676_v31  ;;  %v3760_v8 = vmax.f32 %v3632_v61, %v3696_v14  ;;  %v3699_v16 = vmax.f32 %v6576_v10, %v5076_v15  ;;  %v2964_v38 = vpop.f32.mrf.mxu0  ;;  %v3476_v42 = vpop.f32.mrf.mxu1  ;;  %v6587_v15 = vld [vmem:[#allocation35_spill] sm:$0xff] }
 0x1ed   : > { %4215 = vst.msk [vmem:[%s6152_s17 + $0x7c] sm:$0xf] %vm4183_vm2, %v4679_v36  ;;  %v4677_v39 = vpack.c.bf16 %v3892_v1, %v3892_v1  ;;  %v3897_v2 = vmax.f32 %v3833_v53, 0.0  ;;  %v3633_v34 = vmax.f32 %v6577_v17, %v2964_v38  ;;  %v3697_v3 = vmax.f32 %v6578_v54, %v3476_v42  ;;  %v6588_v1 = vld [vmem:[#allocation36_spill] sm:$0xff]  ;;  %v6589_v42 = vld [vmem:[#allocation37_spill] sm:$0xff] }
 0x1ee   : > { %v3831_v40 = vadd.f32 %v6140_v50, %v3760_v8  ;;  %v3763_v41 = vmax.f32 %v3635_v9, %v3699_v16  ;;  %v4951_v55 = vpop.f32.mrf.mxu0  ;;  %v5079_v18 = vpop.f32.mrf.mxu1 }
 0x1ef   : > { %4213 = vst.msk [vmem:[%s6152_s17 + $0x74] sm:$0xf] %vm4183_vm2, %v4677_v39  ;;  %v4682_v43 = vpack.c.bf16 %v3897_v2, %v3897_v2  ;;  %v3761_v21 = vmax.f32 %v3633_v34, %v3697_v3  ;;  %v3638_v22 = vmax.f32 %v6579_v19, %v4951_v55  ;;  %v3702_v4 = vmax.f32 %v6580_v48, %v5079_v18  ;;  %v6590_v2 = vld [vmem:[#allocation38_spill] sm:$0xff]  ;;  %v6591_v18 = vld [vmem:[#allocation39_spill] sm:$0xff] }
 0x1f0   : > { %v3895_v49 = vmax.f32 %v3831_v40, 0.0  ;;  %v3834_v44 = vadd.f32 %v6140_v50, %v3763_v41  ;;  %v2977_v56 = vpop.f32.mrf.mxu0  ;;  %v3489_v24 = vpop.f32.mrf.mxu1 }
 0x1f1   : > { %4218 = vst.msk [vmem:[%s6152_s17 + $0x88] sm:$0xf] %vm4183_vm2, %v4682_v43  ;;  %v3832_v5 = vadd.f32 %v6140_v50, %v3761_v21  ;;  %v3766_v25 = vmax.f32 %v3638_v22, %v3702_v4  ;;  %v3636_v57 = vmax.f32 %v6581_v45, %v2977_v56  ;;  %v3700_v46 = vmax.f32 %v6582_v62, %v3489_v24  ;;  %v6592_v21 = vld [vmem:[#allocation40_spill] sm:$0xff] }
 0x1f2   : > { %v4680_v32 = vpack.c.bf16 %v3895_v49, %v3895_v49  ;;  %v3898_v63 = vmax.f32 %v3834_v44, 0.0  ;;  %v4952_v6 = vpop.f32.mrf.mxu0  ;;  %v5080_v26 = vpop.f32.mrf.mxu1 }
 0x1f3   : > { %v3896_v27 = vmax.f32 %v3832_v5, 0.0  ;;  %v3837_v47 = vadd.f32 %v6140_v50, %v3766_v25  ;;  %v3764_v7 = vmax.f32 %v3636_v57, %v3700_v46  ;;  %v3639_v33 = vmax.f32 %v6583_v20, %v4952_v6  ;;  %v6593_v5 = vld [vmem:[#allocation41_spill] sm:$0xff]  ;;  %v6594_v57 = vld [vmem:[#allocation42_spill] sm:$0xff]  ;;  %v6596_v20 = vld [vmem:[#allocation44_spill] sm:$0xff] }
 0x1f4   : > { %4216 = vst.msk [vmem:[%s6152_s17 + $0x80] sm:$0xf] %vm4183_vm2, %v4680_v32  ;;  %v4683_v58 = vpack.c.bf16 %v3898_v63, %v3898_v63  ;;  %v3703_v28 = vmax.f32 %v6584_v59, %v5080_v26  ;;  %v2980_v35 = vpop.f32.mrf.mxu0  ;;  %v3492_v29 = vpop.f32.mrf.mxu1 }
 0x1f5   : > { %v4681_v12 = vpack.c.bf16 %v3896_v27, %v3896_v27  ;;  %v3901_v13 = vmax.f32 %v3837_v47, 0.0  ;;  %v3835_v51 = vadd.f32 %v6140_v50, %v3764_v7  ;;  %v3637_v11 = vmax.f32 %v6585_v52, %v2980_v35  ;;  %v6595_v27 = vld [vmem:[#allocation43_spill] sm:$0xff] }
 0x1f6   : > { %4219 = vst.msk [vmem:[%s6152_s17 + $0x8c] sm:$0xf] %vm4183_vm2, %v4683_v58  ;;  %v3767_v30 = vmax.f32 %v3639_v33, %v3703_v28  ;;  %v3701_v61 = vmax.f32 %v6586_v60, %v3492_v29  ;;  %v4955_v31 = vpop.f32.mrf.mxu0  ;;  %v5083_v0 = vpop.f32.mrf.mxu1  ;;  %v6597_v29 = vld [vmem:[#allocation45_spill] sm:$0xff] }
 0x1f7   : > { %4217 = vst.msk [vmem:[%s6152_s17 + $0x84] sm:$0xf] %vm4183_vm2, %v4681_v12  ;;  %v4686_v14 = vpack.c.bf16 %v3901_v13, %v3901_v13  ;;  %v3899_v23 = vmax.f32 %v3835_v51, 0.0  ;;  %v3642_v36 = vmax.f32 %v6587_v15, %v4955_v31  ;;  %v3706_v53 = vmax.f32 %v6588_v1, %v5083_v0  ;;  %v6598_v13 = vld [vmem:[#allocation46_spill] sm:$0xff]  ;;  %v6599_v0 = vld [vmem:[#allocation47_spill] sm:$0xff] }
 0x1f8   : > { %v3838_v37 = vadd.f32 %v6140_v50, %v3767_v30  ;;  %v3765_v9 = vmax.f32 %v3637_v11, %v3701_v61  ;;  %v2993_v8 = vpop.f32.mrf.mxu0  ;;  %v3505_v10 = vpop.f32.mrf.mxu1 }
 0x1f9   : > { %4222 = vst.msk [vmem:[%s6152_s17 + $0x98] sm:$0xf] %vm4183_vm2, %v4686_v14  ;;  %v4684_v16 = vpack.c.bf16 %v3899_v23, %v3899_v23  ;;  %v3770_v38 = vmax.f32 %v3642_v36, %v3706_v53  ;;  %v3640_v39 = vmax.f32 %v6589_v42, %v2993_v8  ;;  %v3704_v17 = vmax.f32 %v6590_v2, %v3505_v10  ;;  %v6600_v23 = vld [vmem:[#allocation48_spill] sm:$0xff]  ;;  %v6601_v10 = vld [vmem:[#allocation49_spill] sm:$0xff] }
 0x1fa   : > { %v3902_v34 = vmax.f32 %v3838_v37, 0.0  ;;  %v3836_v54 = vadd.f32 %v6140_v50, %v3765_v9  ;;  %v4956_v3 = vpop.f32.mrf.mxu0  ;;  %v5084_v40 = vpop.f32.mrf.mxu1 }
 0x1fb   : > { %4220 = vst.msk [vmem:[%s6152_s17 + $0x90] sm:$0xf] %vm4183_vm2, %v4684_v16  ;;  %v3841_v41 = vadd.f32 %v6140_v50, %v3770_v38  ;;  %v3768_v55 = vmax.f32 %v3640_v39, %v3704_v17  ;;  %v3643_v43 = vmax.f32 %v6591_v18, %v4956_v3  ;;  %v3707_v19 = vmax.f32 %v6592_v21, %v5084_v40  ;;  %v6602_v38 = vld [vmem:[#allocation50_spill] sm:$0xff] }
 0x1fc   : > { %v4687_v22 = vpack.c.bf16 %v3902_v34, %v3902_v34  ;;  %v3900_v48 = vmax.f32 %v3836_v54, 0.0  ;;  %v2996_v4 = vpop.f32.mrf.mxu0  ;;  %v3508_v49 = vpop.f32.mrf.mxu1 }
 0x1fd   : > { %v3905_v44 = vmax.f32 %v3841_v41, 0.0  ;;  %v3839_v56 = vadd.f32 %v6140_v50, %v3768_v55  ;;  %v3771_v24 = vmax.f32 %v3643_v43, %v3707_v19  ;;  %v3641_v25 = vmax.f32 %v6593_v5, %v2996_v4  ;;  %v6603_v41 = vld [vmem:[#allocation51_spill] sm:$0xff]  ;;  %v6604_v43 = vld [vmem:[#allocation52_spill] sm:$0xff]  ;;  %v6606_v5 = vld [vmem:[#allocation54_spill] sm:$0xff] }
 0x1fe   : > { %4223 = vst.msk [vmem:[%s6152_s17 + $0x9c] sm:$0xf] %vm4183_vm2, %v4687_v22  ;;  %v4685_v45 = vpack.c.bf16 %v3900_v48, %v3900_v48  ;;  %v3705_v62 = vmax.f32 %v6594_v57, %v3508_v49  ;;  %v4959_v46 = vpop.f32.mrf.mxu0  ;;  %v5087_v32 = vpop.f32.mrf.mxu1 }
 0x1ff   : > { %v4690_v63 = vpack.c.bf16 %v3905_v44, %v3905_v44  ;;  %v3903_v6 = vmax.f32 %v3839_v56, 0.0  ;;  %v3842_v26 = vadd.f32 %v6140_v50, %v3771_v24  ;;  %v3646_v47 = vmax.f32 %v6595_v27, %v4959_v46  ;;  %v6605_v44 = vld [vmem:[#allocation53_spill] sm:$0xff] }
 0x200   : > { %4221 = vst.msk [vmem:[%s6152_s17 + $0x94] sm:$0xf] %vm4183_vm2, %v4685_v45  ;;  %v3769_v7 = vmax.f32 %v3641_v25, %v3705_v62  ;;  %v3710_v33 = vmax.f32 %v6596_v20, %v5087_v32  ;;  %v3009_v58 = vpop.f32.mrf.mxu0  ;;  %v3521_v59 = vpop.f32.mrf.mxu1  ;;  %v6607_v32 = vld [vmem:[#allocation55_spill] sm:$0xff] }
 0x201   : > { %4226 = vst.msk [vmem:[%s6152_s17 + $0xa8] sm:$0xf] %vm4183_vm2, %v4690_v63  ;;  %v4688_v28 = vpack.c.bf16 %v3903_v6, %v3903_v6  ;;  %v3906_v35 = vmax.f32 %v3842_v26, 0.0  ;;  %v3644_v12 = vmax.f32 %v6597_v29, %v3009_v58  ;;  %v3708_v51 = vmax.f32 %v6598_v13, %v3521_v59  ;;  %v6608_v6 = vld [vmem:[#allocation56_spill] sm:$0xff]  ;;  %v6609_v59 = vld [vmem:[#allocation57_spill] sm:$0xff] }
 0x202   : > { %v3840_v52 = vadd.f32 %v6140_v50, %v3769_v7  ;;  %v3774_v11 = vmax.f32 %v3646_v47, %v3710_v33  ;;  %v4960_v30 = vpop.f32.mrf.mxu0  ;;  %v5088_v60 = vpop.f32.mrf.mxu1 }
 0x203   : > { %4224 = vst.msk [vmem:[%s6152_s17 + $0xa0] sm:$0xf] %vm4183_vm2, %v4688_v28  ;;  %v4691_v61 = vpack.c.bf16 %v3906_v35, %v3906_v35  ;;  %v3772_v31 = vmax.f32 %v3644_v12, %v3708_v51  ;;  %v3647_v14 = vmax.f32 %v6599_v0, %v4960_v30  ;;  %v3711_v15 = vmax.f32 %v6600_v23, %v5088_v60  ;;  %v6610_v35 = vld [vmem:[#allocation58_spill] sm:$0xff]  ;;  %v6611_v60 = vld [vmem:[#allocation59_spill] sm:$0xff] }
 0x204   : > { %v3904_v36 = vmax.f32 %v3840_v52, 0.0  ;;  %v3845_v1 = vadd.f32 %v6140_v50, %v3774_v11  ;;  %v3012_v53 = vpop.f32.mrf.mxu0  ;;  %v3524_v37 = vpop.f32.mrf.mxu1 }
 0x205   : > { %4227 = vst.msk [vmem:[%s6152_s17 + $0xac] sm:$0xf] %vm4183_vm2, %v4691_v61  ;;  %v3843_v9 = vadd.f32 %v6140_v50, %v3772_v31  ;;  %v3775_v8 = vmax.f32 %v3647_v14, %v3711_v15  ;;  %v3645_v16 = vmax.f32 %v6601_v10, %v3012_v53  ;;  %v3709_v42 = vmax.f32 %v6602_v38, %v3524_v37  ;;  %v6612_v31 = vld [vmem:[#allocation60_spill] sm:$0xff] }
 0x206   : > { %v4689_v39 = vpack.c.bf16 %v3904_v36, %v3904_v36  ;;  %v3909_v2 = vmax.f32 %v3845_v1, 0.0  ;;  %v4963_v17 = vpop.f32.mrf.mxu0  ;;  %v5091_v34 = vpop.f32.mrf.mxu1 }
 0x207   : > { %v3907_v54 = vmax.f32 %v3843_v9, 0.0  ;;  %v3846_v3 = vadd.f32 %v6140_v50, %v3775_v8  ;;  %v3773_v40 = vmax.f32 %v3645_v16, %v3709_v42  ;;  %v3650_v55 = vmax.f32 %v6603_v41, %v4963_v17  ;;  %v6613_v9 = vld [vmem:[#allocation61_spill] sm:$0xff]  ;;  %v6614_v16 = vld [vmem:[#allocation62_spill] sm:$0xff]  ;;  %v6616_v41 = vld [vmem:[#allocation64_spill] sm:$0xff] }
 0x208   : > { %4225 = vst.msk [vmem:[%s6152_s17 + $0xa4] sm:$0xf] %vm4183_vm2, %v4689_v39  ;;  %v4694_v18 = vpack.c.bf16 %v3909_v2, %v3909_v2  ;;  %v3714_v21 = vmax.f32 %v6604_v43, %v5091_v34  ;;  %v3025_v19 = vpop.f32.mrf.mxu0  ;;  %v3537_v22 = vpop.f32.mrf.mxu1 }
 0x209   : > { %v4692_v48 = vpack.c.bf16 %v3907_v54, %v3907_v54  ;;  %v3910_v4 = vmax.f32 %v3846_v3, 0.0  ;;  %v3844_v49 = vadd.f32 %v6140_v50, %v3773_v40  ;;  %v3648_v56 = vmax.f32 %v6605_v44, %v3025_v19  ;;  %v6615_v54 = vld [vmem:[#allocation63_spill] sm:$0xff] }
 0x20a   : > { %4230 = vst.msk [vmem:[%s6152_s17 + $0xb8] sm:$0xf] %vm4183_vm2, %v4694_v18  ;;  %v3778_v24 = vmax.f32 %v3650_v55, %v3714_v21  ;;  %v3712_v25 = vmax.f32 %v6606_v5, %v3537_v22  ;;  %v4964_v45 = vpop.f32.mrf.mxu0  ;;  %v5092_v57 = vpop.f32.mrf.mxu1  ;;  %v6617_v22 = vld [vmem:[#allocation65_spill] sm:$0xff] }
 0x20b   : > { %4228 = vst.msk [vmem:[%s6152_s17 + $0xb0] sm:$0xf] %vm4183_vm2, %v4692_v48  ;;  %v4695_v62 = vpack.c.bf16 %v3910_v4, %v3910_v4  ;;  %v3908_v46 = vmax.f32 %v3844_v49, 0.0  ;;  %v3651_v63 = vmax.f32 %v6607_v32, %v4964_v45  ;;  %v3715_v26 = vmax.f32 %v6608_v6, %v5092_v57  ;;  %v6618_v4 = vld [vmem:[#allocation66_spill] sm:$0xff]  ;;  %v6619_v57 = vld [vmem:[#allocation67_spill] sm:$0xff] }
 0x20c   : > { %v3849_v27 = vadd.f32 %v6140_v50, %v3778_v24  ;;  %v3776_v47 = vmax.f32 %v3648_v56, %v3712_v25  ;;  %v3028_v7 = vpop.f32.mrf.mxu0  ;;  %v3540_v20 = vpop.f32.mrf.mxu1 }
 0x20d   : > { %4231 = vst.msk [vmem:[%s6152_s17 + $0xbc] sm:$0xf] %vm4183_vm2, %v4695_v62  ;;  %v4693_v33 = vpack.c.bf16 %v3908_v46, %v3908_v46  ;;  %v3779_v58 = vmax.f32 %v3651_v63, %v3715_v26  ;;  %v3649_v28 = vmax.f32 %v6609_v59, %v3028_v7  ;;  %v3713_v29 = vmax.f32 %v6610_v35, %v3540_v20  ;;  %v6620_v46 = vld [vmem:[#allocation68_spill] sm:$0xff]  ;;  %v6621_v20 = vld [vmem:[#allocation69_spill] sm:$0xff] }
 0x20e   : > { %v3913_v12 = vmax.f32 %v3849_v27, 0.0  ;;  %v3847_v13 = vadd.f32 %v6140_v50, %v3776_v47  ;;  %v4967_v51 = vpop.f32.mrf.mxu0  ;;  %v5095_v52 = vpop.f32.mrf.mxu1 }
 0x20f   : > { %4229 = vst.msk [vmem:[%s6152_s17 + $0xb4] sm:$0xf] %vm4183_vm2, %v4693_v33  ;;  %v3850_v11 = vadd.f32 %v6140_v50, %v3779_v58  ;;  %v3777_v30 = vmax.f32 %v3649_v28, %v3713_v29  ;;  %v3654_v61 = vmax.f32 %v6611_v60, %v4967_v51  ;;  %v3718_v0 = vmax.f32 %v6612_v31, %v5095_v52  ;;  %v6622_v58 = vld [vmem:[#allocation70_spill] sm:$0xff] }
 0x210   : > { %v4698_v14 = vpack.c.bf16 %v3913_v12, %v3913_v12  ;;  %v3911_v23 = vmax.f32 %v3847_v13, 0.0  ;;  %v3041_v15 = vpop.f32.mrf.mxu0  ;;  %v3553_v36 = vpop.f32.mrf.mxu1 }
 0x211   : > { %v3914_v1 = vmax.f32 %v3850_v11, 0.0  ;;  %v3848_v53 = vadd.f32 %v6140_v50, %v3777_v30  ;;  %v3782_v37 = vmax.f32 %v3654_v61, %v3718_v0  ;;  %v3652_v8 = vmax.f32 %v6613_v9, %v3041_v15  ;;  %v6623_v11 = vld [vmem:[#allocation71_spill] sm:$0xff]  ;;  %v6624_v61 = vld [vmem:[#allocation72_spill] sm:$0xff]  ;;  %v6626_v9 = vld [vmem:[#allocation74_spill] sm:$0xff] }
 0x212   : > { %4234 = vst.msk [vmem:[%s6152_s17 + $0xc8] sm:$0xf] %vm4183_vm2, %v4698_v14  ;;  %v4696_v10 = vpack.c.bf16 %v3911_v23, %v3911_v23  ;;  %v3716_v38 = vmax.f32 %v6614_v16, %v3553_v36  ;;  %v4968_v42 = vpop.f32.mrf.mxu0  ;;  %v5096_v39 = vpop.f32.mrf.mxu1  ;;  %v5268_v36 = vld [vmem:[%s6473_s2] ss:$0 sm:$0xff] }
 0x213   : > { %v4699_v2 = vpack.c.bf16 %v3914_v1, %v3914_v1  ;;  %v3912_v17 = vmax.f32 %v3848_v53, 0.0  ;;  %v3853_v34 = vadd.f32 %v6140_v50, %v3782_v37  ;;  %v3655_v3 = vmax.f32 %v6615_v54, %v4968_v42  ;;  %v6625_v53 = vld [vmem:[#allocation73_spill] sm:$0xff] }
 0x214   : > { %4232 = vst.msk [vmem:[%s6152_s17 + $0xc0] sm:$0xf] %vm4183_vm2, %v4696_v10  ;;  %v3780_v40 = vmax.f32 %v3652_v8, %v3716_v38  ;;  %v3719_v55 = vmax.f32 %v6616_v41, %v5096_v39  ;;  %v3044_v18 = vpop.f32.mrf.mxu0  ;;  %v3556_v43 = vpop.f32.mrf.mxu1  ;;  %v6627_v39 = vld [vmem:[#allocation75_spill] sm:$0xff] }
 0x215   : > { %4235 = vst.msk [vmem:[%s6152_s17 + $0xcc] sm:$0xf] %vm4183_vm2, %v4699_v2  ;;  %v4697_v21 = vpack.c.bf16 %v3912_v17, %v3912_v17  ;;  %v3917_v19 = vmax.f32 %v3853_v34, 0.0  ;;  %v3653_v48 = vmax.f32 %v6617_v22, %v3044_v18  ;;  %v3717_v49 = vmax.f32 %v6618_v4, %v3556_v43  ;;  %v6628_v17 = vld [vmem:[#allocation76_spill] sm:$0xff]  ;;  %v6629_v43 = vld [vmem:[#allocation77_spill] sm:$0xff] }
 0x216   : > { %v3851_v44 = vadd.f32 %v6140_v50, %v3780_v40  ;;  %v3783_v56 = vmax.f32 %v3655_v3, %v3719_v55  ;;  %v4971_v24 = vpop.f32.mrf.mxu0  ;;  %v5099_v5 = vpop.f32.mrf.mxu1 }
 0x217   : > { %4233 = vst.msk [vmem:[%s6152_s17 + $0xc4] sm:$0xf] %vm4183_vm2, %v4697_v21  ;;  %v4702_v25 = vpack.c.bf16 %v3917_v19, %v3917_v19  ;;  %v3781_v45 = vmax.f32 %v3653_v48, %v3717_v49  ;;  %v3658_v62 = vmax.f32 %v6619_v57, %v4971_v24  ;;  %v3722_v32 = vmax.f32 %v6620_v46, %v5099_v5  ;;  %v6630_v19 = vld [vmem:[#allocation78_spill] sm:$0xff]  ;;  %v6631_v5 = vld [vmem:[#allocation79_spill] sm:$0xff] }
 0x218   : > { %v3915_v63 = vmax.f32 %v3851_v44, 0.0  ;;  %v3854_v6 = vadd.f32 %v6140_v50, %v3783_v56  ;;  %v3057_v26 = vpop.f32.mrf.mxu0  ;;  %v3569_v27 = vpop.f32.mrf.mxu1 }
 0x219   : > { %4238 = vst.msk [vmem:[%s6152_s17 + $0xd8] sm:$0xf] %vm4183_vm2, %v4702_v25  ;;  %v3852_v47 = vadd.f32 %v6140_v50, %v3781_v45  ;;  %v3786_v7 = vmax.f32 %v3658_v62, %v3722_v32  ;;  %v3656_v33 = vmax.f32 %v6621_v20, %v3057_v26  ;;  %v3720_v59 = vmax.f32 %v6622_v58, %v3569_v27  ;;  %v6632_v45 = vld [vmem:[#allocation80_spill] sm:$0xff] }
 0x21a   : > { %v4700_v28 = vpack.c.bf16 %v3915_v63, %v3915_v63  ;;  %v3918_v35 = vmax.f32 %v3854_v6, 0.0  ;;  %v4972_v29 = vpop.f32.mrf.mxu0  ;;  %v5100_v12 = vpop.f32.mrf.mxu1 }
 0x21b   : > { %v3916_v13 = vmax.f32 %v3852_v47, 0.0  ;;  %v3857_v51 = vadd.f32 %v6140_v50, %v3786_v7  ;;  %v3784_v52 = vmax.f32 %v3656_v33, %v3720_v59  ;;  %v3659_v30 = vmax.f32 %v6623_v11, %v4972_v29  ;;  %v6633_v47 = vld [vmem:[#allocation81_spill] sm:$0xff]  ;;  %v6634_v33 = vld [vmem:[#allocation82_spill] sm:$0xff] }
 0x21c   : > { %4236 = vst.msk [vmem:[%s6152_s17 + $0xd0] sm:$0xf] %vm4183_vm2, %v4700_v28  ;;  %v4703_v60 = vpack.c.bf16 %v3918_v35, %v3918_v35  ;;  %v3723_v31 = vmax.f32 %v6624_v61, %v5100_v12  ;;  %v3060_v0 = vpop.f32.mrf.mxu0  ;;  %v3572_v14 = vpop.f32.mrf.mxu1 }
 0x21d   : > { %v4701_v23 = vpack.c.bf16 %v3916_v13, %v3916_v13  ;;  %v3921_v15 = vmax.f32 %v3857_v51, 0.0  ;;  %v3855_v1 = vadd.f32 %v5268_v36, %v3784_v52  ;;  %v3657_v50 = vmax.f32 %v6625_v53, %v3060_v0 }
 0x21e   : > { %4239 = vst.msk [vmem:[%s6152_s17 + $0xdc] sm:$0xf] %vm4183_vm2, %v4703_v60  ;;  %v3787_v37 = vmax.f32 %v3659_v30, %v3723_v31  ;;  %v3721_v8 = vmax.f32 %v6626_v9, %v3572_v14  ;;  %v4975_v10 = vpop.f32.mrf.mxu0  ;;  %v5103_v16 = vpop.f32.mrf.mxu1 }
 0x21f   : > { %4237 = vst.msk [vmem:[%s6152_s17 + $0xd4] sm:$0xf] %vm4183_vm2, %v4701_v23  ;;  %v4706_v38 = vpack.c.bf16 %v3921_v15, %v3921_v15  ;;  %v3919_v42 = vmax.f32 %v3855_v1, 0.0  ;;  %v3662_v2 = vmax.f32 %v6627_v39, %v4975_v10  ;;  %v3726_v34 = vmax.f32 %v6628_v17, %v5103_v16 }
 0x220   : > { %v3858_v54 = vadd.f32 %v5268_v36, %v3787_v37  ;;  %v3785_v3 = vmax.f32 %v3657_v50, %v3721_v8  ;;  %v3073_v40 = vpop.f32.mrf.mxu0  ;;  %v3585_v41 = vpop.f32.mrf.mxu1 }
 0x221   : > { %4242 = vst.msk [vmem:[%s6152_s17 + $0xe8] sm:$0xf] %vm4183_vm2, %v4706_v38  ;;  %v4704_v55 = vpack.c.bf16 %v3919_v42, %v3919_v42  ;;  %v3790_v18 = vmax.f32 %v3662_v2, %v3726_v34  ;;  %v3660_v21 = vmax.f32 %v6629_v43, %v3073_v40  ;;  %v3724_v22 = vmax.f32 %v6630_v19, %v3585_v41 }
 0x222   : > { %v3922_v48 = vmax.f32 %v3858_v54, 0.0  ;;  %v3856_v4 = vadd.f32 %v5268_v36, %v3785_v3  ;;  %v4976_v49 = vpop.f32.mrf.mxu0  ;;  %v5104_v44 = vpop.f32.mrf.mxu1 }
 0x223   : > { %4240 = vst.msk [vmem:[%s6152_s17 + $0xe0] sm:$0xf] %vm4183_vm2, %v4704_v55  ;;  %v3861_v56 = vadd.f32 %v5268_v36, %v3790_v18  ;;  %v3788_v24 = vmax.f32 %v3660_v21, %v3724_v22  ;;  %v3663_v25 = vmax.f32 %v6631_v5, %v4976_v49  ;;  %v3727_v57 = vmax.f32 %v6632_v45, %v5104_v44 }
 0x224   : > { %v4707_v62 = vpack.c.bf16 %v3922_v48, %v3922_v48  ;;  %v3920_v46 = vmax.f32 %v3856_v4, 0.0  ;;  %v3076_v32 = vpop.f32.mrf.mxu0  ;;  %v3588_v63 = vpop.f32.mrf.mxu1 }
 0x225   : > { %v3925_v6 = vmax.f32 %v3861_v56, 0.0  ;;  %v3859_v26 = vadd.f32 %v5268_v36, %v3788_v24  ;;  %v3791_v27 = vmax.f32 %v3663_v25, %v3727_v57  ;;  %v3661_v7 = vmax.f32 %v6633_v47, %v3076_v32 }
 0x226   : > { %4243 = vst.msk [vmem:[%s6152_s17 + $0xec] sm:$0xf] %vm4183_vm2, %v4707_v62  ;;  %v4705_v20 = vpack.c.bf16 %v3920_v46, %v3920_v46  ;;  %v3725_v58 = vmax.f32 %v6634_v33, %v3588_v63 }
 0x227   : > { %v4710_v59 = vpack.c.bf16 %v3925_v6, %v3925_v6  ;;  %v3923_v28 = vmax.f32 %v3859_v26, 0.0  ;;  %v3862_v35 = vadd.f32 %v5268_v36, %v3791_v27 }
 0x228   : > { %4241 = vst.msk [vmem:[%s6152_s17 + $0xe4] sm:$0xf] %vm4183_vm2, %v4705_v20  ;;  %v3789_v29 = vmax.f32 %v3661_v7, %v3725_v58 }
 0x229   : > { %4246 = vst.msk [vmem:[%s6152_s17 + $0xf8] sm:$0xf] %vm4183_vm2, %v4710_v59  ;;  %v4708_v12 = vpack.c.bf16 %v3923_v28, %v3923_v28  ;;  %v3926_v13 = vmax.f32 %v3862_v35, 0.0 }
 0x22a   : > { %v3860_v51 = vadd.f32 %v5268_v36, %v3789_v29 }
 0x22b   : > { %4244 = vst.msk [vmem:[%s6152_s17 + $0xf0] sm:$0xf] %vm4183_vm2, %v4708_v12  ;;  %v4711_v52 = vpack.c.bf16 %v3926_v13, %v3926_v13 }
 0x22c   : > { %v3924_v11 = vmax.f32 %v3860_v51, 0.0 }
 0x22d   : > { %4247 = vst.msk [vmem:[%s6152_s17 + $0xfc] sm:$0xf] %vm4183_vm2, %v4711_v52 }
 0x22e   : > { %v4709_v30 = vpack.c.bf16 %v3924_v11, %v3924_v11 }
 0x230   : > { %4245 = vst.msk [vmem:[%s6152_s17 + $0xf4] sm:$0xf] %vm4183_vm2, %v4709_v30 }
 0x231 PF: > { %p10_p9 = scmp.ge.s32.totalorder %s5330_s16, 4   ;;  %s6635_s12 = smov %s5287_s13 }
 0x232   : > { %s6636_s13 = smov %s5339_s19  ;;  %s6637_s14 = smov %s5330_s16 }
 0x233   :  { %12 = sbr.rel (!%p10_p9) target bundleno = 2 (0x2), region = 108 }

// kernel: ei_net_forward.4
= control target key start
LH: loop header
LB: loop body
LE: loop exit
PB: predicated region body
PF: predicated region fallthrough
CT: control target
= control target key end

     0   :  { %vm1431_vm0 = vcmask 125952   ;;  %s2502_s1 = inlined_call_operand.vmem [shape: bf16[128,16], index: 1, kind: input, shape index: {}]   ;;  %s2503_s0 = inlined_call_operand.vmem [shape: bf16[4,256,128], index: 0, kind: input, shape index: {}]   ;;  %s2504_s2 = inlined_call_operand.vmem [shape: f32[1,16], index: 2, kind: input, shape index: {}]   ;;  %s2505_s3 = inlined_call_operand.vmem [shape: bf16[256,16], index: 3, kind: output, shape index: {}]  }
   0x1   :  { %v1837_v0 = vld [vmem:[%s2502_s1 + $0x38] sm:$0xff]   ;;  %v1838_v1 = vld [vmem:[%s2502_s1 + $0x30] sm:$0xff]   ;;  %v1839_v2 = vld [vmem:[%s2502_s1 + $0x28] sm:$0xff]  }
   0x2   :  { %1677 = vmatprep.subr.bf16.mxu0 %v1837_v0  ;;  %1821 = vmatprep.subr.bf16.mxu1 %v1837_v0  ;;  %v1840_v3 = vld [vmem:[%s2502_s1 + $0x20] sm:$0xff]   ;;  %v1841_v6 = vld [vmem:[%s2502_s1 + $0x18] sm:$0xff]   ;;  %v1842_v7 = vld [vmem:[%s2502_s1 + $0x10] sm:$0xff]  }
   0x3   :  { %1678 = vmatpush3.bf16.msra.mxu0 %v1837_v0  ;;  %1829 = vmatpush3.bf16.msra.mxu1 %v1837_v0  ;;  %v1845_v4 = vld [vmem:[%s2503_s0] sm:$0xff]   ;;  %v1843_v8 = vld [vmem:[%s2502_s1 + $0x8] sm:$0xff]   ;;  %v1849_v12 = vld [vmem:[%s2503_s0 + $0x10] sm:$0xff]  }
   0x4   :  { %1679 = vmatprep.subr.bf16.mxu0 %v1838_v1  ;;  %1822 = vmatprep.subr.bf16.mxu1 %v1838_v1  ;;  %v1846_v5 = vld [vmem:[%s2503_s0 + $0x100] sm:$0xff]   ;;  %v1847_v10 = vld [vmem:[%s2503_s0 + $0x8] sm:$0xff]   ;;  %v1850_v13 = vld [vmem:[%s2503_s0 + $0x110] sm:$0xff]  }
   0x5   :  { %1693 = vmatprep.mubr.bf16.mxu0 %v1845_v4  ;;  %1757 = vmatprep.mubr.bf16.mxu1 %v1846_v5  ;;  %v1844_v9 = vld [vmem:[%s2502_s1] sm:$0xff]   ;;  %v1848_v11 = vld [vmem:[%s2503_s0 + $0x108] sm:$0xff]   ;;  %v1851_v14 = vld [vmem:[%s2503_s0 + $0x18] sm:$0xff]  }
   0x6   :  { %v1852_v15 = vld [vmem:[%s2503_s0 + $0x118] sm:$0xff]   ;;  %v1853_v16 = vld [vmem:[%s2503_s0 + $0x20] sm:$0xff]   ;;  %v1855_v18 = vld [vmem:[%s2503_s0 + $0x28] sm:$0xff]  }
   0x7   :  { %1680 = vmatpush3.bf16.msra.mxu0 %v1838_v1  ;;  %1830 = vmatpush3.bf16.msra.mxu1 %v1838_v1  ;;  %v1854_v17 = vld [vmem:[%s2503_s0 + $0x120] sm:$0xff]   ;;  %v1856_v19 = vld [vmem:[%s2503_s0 + $0x128] sm:$0xff]   ;;  %v1857_v20 = vld [vmem:[%s2503_s0 + $0x30] sm:$0xff]  }
   0x8   :  { %1681 = vmatprep.subr.bf16.mxu0 %v1839_v2  ;;  %1823 = vmatprep.subr.bf16.mxu1 %v1839_v2  ;;  %v1858_v21 = vld [vmem:[%s2503_s0 + $0x130] sm:$0xff]   ;;  %v1859_v22 = vld [vmem:[%s2503_s0 + $0x38] sm:$0xff]   ;;  %v1861_v24 = vld [vmem:[%s2503_s0 + $0x40] sm:$0xff]  }
   0x9   :  { %v1860_v23 = vld [vmem:[%s2503_s0 + $0x138] sm:$0xff]   ;;  %v1862_v25 = vld [vmem:[%s2503_s0 + $0x140] sm:$0xff]   ;;  %v1863_v26 = vld [vmem:[%s2503_s0 + $0x48] sm:$0xff]  }
   0xa   :  { %v1864_v27 = vld [vmem:[%s2503_s0 + $0x148] sm:$0xff]   ;;  %v1865_v28 = vld [vmem:[%s2503_s0 + $0x50] sm:$0xff]   ;;  %v1867_v30 = vld [vmem:[%s2503_s0 + $0x58] sm:$0xff]  }
   0xb   :  { %1682 = vmatpush3.bf16.msra.mxu0 %v1839_v2  ;;  %1831 = vmatpush3.bf16.msra.mxu1 %v1839_v2  ;;  %v1866_v29 = vld [vmem:[%s2503_s0 + $0x150] sm:$0xff]   ;;  %v1868_v31 = vld [vmem:[%s2503_s0 + $0x158] sm:$0xff]   ;;  %v1869_v32 = vld [vmem:[%s2503_s0 + $0x60] sm:$0xff]  }
   0xc   :  { %1683 = vmatprep.subr.bf16.mxu0 %v1840_v3  ;;  %1824 = vmatprep.subr.bf16.mxu1 %v1840_v3  ;;  %v1870_v33 = vld [vmem:[%s2503_s0 + $0x160] sm:$0xff]   ;;  %v1871_v34 = vld [vmem:[%s2503_s0 + $0x68] sm:$0xff]   ;;  %v1873_v36 = vld [vmem:[%s2503_s0 + $0x70] sm:$0xff]  }
   0xd   :  { %v1872_v35 = vld [vmem:[%s2503_s0 + $0x168] sm:$0xff]   ;;  %v1874_v37 = vld [vmem:[%s2503_s0 + $0x170] sm:$0xff]   ;;  %v1875_v38 = vld [vmem:[%s2503_s0 + $0x78] sm:$0xff]  }
   0xe   :  { %v1876_v39 = vld [vmem:[%s2503_s0 + $0x178] sm:$0xff]   ;;  %v1877_v40 = vld [vmem:[%s2503_s0 + $0x80] sm:$0xff]   ;;  %v1879_v42 = vld [vmem:[%s2503_s0 + $0x88] sm:$0xff]  }
   0xf   :  { %1684 = vmatpush3.bf16.msra.mxu0 %v1840_v3  ;;  %1832 = vmatpush3.bf16.msra.mxu1 %v1840_v3  ;;  %v1878_v41 = vld [vmem:[%s2503_s0 + $0x180] sm:$0xff]   ;;  %v1880_v43 = vld [vmem:[%s2503_s0 + $0x188] sm:$0xff]   ;;  %v1881_v44 = vld [vmem:[%s2503_s0 + $0x90] sm:$0xff]  }
  0x10   :  { %1685 = vmatprep.subr.bf16.mxu0 %v1841_v6  ;;  %1825 = vmatprep.subr.bf16.mxu1 %v1841_v6  ;;  %v1882_v45 = vld [vmem:[%s2503_s0 + $0x190] sm:$0xff]   ;;  %v1883_v46 = vld [vmem:[%s2503_s0 + $0x98] sm:$0xff]   ;;  %v1885_v48 = vld [vmem:[%s2503_s0 + $0xa0] sm:$0xff]  }
  0x11   :  { %v1884_v47 = vld [vmem:[%s2503_s0 + $0x198] sm:$0xff]   ;;  %v1886_v49 = vld [vmem:[%s2503_s0 + $0x1a0] sm:$0xff]   ;;  %v1887_v50 = vld [vmem:[%s2503_s0 + $0xa8] sm:$0xff]  }
  0x12   :  { %v1888_v51 = vld [vmem:[%s2503_s0 + $0x1a8] sm:$0xff]   ;;  %v1889_v52 = vld [vmem:[%s2503_s0 + $0xb0] sm:$0xff]   ;;  %v1891_v54 = vld [vmem:[%s2503_s0 + $0xb8] sm:$0xff]  }
  0x13   :  { %1686 = vmatpush3.bf16.msra.mxu0 %v1841_v6  ;;  %1833 = vmatpush3.bf16.msra.mxu1 %v1841_v6  ;;  %v1890_v53 = vld [vmem:[%s2503_s0 + $0x1b0] sm:$0xff]   ;;  %v1892_v55 = vld [vmem:[%s2503_s0 + $0x1b8] sm:$0xff]   ;;  %v1893_v56 = vld [vmem:[%s2503_s0 + $0xc0] sm:$0xff]  }
  0x14   :  { %1687 = vmatprep.subr.bf16.mxu0 %v1842_v7  ;;  %1826 = vmatprep.subr.bf16.mxu1 %v1842_v7  ;;  %v1894_v57 = vld [vmem:[%s2503_s0 + $0x1c0] sm:$0xff]   ;;  %v1895_v58 = vld [vmem:[%s2503_s0 + $0xc8] sm:$0xff]   ;;  %v1897_v60 = vld [vmem:[%s2503_s0 + $0xd0] sm:$0xff]  }
  0x15   :  { %v1896_v59 = vld [vmem:[%s2503_s0 + $0x1c8] sm:$0xff]   ;;  %v1898_v61 = vld [vmem:[%s2503_s0 + $0x1d0] sm:$0xff]   ;;  %v1899_v62 = vld [vmem:[%s2503_s0 + $0xd8] sm:$0xff]  }
  0x16   :  { %v1900_v63 = vld [vmem:[%s2503_s0 + $0x1d8] sm:$0xff]   ;;  %v1901_v0 = vld [vmem:[%s2503_s0 + $0xe0] sm:$0xff]   ;;  %v1903_v2 = vld [vmem:[%s2503_s0 + $0xe8] sm:$0xff]  }
  0x17   :  { %1688 = vmatpush3.bf16.msra.mxu0 %v1842_v7  ;;  %1834 = vmatpush3.bf16.msra.mxu1 %v1842_v7  ;;  %v1902_v1 = vld [vmem:[%s2503_s0 + $0x1e0] sm:$0xff]   ;;  %v1904_v3 = vld [vmem:[%s2503_s0 + $0x1e8] sm:$0xff]   ;;  %v1905_v4 = vld [vmem:[%s2503_s0 + $0xf0] sm:$0xff]  }
  0x18   :  { %1689 = vmatprep.subr.bf16.mxu0 %v1843_v8  ;;  %1827 = vmatprep.subr.bf16.mxu1 %v1843_v8  ;;  %v1906_v5 = vld [vmem:[%s2503_s0 + $0x1f0] sm:$0xff]   ;;  %v1907_v6 = vld [vmem:[%s2503_s0 + $0xf8] sm:$0xff]  }
  0x19   :  { %v1908_v7 = vld [vmem:[%s2503_s0 + $0x1f8] sm:$0xff]  }
  0x1b   :  { %1690 = vmatpush3.bf16.msra.mxu0 %v1843_v8  ;;  %1835 = vmatpush3.bf16.msra.mxu1 %v1843_v8 }
  0x1c   :  { %1691 = vmatprep.subr.bf16.mxu0 %v1844_v9  ;;  %1828 = vmatprep.subr.bf16.mxu1 %v1844_v9 }
  0x1f   :  { %1692 = vmatpush3.bf16.msra.mxu0 %v1844_v9  ;;  %1836 = vmatpush3.bf16.msra.mxu1 %v1844_v9 }
  0x22   :  { %1694 = vmatmul.mubr.bf16.vlgmr.msra.gmra.mxu0 %v1847_v10  ;;  %1758 = vmatmul.mubr.bf16.vlgmr.msra.gmra.mxu1 %v1848_v11 }
  0x23   :  { %1697 = vmatprep.mubr.bf16.mxu0 %v1849_v12  ;;  %1761 = vmatprep.mubr.bf16.mxu1 %v1850_v13 }
  0x2a   :  { %1698 = vmatmul.mubr.bf16.gmra.mxu0 %v1851_v14  ;;  %1762 = vmatmul.mubr.bf16.gmra.mxu1 %v1852_v15 }
  0x2b   :  { %1701 = vmatprep.mubr.bf16.mxu0 %v1853_v16  ;;  %1765 = vmatprep.mubr.bf16.mxu1 %v1854_v17 }
  0x32   :  { %1702 = vmatmul.mubr.bf16.gmra.mxu0 %v1855_v18  ;;  %1766 = vmatmul.mubr.bf16.gmra.mxu1 %v1856_v19 }
  0x33   :  { %1705 = vmatprep.mubr.bf16.mxu0 %v1857_v20  ;;  %1769 = vmatprep.mubr.bf16.mxu1 %v1858_v21 }
  0x3a   :  { %1706 = vmatmul.mubr.bf16.gmra.mxu0 %v1859_v22  ;;  %1770 = vmatmul.mubr.bf16.gmra.mxu1 %v1860_v23 }
  0x3b   :  { %1709 = vmatprep.mubr.bf16.mxu0 %v1861_v24  ;;  %1773 = vmatprep.mubr.bf16.mxu1 %v1862_v25 }
  0x42   :  { %1710 = vmatmul.mubr.bf16.gmra.mxu0 %v1863_v26  ;;  %1774 = vmatmul.mubr.bf16.gmra.mxu1 %v1864_v27 }
  0x43   :  { %1713 = vmatprep.mubr.bf16.mxu0 %v1865_v28  ;;  %1777 = vmatprep.mubr.bf16.mxu1 %v1866_v29 }
  0x4a   :  { %1714 = vmatmul.mubr.bf16.gmra.mxu0 %v1867_v30  ;;  %1778 = vmatmul.mubr.bf16.gmra.mxu1 %v1868_v31 }
  0x4b   :  { %1717 = vmatprep.mubr.bf16.mxu0 %v1869_v32  ;;  %1781 = vmatprep.mubr.bf16.mxu1 %v1870_v33 }
  0x52   :  { %1718 = vmatmul.mubr.bf16.gmra.mxu0 %v1871_v34  ;;  %1782 = vmatmul.mubr.bf16.gmra.mxu1 %v1872_v35 }
  0x53   :  { %1721 = vmatprep.mubr.bf16.mxu0 %v1873_v36  ;;  %1785 = vmatprep.mubr.bf16.mxu1 %v1874_v37 }
  0x5a   :  { %1722 = vmatmul.mubr.bf16.gmra.mxu0 %v1875_v38  ;;  %1786 = vmatmul.mubr.bf16.gmra.mxu1 %v1876_v39 }
  0x5b   :  { %1725 = vmatprep.mubr.bf16.mxu0 %v1877_v40  ;;  %1789 = vmatprep.mubr.bf16.mxu1 %v1878_v41 }
  0x62   :  { %1726 = vmatmul.mubr.bf16.gmra.mxu0 %v1879_v42  ;;  %1790 = vmatmul.mubr.bf16.gmra.mxu1 %v1880_v43 }
  0x63   :  { %1729 = vmatprep.mubr.bf16.mxu0 %v1881_v44  ;;  %1793 = vmatprep.mubr.bf16.mxu1 %v1882_v45 }
  0x6a   :  { %1730 = vmatmul.mubr.bf16.gmra.mxu0 %v1883_v46  ;;  %1794 = vmatmul.mubr.bf16.gmra.mxu1 %v1884_v47 }
  0x6b   :  { %1733 = vmatprep.mubr.bf16.mxu0 %v1885_v48  ;;  %1797 = vmatprep.mubr.bf16.mxu1 %v1886_v49 }
  0x72   :  { %1734 = vmatmul.mubr.bf16.gmra.mxu0 %v1887_v50  ;;  %1798 = vmatmul.mubr.bf16.gmra.mxu1 %v1888_v51 }
  0x73   :  { %1737 = vmatprep.mubr.bf16.mxu0 %v1889_v52  ;;  %1801 = vmatprep.mubr.bf16.mxu1 %v1890_v53 }
  0x7a   :  { %1738 = vmatmul.mubr.bf16.gmra.mxu0 %v1891_v54  ;;  %1802 = vmatmul.mubr.bf16.gmra.mxu1 %v1892_v55 }
  0x7b   :  { %1741 = vmatprep.mubr.bf16.mxu0 %v1893_v56  ;;  %1805 = vmatprep.mubr.bf16.mxu1 %v1894_v57 }
  0x82   :  { %1742 = vmatmul.mubr.bf16.gmra.mxu0 %v1895_v58  ;;  %1806 = vmatmul.mubr.bf16.gmra.mxu1 %v1896_v59 }
  0x83   :  { %1745 = vmatprep.mubr.bf16.mxu0 %v1897_v60  ;;  %1809 = vmatprep.mubr.bf16.mxu1 %v1898_v61 }
  0x8a   :  { %1746 = vmatmul.mubr.bf16.gmra.mxu0 %v1899_v62  ;;  %1810 = vmatmul.mubr.bf16.gmra.mxu1 %v1900_v63 }
  0x8b   :  { %1749 = vmatprep.mubr.bf16.mxu0 %v1901_v0  ;;  %1813 = vmatprep.mubr.bf16.mxu1 %v1902_v1 }
  0x92   :  { %1750 = vmatmul.mubr.bf16.gmra.mxu0 %v1903_v2  ;;  %1814 = vmatmul.mubr.bf16.gmra.mxu1 %v1904_v3 }
  0x93   :  { %1753 = vmatprep.mubr.bf16.mxu0 %v1905_v4  ;;  %1817 = vmatprep.mubr.bf16.mxu1 %v1906_v5 }
  0x9a   :  { %1754 = vmatmul.mubr.bf16.gmra.mxu0 %v1907_v6  ;;  %1818 = vmatmul.mubr.bf16.gmra.mxu1 %v1908_v7 }
  0xe2   :  { %v2145_v8 = vpop.f32.mrf.mxu0  ;;  %v2147_v9 = vpop.f32.mrf.mxu1 }
  0xe4   :  { %v2149_v10 = vpop.f32.mrf.mxu0  ;;  %v2151_v11 = vpop.f32.mrf.mxu1 }
  0xe6   :  { %v2153_v12 = vpop.f32.mrf.mxu0  ;;  %v2155_v13 = vpop.f32.mrf.mxu1 }
  0xe8   :  { %v2157_v14 = vpop.f32.mrf.mxu0  ;;  %v2159_v15 = vpop.f32.mrf.mxu1 }
  0xea   :  { %v2161_v16 = vpop.f32.mrf.mxu0  ;;  %v2163_v17 = vpop.f32.mrf.mxu1 }
  0xec   :  { %v2165_v18 = vpop.f32.mrf.mxu0  ;;  %v2167_v19 = vpop.f32.mrf.mxu1 }
  0xee   :  { %v2169_v20 = vpop.f32.mrf.mxu0  ;;  %v2171_v21 = vpop.f32.mrf.mxu1 }
  0xf0   :  { %v2173_v22 = vpop.f32.mrf.mxu0  ;;  %v2175_v23 = vpop.f32.mrf.mxu1 }
  0xf2   :  { %v2177_v24 = vpop.f32.mrf.mxu0  ;;  %v2179_v25 = vpop.f32.mrf.mxu1 }
  0xf4   :  { %v2181_v26 = vpop.f32.mrf.mxu0  ;;  %v2183_v27 = vpop.f32.mrf.mxu1 }
  0xf6   :  { %v2185_v28 = vpop.f32.mrf.mxu0  ;;  %v2187_v29 = vpop.f32.mrf.mxu1 }
  0xf8   :  { %v2189_v30 = vpop.f32.mrf.mxu0  ;;  %v2191_v31 = vpop.f32.mrf.mxu1 }
  0xfa   :  { %v2193_v32 = vpop.f32.mrf.mxu0  ;;  %v2195_v33 = vpop.f32.mrf.mxu1 }
  0xfc   :  { %v2197_v34 = vpop.f32.mrf.mxu0  ;;  %v2199_v35 = vpop.f32.mrf.mxu1 }
  0xfe   :  { %v2201_v36 = vpop.f32.mrf.mxu0  ;;  %v2203_v37 = vpop.f32.mrf.mxu1 }
 0x100   :  { %v2205_v38 = vpop.f32.mrf.mxu0  ;;  %v2207_v39 = vpop.f32.mrf.mxu1 }
 0x102   :  { %v2209_v40 = vpop.f32.mrf.mxu0  ;;  %v2211_v41 = vpop.f32.mrf.mxu1 }
 0x104   :  { %v2213_v42 = vpop.f32.mrf.mxu0  ;;  %v2215_v43 = vpop.f32.mrf.mxu1 }
 0x106   :  { %v2217_v44 = vpop.f32.mrf.mxu0  ;;  %v2219_v45 = vpop.f32.mrf.mxu1 }
 0x108   :  { %v2221_v46 = vpop.f32.mrf.mxu0  ;;  %v2223_v47 = vpop.f32.mrf.mxu1 }
 0x10a   :  { %v2225_v48 = vpop.f32.mrf.mxu0  ;;  %v2227_v49 = vpop.f32.mrf.mxu1 }
 0x10c   :  { %v2229_v50 = vpop.f32.mrf.mxu0  ;;  %v2231_v51 = vpop.f32.mrf.mxu1 }
 0x10e   :  { %v2233_v52 = vpop.f32.mrf.mxu0  ;;  %v2235_v53 = vpop.f32.mrf.mxu1 }
 0x110   :  { %v2237_v54 = vpop.f32.mrf.mxu0  ;;  %v2239_v55 = vpop.f32.mrf.mxu1 }
 0x111   :  { %2506 = vst [vmem:[#allocation2_spill] sm:$0xff] %v2239_v55 }
 0x112   :  { %v2241_v56 = vpop.f32.mrf.mxu0  ;;  %v2243_v57 = vpop.f32.mrf.mxu1 }
 0x113   :  { %2507 = vst [vmem:[#allocation3_spill] sm:$0xff] %v2241_v56  ;;  %2508 = vst [vmem:[#allocation4_spill] sm:$0xff] %v2243_v57 }
 0x114   :  { %v2245_v58 = vpop.f32.mrf.mxu0  ;;  %v2247_v59 = vpop.f32.mrf.mxu1 }
 0x115   :  { %2509 = vst [vmem:[#allocation5_spill] sm:$0xff] %v2245_v58  ;;  %2510 = vst [vmem:[#allocation6_spill] sm:$0xff] %v2247_v59 }
 0x116   :  { %v2249_v60 = vpop.f32.mrf.mxu0  ;;  %v2251_v61 = vpop.f32.mrf.mxu1 }
 0x117   :  { %2511 = vst [vmem:[#allocation7_spill] sm:$0xff] %v2249_v60  ;;  %2512 = vst [vmem:[#allocation8_spill] sm:$0xff] %v2251_v61 }
 0x118   :  { %v2253_v62 = vpop.f32.mrf.mxu0  ;;  %v2255_v63 = vpop.f32.mrf.mxu1 }
 0x119   :  { %2513 = vst [vmem:[#allocation9_spill] sm:$0xff] %v2253_v62  ;;  %2514 = vst [vmem:[#allocation10_spill] sm:$0xff] %v2255_v63 }
 0x11a   :  { %v2257_v0 = vpop.f32.mrf.mxu0  ;;  %v2259_v1 = vpop.f32.mrf.mxu1 }
 0x11b   :  { %2515 = vst [vmem:[#allocation11_spill] sm:$0xff] %v2257_v0  ;;  %2516 = vst [vmem:[#allocation12_spill] sm:$0xff] %v2259_v1 }
 0x11c   :  { %v2261_v2 = vpop.f32.mrf.mxu0  ;;  %v2263_v3 = vpop.f32.mrf.mxu1 }
 0x11d   :  { %2517 = vst [vmem:[#allocation13_spill] sm:$0xff] %v2261_v2  ;;  %2518 = vst [vmem:[#allocation14_spill] sm:$0xff] %v2263_v3  ;;  %v2278_v2 = vld [vmem:[%s2504_s2] ss:$0 sm:$0xff] }
 0x11e   :  { %v2265_v4 = vpop.f32.mrf.mxu0  ;;  %v2267_v5 = vpop.f32.mrf.mxu1 }
 0x11f   :  { %2519 = vst [vmem:[#allocation15_spill] sm:$0xff] %v2265_v4  ;;  %2520 = vst [vmem:[#allocation16_spill] sm:$0xff] %v2267_v5 }
 0x120   :  { %v2269_v6 = vpop.f32.mrf.mxu0  ;;  %v2271_v7 = vpop.f32.mrf.mxu1 }
 0x121   :  { %2521 = vst [vmem:[#allocation17_spill] sm:$0xff] %v2269_v6  ;;  %2522 = vst [vmem:[#allocation18_spill] sm:$0xff] %v2271_v7 }
 0x122   :  { %v1727_v61 = vpop.f32.mrf.mxu0  ;;  %v1791_v62 = vpop.f32.mrf.mxu1 }
 0x123   :  { %v1138_v63 = vmax.f32 %v2145_v8, %v1727_v61  ;;  %v1170_v0 = vmax.f32 %v2147_v9, %v1791_v62 }
 0x124   :  { %v753_v3 = vpop.f32.mrf.mxu0  ;;  %v1009_v1 = vpop.f32.mrf.mxu1 }
 0x125   :  { %v1202_v4 = vmax.f32 %v1138_v63, %v1170_v0  ;;  %v1136_v5 = vmax.f32 %v2149_v10, %v753_v3  ;;  %v1168_v6 = vmax.f32 %v2151_v11, %v1009_v1 }
 0x126   :  { %v1728_v60 = vpop.f32.mrf.mxu0  ;;  %v1792_v7 = vpop.f32.mrf.mxu1 }
 0x127   :  { %v1241_v59 = vadd.f32 %v2278_v2, %v1202_v4  ;;  %v1200_v58 = vmax.f32 %v1136_v5, %v1168_v6  ;;  %v1139_v8 = vmax.f32 %v2153_v12, %v1728_v60  ;;  %v1171_v9 = vmax.f32 %v2155_v13, %v1792_v7 }
 0x128   :  { %v756_v61 = vpop.f32.mrf.mxu0  ;;  %v1012_v62 = vpop.f32.mrf.mxu1 }
 0x129   :  { %v1273_v57 = vmax.f32 %v1241_v59, 0.0  ;;  %v1239_v56 = vadd.f32 %v2278_v2, %v1200_v58  ;;  %v1203_v55 = vmax.f32 %v1139_v8, %v1171_v9  ;;  %v1137_v63 = vmax.f32 %v2157_v14, %v756_v61 }
 0x12a   :  { %v1169_v10 = vmax.f32 %v2159_v15, %v1012_v62  ;;  %v1731_v11 = vpop.f32.mrf.mxu0  ;;  %v1795_v0 = vpop.f32.mrf.mxu1 }
 0x12b   :  { %v1575_v1 = vpack.c.bf16 %v1273_v57, %v1273_v57  ;;  %v1271_v3 = vmax.f32 %v1239_v56, 0.0  ;;  %v1242_v4 = vadd.f32 %v2278_v2, %v1203_v55  ;;  %v1142_v12 = vmax.f32 %v2161_v16, %v1731_v11 }
 0x12c   :  { %v1201_v13 = vmax.f32 %v1137_v63, %v1169_v10  ;;  %v1174_v60 = vmax.f32 %v2163_v17, %v1795_v0  ;;  %v769_v59 = vpop.f32.mrf.mxu0  ;;  %v1025_v5 = vpop.f32.mrf.mxu1 }
 0x12d   :  { %1434 = vst.msk [vmem:[%s2505_s3 + $0x8] sm:$0xf] %vm1431_vm0, %v1575_v1  ;;  %v1573_v14 = vpack.c.bf16 %v1271_v3, %v1271_v3  ;;  %v1274_v15 = vmax.f32 %v1242_v4, 0.0  ;;  %v1140_v58 = vmax.f32 %v2165_v18, %v769_v59  ;;  %v1172_v56 = vmax.f32 %v2167_v19, %v1025_v5 }
 0x12e   :  { %v1240_v55 = vadd.f32 %v2278_v2, %v1201_v13  ;;  %v1206_v57 = vmax.f32 %v1142_v12, %v1174_v60  ;;  %v1732_v16 = vpop.f32.mrf.mxu0  ;;  %v1796_v6 = vpop.f32.mrf.mxu1 }
 0x12f   :  { %1432 = vst.msk [vmem:[%s2505_s3] sm:$0xf] %vm1431_vm0, %v1573_v14  ;;  %v1576_v17 = vpack.c.bf16 %v1274_v15, %v1274_v15  ;;  %v1204_v7 = vmax.f32 %v1140_v58, %v1172_v56  ;;  %v1143_v8 = vmax.f32 %v2169_v20, %v1732_v16  ;;  %v1175_v9 = vmax.f32 %v2171_v21, %v1796_v6 }
 0x130   :  { %v1272_v61 = vmax.f32 %v1240_v55, 0.0  ;;  %v1245_v18 = vadd.f32 %v2278_v2, %v1206_v57  ;;  %v772_v19 = vpop.f32.mrf.mxu0  ;;  %v1028_v62 = vpop.f32.mrf.mxu1 }
 0x131   :  { %1435 = vst.msk [vmem:[%s2505_s3 + $0xc] sm:$0xf] %vm1431_vm0, %v1576_v17  ;;  %v1243_v63 = vadd.f32 %v2278_v2, %v1204_v7  ;;  %v1207_v10 = vmax.f32 %v1143_v8, %v1175_v9  ;;  %v1141_v11 = vmax.f32 %v2173_v22, %v772_v19  ;;  %v1173_v0 = vmax.f32 %v2175_v23, %v1028_v62 }
 0x132   :  { %v1574_v20 = vpack.c.bf16 %v1272_v61, %v1272_v61  ;;  %v1277_v1 = vmax.f32 %v1245_v18, 0.0  ;;  %v1735_v21 = vpop.f32.mrf.mxu0  ;;  %v1799_v3 = vpop.f32.mrf.mxu1 }
 0x133   :  { %v1275_v4 = vmax.f32 %v1243_v63, 0.0  ;;  %v1246_v12 = vadd.f32 %v2278_v2, %v1207_v10  ;;  %v1205_v13 = vmax.f32 %v1141_v11, %v1173_v0  ;;  %v1146_v60 = vmax.f32 %v2177_v24, %v1735_v21 }
 0x134   :  { %1433 = vst.msk [vmem:[%s2505_s3 + $0x4] sm:$0xf] %vm1431_vm0, %v1574_v20  ;;  %v1579_v59 = vpack.c.bf16 %v1277_v1, %v1277_v1  ;;  %v1178_v22 = vmax.f32 %v2179_v25, %v1799_v3  ;;  %v785_v5 = vpop.f32.mrf.mxu0  ;;  %v1041_v23 = vpop.f32.mrf.mxu1 }
 0x135   :  { %v1577_v14 = vpack.c.bf16 %v1275_v4, %v1275_v4  ;;  %v1278_v15 = vmax.f32 %v1246_v12, 0.0  ;;  %v1244_v58 = vadd.f32 %v2278_v2, %v1205_v13  ;;  %v1144_v56 = vmax.f32 %v2181_v26, %v785_v5 }
 0x136   :  { %1438 = vst.msk [vmem:[%s2505_s3 + $0x18] sm:$0xf] %vm1431_vm0, %v1579_v59  ;;  %v1210_v24 = vmax.f32 %v1146_v60, %v1178_v22  ;;  %v1176_v55 = vmax.f32 %v2183_v27, %v1041_v23  ;;  %v1736_v57 = vpop.f32.mrf.mxu0  ;;  %v1800_v16 = vpop.f32.mrf.mxu1 }
 0x137   :  { %1436 = vst.msk [vmem:[%s2505_s3 + $0x10] sm:$0xf] %vm1431_vm0, %v1577_v14  ;;  %v1580_v25 = vpack.c.bf16 %v1278_v15, %v1278_v15  ;;  %v1276_v6 = vmax.f32 %v1244_v58, 0.0  ;;  %v1147_v17 = vmax.f32 %v2185_v28, %v1736_v57  ;;  %v1179_v26 = vmax.f32 %v2187_v29, %v1800_v16 }
 0x138   :  { %v1249_v7 = vadd.f32 %v2278_v2, %v1210_v24  ;;  %v1208_v8 = vmax.f32 %v1144_v56, %v1176_v55  ;;  %v788_v9 = vpop.f32.mrf.mxu0  ;;  %v1044_v61 = vpop.f32.mrf.mxu1 }
 0x139   :  { %1439 = vst.msk [vmem:[%s2505_s3 + $0x1c] sm:$0xf] %vm1431_vm0, %v1580_v25  ;;  %v1578_v27 = vpack.c.bf16 %v1276_v6, %v1276_v6  ;;  %v1211_v18 = vmax.f32 %v1147_v17, %v1179_v26  ;;  %v1145_v19 = vmax.f32 %v2189_v30, %v788_v9  ;;  %v1177_v62 = vmax.f32 %v2191_v31, %v1044_v61 }
 0x13a   :  { %v1281_v63 = vmax.f32 %v1249_v7, 0.0  ;;  %v1247_v28 = vadd.f32 %v2278_v2, %v1208_v8  ;;  %v1739_v29 = vpop.f32.mrf.mxu0  ;;  %v1803_v10 = vpop.f32.mrf.mxu1 }
 0x13b   :  { %1437 = vst.msk [vmem:[%s2505_s3 + $0x14] sm:$0xf] %vm1431_vm0, %v1578_v27  ;;  %v1250_v11 = vadd.f32 %v2278_v2, %v1211_v18  ;;  %v1209_v0 = vmax.f32 %v1145_v19, %v1177_v62  ;;  %v1150_v20 = vmax.f32 %v2193_v32, %v1739_v29  ;;  %v1182_v1 = vmax.f32 %v2195_v33, %v1803_v10 }
 0x13c   :  { %v1583_v30 = vpack.c.bf16 %v1281_v63, %v1281_v63  ;;  %v1279_v21 = vmax.f32 %v1247_v28, 0.0  ;;  %v801_v31 = vpop.f32.mrf.mxu0  ;;  %v1057_v3 = vpop.f32.mrf.mxu1 }
 0x13d   :  { %v1282_v4 = vmax.f32 %v1250_v11, 0.0  ;;  %v1248_v12 = vadd.f32 %v2278_v2, %v1209_v0  ;;  %v1214_v13 = vmax.f32 %v1150_v20, %v1182_v1  ;;  %v1148_v60 = vmax.f32 %v2197_v34, %v801_v31 }
 0x13e   :  { %1442 = vst.msk [vmem:[%s2505_s3 + $0x28] sm:$0xf] %vm1431_vm0, %v1583_v30  ;;  %v1581_v59 = vpack.c.bf16 %v1279_v21, %v1279_v21  ;;  %v1180_v32 = vmax.f32 %v2199_v35, %v1057_v3  ;;  %v1740_v22 = vpop.f32.mrf.mxu0  ;;  %v1804_v33 = vpop.f32.mrf.mxu1 }
 0x13f   :  { %v1584_v5 = vpack.c.bf16 %v1282_v4, %v1282_v4  ;;  %v1280_v23 = vmax.f32 %v1248_v12, 0.0  ;;  %v1253_v14 = vadd.f32 %v2278_v2, %v1214_v13  ;;  %v1151_v15 = vmax.f32 %v2201_v36, %v1740_v22 }
 0x140   :  { %1440 = vst.msk [vmem:[%s2505_s3 + $0x20] sm:$0xf] %vm1431_vm0, %v1581_v59  ;;  %v1212_v34 = vmax.f32 %v1148_v60, %v1180_v32  ;;  %v1183_v58 = vmax.f32 %v2203_v37, %v1804_v33  ;;  %v804_v56 = vpop.f32.mrf.mxu0  ;;  %v1060_v24 = vpop.f32.mrf.mxu1 }
 0x141   :  { %1443 = vst.msk [vmem:[%s2505_s3 + $0x2c] sm:$0xf] %vm1431_vm0, %v1584_v5  ;;  %v1582_v35 = vpack.c.bf16 %v1280_v23, %v1280_v23  ;;  %v1285_v55 = vmax.f32 %v1253_v14, 0.0  ;;  %v1149_v57 = vmax.f32 %v2205_v38, %v804_v56  ;;  %v1181_v36 = vmax.f32 %v2207_v39, %v1060_v24 }
 0x142   :  { %v1251_v16 = vadd.f32 %v2278_v2, %v1212_v34  ;;  %v1215_v25 = vmax.f32 %v1151_v15, %v1183_v58  ;;  %v1743_v6 = vpop.f32.mrf.mxu0  ;;  %v1807_v17 = vpop.f32.mrf.mxu1 }
 0x143   :  { %1441 = vst.msk [vmem:[%s2505_s3 + $0x24] sm:$0xf] %vm1431_vm0, %v1582_v35  ;;  %v1587_v37 = vpack.c.bf16 %v1285_v55, %v1285_v55  ;;  %v1213_v26 = vmax.f32 %v1149_v57, %v1181_v36  ;;  %v1154_v7 = vmax.f32 %v2209_v40, %v1743_v6  ;;  %v1186_v8 = vmax.f32 %v2211_v41, %v1807_v17 }
 0x144   :  { %v1283_v9 = vmax.f32 %v1251_v16, 0.0  ;;  %v1254_v38 = vadd.f32 %v2278_v2, %v1215_v25  ;;  %v817_v39 = vpop.f32.mrf.mxu0  ;;  %v1073_v61 = vpop.f32.mrf.mxu1 }
 0x145   :  { %1446 = vst.msk [vmem:[%s2505_s3 + $0x38] sm:$0xf] %vm1431_vm0, %v1587_v37  ;;  %v1252_v27 = vadd.f32 %v2278_v2, %v1213_v26  ;;  %v1218_v18 = vmax.f32 %v1154_v7, %v1186_v8  ;;  %v1152_v19 = vmax.f32 %v2213_v42, %v817_v39  ;;  %v1184_v62 = vmax.f32 %v2215_v43, %v1073_v61  ;;  %v2523_v26 = vld [vmem:[#allocation2_spill] sm:$0xff]  ;;  %v2524_v39 = vld [vmem:[#allocation3_spill] sm:$0xff] }
 0x146   :  { %v1585_v40 = vpack.c.bf16 %v1283_v9, %v1283_v9  ;;  %v1286_v63 = vmax.f32 %v1254_v38, 0.0  ;;  %v1744_v41 = vpop.f32.mrf.mxu0  ;;  %v1808_v28 = vpop.f32.mrf.mxu1 }
 0x147   :  { %v1284_v29 = vmax.f32 %v1252_v27, 0.0  ;;  %v1257_v10 = vadd.f32 %v2278_v2, %v1218_v18  ;;  %v1216_v11 = vmax.f32 %v1152_v19, %v1184_v62  ;;  %v1155_v0 = vmax.f32 %v2217_v44, %v1744_v41  ;;  %v2525_v27 = vld [vmem:[#allocation4_spill] sm:$0xff]  ;;  %v2526_v41 = vld [vmem:[#allocation5_spill] sm:$0xff] }
 0x148   :  { %1444 = vst.msk [vmem:[%s2505_s3 + $0x30] sm:$0xf] %vm1431_vm0, %v1585_v40  ;;  %v1588_v20 = vpack.c.bf16 %v1286_v63, %v1286_v63  ;;  %v1187_v42 = vmax.f32 %v2219_v45, %v1808_v28  ;;  %v820_v1 = vpop.f32.mrf.mxu0  ;;  %v1076_v43 = vpop.f32.mrf.mxu1 }
 0x149   :  { %v1586_v30 = vpack.c.bf16 %v1284_v29, %v1284_v29  ;;  %v1289_v21 = vmax.f32 %v1257_v10, 0.0  ;;  %v1255_v31 = vadd.f32 %v2278_v2, %v1216_v11  ;;  %v1153_v3 = vmax.f32 %v2221_v46, %v820_v1  ;;  %v2527_v29 = vld [vmem:[#allocation6_spill] sm:$0xff] }
 0x14a   :  { %1447 = vst.msk [vmem:[%s2505_s3 + $0x3c] sm:$0xf] %vm1431_vm0, %v1588_v20  ;;  %v1219_v44 = vmax.f32 %v1155_v0, %v1187_v42  ;;  %v1185_v4 = vmax.f32 %v2223_v47, %v1076_v43  ;;  %v1747_v12 = vpop.f32.mrf.mxu0  ;;  %v1811_v13 = vpop.f32.mrf.mxu1 }
 0x14b   :  { %1445 = vst.msk [vmem:[%s2505_s3 + $0x34] sm:$0xf] %vm1431_vm0, %v1586_v30  ;;  %v1591_v45 = vpack.c.bf16 %v1289_v21, %v1289_v21  ;;  %v1287_v60 = vmax.f32 %v1255_v31, 0.0  ;;  %v1158_v59 = vmax.f32 %v2225_v48, %v1747_v12  ;;  %v1190_v46 = vmax.f32 %v2227_v49, %v1811_v13  ;;  %v2528_v30 = vld [vmem:[#allocation7_spill] sm:$0xff]  ;;  %v2529_v31 = vld [vmem:[#allocation8_spill] sm:$0xff] }
 0x14c   :  { %v1258_v32 = vadd.f32 %v2278_v2, %v1219_v44  ;;  %v1217_v22 = vmax.f32 %v1153_v3, %v1185_v4  ;;  %v833_v33 = vpop.f32.mrf.mxu0  ;;  %v1089_v5 = vpop.f32.mrf.mxu1 }
 0x14d   :  { %1450 = vst.msk [vmem:[%s2505_s3 + $0x48] sm:$0xf] %vm1431_vm0, %v1591_v45  ;;  %v1589_v47 = vpack.c.bf16 %v1287_v60, %v1287_v60  ;;  %v1222_v23 = vmax.f32 %v1158_v59, %v1190_v46  ;;  %v1156_v14 = vmax.f32 %v2229_v50, %v833_v33  ;;  %v1188_v15 = vmax.f32 %v2231_v51, %v1089_v5  ;;  %v2530_v59 = vld [vmem:[#allocation9_spill] sm:$0xff] }
 0x14e   :  { %v1290_v34 = vmax.f32 %v1258_v32, 0.0  ;;  %v1256_v48 = vadd.f32 %v2278_v2, %v1217_v22  ;;  %v1748_v49 = vpop.f32.mrf.mxu0  ;;  %v1812_v58 = vpop.f32.mrf.mxu1  ;;  %v2531_v32 = vld [vmem:[#allocation10_spill] sm:$0xff] }
 0x14f   :  { %1448 = vst.msk [vmem:[%s2505_s3 + $0x40] sm:$0xf] %vm1431_vm0, %v1589_v47  ;;  %v1261_v56 = vadd.f32 %v2278_v2, %v1222_v23  ;;  %v1220_v24 = vmax.f32 %v1156_v14, %v1188_v15  ;;  %v1159_v35 = vmax.f32 %v2233_v52, %v1748_v49  ;;  %v1191_v55 = vmax.f32 %v2235_v53, %v1812_v58 }
 0x150   :  { %v1592_v50 = vpack.c.bf16 %v1290_v34, %v1290_v34  ;;  %v1288_v57 = vmax.f32 %v1256_v48, 0.0  ;;  %v836_v51 = vpop.f32.mrf.mxu0  ;;  %v1092_v36 = vpop.f32.mrf.mxu1  ;;  %v2532_v48 = vld [vmem:[#allocation11_spill] sm:$0xff] }
 0x151   :  { %v1293_v16 = vmax.f32 %v1261_v56, 0.0  ;;  %v1259_v25 = vadd.f32 %v2278_v2, %v1220_v24  ;;  %v1223_v6 = vmax.f32 %v1159_v35, %v1191_v55  ;;  %v1157_v17 = vmax.f32 %v2237_v54, %v836_v51  ;;  %v2533_v56 = vld [vmem:[#allocation12_spill] sm:$0xff] }
 0x152   :  { %1451 = vst.msk [vmem:[%s2505_s3 + $0x4c] sm:$0xf] %vm1431_vm0, %v1592_v50  ;;  %v1590_v37 = vpack.c.bf16 %v1288_v57, %v1288_v57  ;;  %v1189_v52 = vmax.f32 %v2523_v26, %v1092_v36  ;;  %v1751_v7 = vpop.f32.mrf.mxu0  ;;  %v1815_v53 = vpop.f32.mrf.mxu1  ;;  %v2534_v36 = vld [vmem:[#allocation13_spill] sm:$0xff] }
 0x153   :  { %v1595_v8 = vpack.c.bf16 %v1293_v16, %v1293_v16  ;;  %v1291_v9 = vmax.f32 %v1259_v25, 0.0  ;;  %v1262_v38 = vadd.f32 %v2278_v2, %v1223_v6  ;;  %v1162_v61 = vmax.f32 %v2524_v39, %v1751_v7  ;;  %v2535_v6 = vld [vmem:[#allocation14_spill] sm:$0xff] }
 0x154   :  { %1449 = vst.msk [vmem:[%s2505_s3 + $0x44] sm:$0xf] %vm1431_vm0, %v1590_v37  ;;  %v1221_v54 = vmax.f32 %v1157_v17, %v1189_v52  ;;  %v1194_v18 = vmax.f32 %v2525_v27, %v1815_v53  ;;  %v849_v19 = vpop.f32.mrf.mxu0  ;;  %v1105_v62 = vpop.f32.mrf.mxu1  ;;  %v2536_v53 = vld [vmem:[#allocation15_spill] sm:$0xff] }
 0x155   :  { %1454 = vst.msk [vmem:[%s2505_s3 + $0x58] sm:$0xf] %vm1431_vm0, %v1595_v8  ;;  %v1593_v40 = vpack.c.bf16 %v1291_v9, %v1291_v9  ;;  %v1294_v63 = vmax.f32 %v1262_v38, 0.0  ;;  %v1160_v28 = vmax.f32 %v2526_v41, %v849_v19  ;;  %v1192_v10 = vmax.f32 %v2527_v29, %v1105_v62  ;;  %v2537_v9 = vld [vmem:[#allocation16_spill] sm:$0xff]  ;;  %v2538_v62 = vld [vmem:[#allocation17_spill] sm:$0xff] }
 0x156   :  { %v1260_v11 = vadd.f32 %v2278_v2, %v1221_v54  ;;  %v1226_v0 = vmax.f32 %v1162_v61, %v1194_v18  ;;  %v1752_v20 = vpop.f32.mrf.mxu0  ;;  %v1816_v42 = vpop.f32.mrf.mxu1 }
 0x157   :  { %1452 = vst.msk [vmem:[%s2505_s3 + $0x50] sm:$0xf] %vm1431_vm0, %v1593_v40  ;;  %v1596_v1 = vpack.c.bf16 %v1294_v63, %v1294_v63  ;;  %v1224_v43 = vmax.f32 %v1160_v28, %v1192_v10  ;;  %v1163_v21 = vmax.f32 %v2528_v30, %v1752_v20  ;;  %v1195_v3 = vmax.f32 %v2529_v31, %v1816_v42  ;;  %v2539_v63 = vld [vmem:[#allocation18_spill] sm:$0xff] }
 0x158   :  { %v1292_v44 = vmax.f32 %v1260_v11, 0.0  ;;  %v1265_v4 = vadd.f32 %v2278_v2, %v1226_v0  ;;  %v852_v12 = vpop.f32.mrf.mxu0  ;;  %v1108_v13 = vpop.f32.mrf.mxu1 }
 0x159   :  { %1455 = vst.msk [vmem:[%s2505_s3 + $0x5c] sm:$0xf] %vm1431_vm0, %v1596_v1  ;;  %v1263_v45 = vadd.f32 %v2278_v2, %v1224_v43  ;;  %v1227_v60 = vmax.f32 %v1163_v21, %v1195_v3  ;;  %v1161_v46 = vmax.f32 %v2530_v59, %v852_v12  ;;  %v1193_v22 = vmax.f32 %v2531_v32, %v1108_v13 }
 0x15a   :  { %v1594_v33 = vpack.c.bf16 %v1292_v44, %v1292_v44  ;;  %v1297_v5 = vmax.f32 %v1265_v4, 0.0  ;;  %v1755_v47 = vpop.f32.mrf.mxu0  ;;  %v1819_v23 = vpop.f32.mrf.mxu1 }
 0x15b   :  { %v1295_v14 = vmax.f32 %v1263_v45, 0.0  ;;  %v1266_v15 = vadd.f32 %v2278_v2, %v1227_v60  ;;  %v1225_v34 = vmax.f32 %v1161_v46, %v1193_v22  ;;  %v1166_v49 = vmax.f32 %v2532_v48, %v1755_v47 }
 0x15c   :  { %1453 = vst.msk [vmem:[%s2505_s3 + $0x54] sm:$0xf] %vm1431_vm0, %v1594_v33  ;;  %v1599_v58 = vpack.c.bf16 %v1297_v5, %v1297_v5  ;;  %v1198_v24 = vmax.f32 %v2533_v56, %v1819_v23  ;;  %v865_v35 = vpop.f32.mrf.mxu0  ;;  %v1121_v55 = vpop.f32.mrf.mxu1 }
 0x15d   :  { %v1597_v50 = vpack.c.bf16 %v1295_v14, %v1295_v14  ;;  %v1298_v57 = vmax.f32 %v1266_v15, 0.0  ;;  %v1264_v51 = vadd.f32 %v2278_v2, %v1225_v34  ;;  %v1164_v16 = vmax.f32 %v2534_v36, %v865_v35 }
 0x15e   :  { %1458 = vst.msk [vmem:[%s2505_s3 + $0x68] sm:$0xf] %vm1431_vm0, %v1599_v58  ;;  %v1230_v25 = vmax.f32 %v1166_v49, %v1198_v24  ;;  %v1196_v17 = vmax.f32 %v2535_v6, %v1121_v55  ;;  %v1756_v37 = vpop.f32.mrf.mxu0  ;;  %v1820_v26 = vpop.f32.mrf.mxu1 }
 0x15f   :  { %1456 = vst.msk [vmem:[%s2505_s3 + $0x60] sm:$0xf] %vm1431_vm0, %v1597_v50  ;;  %v1600_v52 = vpack.c.bf16 %v1298_v57, %v1298_v57  ;;  %v1296_v7 = vmax.f32 %v1264_v51, 0.0  ;;  %v1167_v8 = vmax.f32 %v2536_v53, %v1756_v37  ;;  %v1199_v38 = vmax.f32 %v2537_v9, %v1820_v26 }
 0x160   :  { %v1269_v39 = vadd.f32 %v2278_v2, %v1230_v25  ;;  %v1228_v61 = vmax.f32 %v1164_v16, %v1196_v17  ;;  %v868_v54 = vpop.f32.mrf.mxu0  ;;  %v1124_v27 = vpop.f32.mrf.mxu1 }
 0x161   :  { %1459 = vst.msk [vmem:[%s2505_s3 + $0x6c] sm:$0xf] %vm1431_vm0, %v1600_v52  ;;  %v1598_v18 = vpack.c.bf16 %v1296_v7, %v1296_v7  ;;  %v1231_v19 = vmax.f32 %v1167_v8, %v1199_v38  ;;  %v1165_v40 = vmax.f32 %v2538_v62, %v868_v54  ;;  %v1197_v41 = vmax.f32 %v2539_v63, %v1124_v27 }
 0x162   :  { %v1301_v28 = vmax.f32 %v1269_v39, 0.0  ;;  %v1267_v29 = vadd.f32 %v2278_v2, %v1228_v61 }
 0x163   :  { %1457 = vst.msk [vmem:[%s2505_s3 + $0x64] sm:$0xf] %vm1431_vm0, %v1598_v18  ;;  %v1270_v10 = vadd.f32 %v2278_v2, %v1231_v19  ;;  %v1229_v11 = vmax.f32 %v1165_v40, %v1197_v41 }
 0x164   :  { %v1603_v0 = vpack.c.bf16 %v1301_v28, %v1301_v28  ;;  %v1299_v20 = vmax.f32 %v1267_v29, 0.0 }
 0x165   :  { %v1302_v42 = vmax.f32 %v1270_v10, 0.0  ;;  %v1268_v1 = vadd.f32 %v2278_v2, %v1229_v11 }
 0x166   :  { %1462 = vst.msk [vmem:[%s2505_s3 + $0x78] sm:$0xf] %vm1431_vm0, %v1603_v0  ;;  %v1601_v43 = vpack.c.bf16 %v1299_v20, %v1299_v20 }
 0x167   :  { %v1604_v30 = vpack.c.bf16 %v1302_v42, %v1302_v42  ;;  %v1300_v21 = vmax.f32 %v1268_v1, 0.0 }
 0x168   :  { %1460 = vst.msk [vmem:[%s2505_s3 + $0x70] sm:$0xf] %vm1431_vm0, %v1601_v43 }
 0x169   :  { %1463 = vst.msk [vmem:[%s2505_s3 + $0x7c] sm:$0xf] %vm1431_vm0, %v1604_v30  ;;  %v1602_v31 = vpack.c.bf16 %v1300_v21, %v1300_v21 }
 0x16b   :  { %1461 = vst.msk [vmem:[%s2505_s3 + $0x74] sm:$0xf] %vm1431_vm0, %v1602_v31 }

// kernel: ei_net_forward.5
= control target key start
LH: loop header
LB: loop body
LE: loop exit
PB: predicated region body
PF: predicated region fallthrough
CT: control target
= control target key end

     0   :  { %vm303_vm0 = vcmask 523264   ;;  %v2618_v45 = vmov 0.0   ;;  %vm2619_vm1 = vmmov 0   ;;  %vm817_vm2 = vcmask 1041409   ;;  %s3245_s1 = inlined_call_operand.vmem [shape: bf16[64,32], index: 1, kind: input, shape index: {}]   ;;  %s3246_s0 = inlined_call_operand.vmem [shape: bf16[8,4,16,64], index: 0, kind: input, shape index: {}]   ;;  %s3247_s3 = inlined_call_operand.vmem [shape: bf16[4,32,64], index: 3, kind: input, shape index: {}]   ;;  %s3248_s2 = inlined_call_operand.vmem [shape: f32[1,32], index: 2, kind: input, shape index: {}]   ;;  %s3249_s5 = inlined_call_operand.vmem [shape: bf16[64,128], index: 5, kind: input, shape index: {}]   ;;  %s3250_s4 = inlined_call_operand.vmem [shape: f32[1,64], index: 4, kind: input, shape index: {}]   ;;  %s3251_s7 = inlined_call_operand.vmem [shape: bf16[128,64], index: 7, kind: input, shape index: {}]   ;;  %s3252_s6 = inlined_call_operand.vmem [shape: f32[1,128], index: 6, kind: input, shape index: {}]   ;;  %s3253_s9 = inlined_call_operand.vmem [shape: bf16[64,16], index: 9, kind: input, shape index: {}]   ;;  %s3254_s8 = inlined_call_operand.vmem [shape: f32[1,64], index: 8, kind: input, shape index: {}]   ;;  %s3255_s11 = inlined_call_operand.vmem [shape: bf16[16,1], index: 11, kind: input, shape index: {}]   ;;  %s3256_s12 = inlined_call_operand.<no memory space> [shape: f32[1,1], index: 12, kind: input, shape index: {}]   ;;  %s3257_s10 = inlined_call_operand.vmem [shape: f32[1,16], index: 10, kind: input, shape index: {}]   ;;  %s3258_s13 = inlined_call_operand.vmem [shape: f32[8,1], index: 13, kind: output, shape index: {}]  }
   0x1   :  { %v2541_v0 = vld [vmem:[%s3245_s1 + $0x18] sm:$0xff]   ;;  %v2542_v1 = vld [vmem:[%s3245_s1 + $0x10] sm:$0xff]   ;;  %v2543_v2 = vld [vmem:[%s3245_s1 + $0x8] sm:$0xff]   ;;  %2361 = vmatprep.subr.bf16.mxu1 %v2618_v45  ;;  %2365 = vmatprep.mubr.msk.bf16.mxu1 %vm2619_vm1, %v2618_v45  ;;  %vm820_vm3 = vcmask 1042434   ;;  %vm823_vm4 = vcmask 1043459   ;;  %vm826_vm5 = vcmask 1044484  }
   0x2   :  { %2289 = vmatprep.subr.bf16.mxu0 %v2541_v0  ;;  %v2545_v3 = vld [vmem:[%s3246_s0] sm:$0xff]   ;;  %v2546_v5 = vld [vmem:[%s3246_s0 + $0x8] sm:$0xff]   ;;  %v2547_v6 = vld [vmem:[%s3246_s0 + $0x10] sm:$0xff]   ;;  %vm829_vm6 = vcmask 1045509   ;;  %vm832_vm7 = vcmask 1046534   ;;  %vm835_vm8 = vcmask 1047559  }
   0x3   :  { %2290 = vmatpush3.bf16.msra.mxu0 %v2541_v0  ;;  %2297 = vmatprep.mubr.msk.bf16.mxu0 %vm303_vm0, %v2545_v3  ;;  %v2544_v4 = vld [vmem:[%s3245_s1] sm:$0xff]   ;;  %v2548_v7 = vld [vmem:[%s3246_s0 + $0x18] sm:$0xff]   ;;  %v2550_v9 = vld [vmem:[%s3246_s0 + $0x28] sm:$0xff]   ;;  %vm850_vm9 = vcmask 261120   ;;  %vm2011_vm10 = vcmask 130048   ;;  %vm2060_vm11 = vcmask 7168  }
   0x4   :  { %2291 = vmatprep.subr.bf16.mxu0 %v2542_v1  ;;  %v2549_v8 = vld [vmem:[%s3246_s0 + $0x20] sm:$0xff]   ;;  %v2551_v10 = vld [vmem:[%s3246_s0 + $0x30] sm:$0xff]   ;;  %v2552_v11 = vld [vmem:[%s3246_s0 + $0x38] sm:$0xff]  }
   0x5   :  { %v2553_v12 = vld [vmem:[%s3246_s0 + $0x40] sm:$0xff]   ;;  %v2554_v13 = vld [vmem:[%s3246_s0 + $0x48] sm:$0xff]   ;;  %v2555_v14 = vld [vmem:[%s3246_s0 + $0x50] sm:$0xff]  }
   0x6   :  { %v2556_v15 = vld [vmem:[%s3246_s0 + $0x58] sm:$0xff]   ;;  %v2557_v16 = vld [vmem:[%s3246_s0 + $0x60] sm:$0xff]   ;;  %v2558_v17 = vld [vmem:[%s3246_s0 + $0x68] sm:$0xff]  }
   0x7   :  { %2292 = vmatpush3.bf16.msra.mxu0 %v2542_v1  ;;  %v2559_v18 = vld [vmem:[%s3246_s0 + $0x70] sm:$0xff]   ;;  %v2560_v19 = vld [vmem:[%s3246_s0 + $0x78] sm:$0xff]   ;;  %v2561_v20 = vld [vmem:[%s3246_s0 + $0x80] sm:$0xff]  }
   0x8   :  { %2293 = vmatprep.subr.bf16.mxu0 %v2543_v2  ;;  %v2562_v21 = vld [vmem:[%s3246_s0 + $0x88] sm:$0xff]   ;;  %v2563_v22 = vld [vmem:[%s3246_s0 + $0x90] sm:$0xff]   ;;  %v2564_v23 = vld [vmem:[%s3246_s0 + $0x98] sm:$0xff]  }
   0x9   :  { %v2565_v24 = vld [vmem:[%s3246_s0 + $0xa0] sm:$0xff]   ;;  %v2566_v25 = vld [vmem:[%s3246_s0 + $0xa8] sm:$0xff]   ;;  %v2567_v26 = vld [vmem:[%s3246_s0 + $0xb0] sm:$0xff]  }
   0xa   :  { %v2568_v27 = vld [vmem:[%s3246_s0 + $0xb8] sm:$0xff]   ;;  %v2569_v28 = vld [vmem:[%s3246_s0 + $0xc0] sm:$0xff]   ;;  %v2570_v29 = vld [vmem:[%s3246_s0 + $0xc8] sm:$0xff]  }
   0xb   :  { %2294 = vmatpush3.bf16.msra.mxu0 %v2543_v2  ;;  %v2571_v30 = vld [vmem:[%s3246_s0 + $0xd0] sm:$0xff]   ;;  %v2572_v31 = vld [vmem:[%s3246_s0 + $0xd8] sm:$0xff]   ;;  %v2573_v32 = vld [vmem:[%s3246_s0 + $0xe0] sm:$0xff]  }
   0xc   :  { %2295 = vmatprep.subr.bf16.mxu0 %v2544_v4  ;;  %v2574_v33 = vld [vmem:[%s3246_s0 + $0xe8] sm:$0xff]   ;;  %v2575_v34 = vld [vmem:[%s3246_s0 + $0xf0] sm:$0xff]   ;;  %v2576_v35 = vld [vmem:[%s3246_s0 + $0xf8] sm:$0xff]  }
   0xd   :  { %v2833_v43 = vld [vmem:[%s3247_s3 + $0x18] sm:$0xff]   ;;  %v2841_v47 = vld [vmem:[%s3247_s3 + $0x10] sm:$0xff]   ;;  %v2851_v50 = vld [vmem:[%s3248_s2] ss:$0 sm:$0xff] }
   0xe   :  { %2362 = vmatpush3.bf16.msra.mxu1 %v2833_v43 }
   0xf   :  { %2296 = vmatpush3.bf16.msra.mxu0 %v2544_v4  ;;  %2363 = vmatprep.subr.bf16.mxu1 %v2618_v45 }
  0x10   :  { %2489 = vmatprep.subr.bf16.mxu0 %v2618_v45 }
  0x12   :  { %2298 = vmatmul.mubr.msk.bf16.vlgmr.msra.gmra.mxu0 %vm303_vm0, %v2546_v5  ;;  %2364 = vmatpush3.bf16.msra.mxu1 %v2841_v47 }
  0x13   :  { %2301 = vmatprep.mubr.msk.bf16.mxu0 %vm303_vm0, %v2547_v6  ;;  %2369 = vmatprep.subr.bf16.mxu1 %v2618_v45 }
  0x1a   :  { %2302 = vmatmul.mubr.msk.bf16.gmra.mxu0 %vm303_vm0, %v2548_v7 }
  0x1b   :  { %2305 = vmatprep.mubr.msk.bf16.mxu0 %vm303_vm0, %v2549_v8 }
  0x22   :  { %2306 = vmatmul.mubr.msk.bf16.gmra.mxu0 %vm303_vm0, %v2550_v9 }
  0x23   :  { %2309 = vmatprep.mubr.msk.bf16.mxu0 %vm303_vm0, %v2551_v10 }
  0x2a   :  { %2310 = vmatmul.mubr.msk.bf16.gmra.mxu0 %vm303_vm0, %v2552_v11 }
  0x2b   :  { %2313 = vmatprep.mubr.msk.bf16.mxu0 %vm303_vm0, %v2553_v12 }
  0x32   :  { %2314 = vmatmul.mubr.msk.bf16.gmra.mxu0 %vm303_vm0, %v2554_v13 }
  0x33   :  { %2317 = vmatprep.mubr.msk.bf16.mxu0 %vm303_vm0, %v2555_v14 }
  0x3a   :  { %2318 = vmatmul.mubr.msk.bf16.gmra.mxu0 %vm303_vm0, %v2556_v15 }
  0x3b   :  { %2321 = vmatprep.mubr.msk.bf16.mxu0 %vm303_vm0, %v2557_v16 }
  0x42   :  { %2322 = vmatmul.mubr.msk.bf16.gmra.mxu0 %vm303_vm0, %v2558_v17 }
  0x43   :  { %2325 = vmatprep.mubr.msk.bf16.mxu0 %vm303_vm0, %v2559_v18 }
  0x4a   :  { %2326 = vmatmul.mubr.msk.bf16.gmra.mxu0 %vm303_vm0, %v2560_v19 }
  0x4b   :  { %2329 = vmatprep.mubr.msk.bf16.mxu0 %vm303_vm0, %v2561_v20 }
  0x52   :  { %2330 = vmatmul.mubr.msk.bf16.gmra.mxu0 %vm303_vm0, %v2562_v21 }
  0x53   :  { %2333 = vmatprep.mubr.msk.bf16.mxu0 %vm303_vm0, %v2563_v22 }
  0x5a   :  { %2334 = vmatmul.mubr.msk.bf16.gmra.mxu0 %vm303_vm0, %v2564_v23 }
  0x5b   :  { %2337 = vmatprep.mubr.msk.bf16.mxu0 %vm303_vm0, %v2565_v24 }
  0x62   :  { %2338 = vmatmul.mubr.msk.bf16.gmra.mxu0 %vm303_vm0, %v2566_v25 }
  0x63   :  { %2341 = vmatprep.mubr.msk.bf16.mxu0 %vm303_vm0, %v2567_v26 }
  0x6a   :  { %2342 = vmatmul.mubr.msk.bf16.gmra.mxu0 %vm303_vm0, %v2568_v27 }
  0x6b   :  { %2345 = vmatprep.mubr.msk.bf16.mxu0 %vm303_vm0, %v2569_v28 }
  0x72   :  { %2346 = vmatmul.mubr.msk.bf16.gmra.mxu0 %vm303_vm0, %v2570_v29 }
  0x73   :  { %2349 = vmatprep.mubr.msk.bf16.mxu0 %vm303_vm0, %v2571_v30 }
  0x7a   :  { %2350 = vmatmul.mubr.msk.bf16.gmra.mxu0 %vm303_vm0, %v2572_v31 }
  0x7b   :  { %2353 = vmatprep.mubr.msk.bf16.mxu0 %vm303_vm0, %v2573_v32 }
  0x82   :  { %2354 = vmatmul.mubr.msk.bf16.gmra.mxu0 %vm303_vm0, %v2574_v33 }
  0x83   :  { %2357 = vmatprep.mubr.msk.bf16.mxu0 %vm303_vm0, %v2575_v34 }
  0x8a   :  { %2358 = vmatmul.mubr.msk.bf16.gmra.mxu0 %vm303_vm0, %v2576_v35 }
  0x8b   :  { %2497 = vmatprep.mubr.msk.bf16.mxu0 %vm2619_vm1, %v2618_v45 }
  0xd2   :  { %v2299_v36 = vpop.f32.mrf.mxu0 }
  0xd4   :  { %v434_v37 = vpop.f32.mrf.mxu0 }
  0xd5   :  { %v689_v38 = vmax.f32 %v434_v37, %v2299_v36 }
  0xd6   :  { %v2300_v39 = vpop.f32.mrf.mxu0 }
  0xd8   :  { %v437_v40 = vpop.f32.mrf.mxu0 }
  0xd9   :  { %v690_v41 = vmax.f32 %v437_v40, %v2300_v39 }
  0xda   :  { %v2303_v42 = vpop.f32.mrf.mxu0 }
  0xdc   :  { %v450_v44 = vpop.f32.mrf.mxu0 }
  0xdd   :  { %v705_v46 = vmax.f32 %v450_v44, %v2303_v42 }
  0xde   :  { %v2304_v48 = vpop.f32.mrf.mxu0 }
  0xdf   :  { %v721_v49 = vmax.f32 %v689_v38, %v705_v46 }
  0xe0   :  { %v453_v51 = vpop.f32.mrf.mxu0 }
  0xe1   :  { %v706_v52 = vmax.f32 %v453_v51, %v2304_v48  ;;  %v744_v54 = vadd.f32 %v2851_v50, %v721_v49 }
  0xe2   :  { %v2307_v53 = vpop.f32.mrf.mxu0 }
  0xe3   :  { %v722_v55 = vmax.f32 %v690_v41, %v706_v52  ;;  %v760_v60 = vmax.f32 %v744_v54, 0.0 }
  0xe4   :  { %v466_v56 = vpop.f32.mrf.mxu0 }
  0xe5   :  { %v745_v57 = vadd.f32 %v2851_v50, %v722_v55  ;;  %v691_v58 = vmax.f32 %v466_v56, %v2307_v53 }
  0xe6   :  { %v2308_v59 = vpop.f32.mrf.mxu0 }
  0xe7   :  { %v761_v61 = vmax.f32 %v745_v57, 0.0 }
  0xe8   :  { %v469_v62 = vpop.f32.mrf.mxu0 }
  0xe9   :  { %v776_v63 = vpack.c.bf16 %v761_v61, %v760_v60  ;;  %v692_v0 = vmax.f32 %v469_v62, %v2308_v59 }
  0xea   :  { %v2311_v1 = vpop.f32.mrf.mxu0 }
  0xeb   :  { %v808_v14 = vunpack.c.l.b16 %v776_v63  ;;  %v1384_v18 = vunpack.c.h.b16 %v776_v63 }
  0xec   :  { %v482_v2 = vpop.f32.mrf.mxu0 }
  0xed   :  { %v707_v3 = vmax.f32 %v482_v2, %v2311_v1  ;;  %v964_v22 = vrot.slane %v808_v14, 4  ;;  %v1035_v24 = vrot.slane %v808_v14, 5  ;;  %v1106_v25 = vrot.slane %v808_v14, 2 }
  0xee   :  { %v2312_v4 = vpop.f32.mrf.mxu0  ;;  %v1245_v28 = vrot.slane %v808_v14, 6  ;;  %v1451_v29 = vrot.slane %v1384_v18, 1  ;;  %v1631_v30 = vrot.slane %v1384_v18, 2  ;;  %v816_v32 = vrot.slane %v808_v14, 1 }
  0xef   :  { %v723_v5 = vmax.f32 %v691_v58, %v707_v3 }
  0xf0   :  { %v485_v6 = vpop.f32.mrf.mxu0 }
  0xf1   :  { %v708_v7 = vmax.f32 %v485_v6, %v2312_v4  ;;  %v746_v9 = vadd.f32 %v2851_v50, %v723_v5 }
  0xf2   :  { %v2315_v8 = vpop.f32.mrf.mxu0 }
  0xf3   :  { %v724_v10 = vmax.f32 %v692_v0, %v708_v7  ;;  %v762_v16 = vmax.f32 %v746_v9, 0.0 }
  0xf4   :  { %v498_v11 = vpop.f32.mrf.mxu0 }
  0xf5   :  { %v747_v12 = vadd.f32 %v2851_v50, %v724_v10  ;;  %v693_v13 = vmax.f32 %v498_v11, %v2315_v8 }
  0xf6   :  { %v2316_v15 = vpop.f32.mrf.mxu0 }
  0xf7   :  { %v763_v17 = vmax.f32 %v747_v12, 0.0 }
  0xf8   :  { %v501_v19 = vpop.f32.mrf.mxu0 }
  0xf9   :  { %v777_v20 = vpack.c.bf16 %v763_v17, %v762_v16  ;;  %v694_v21 = vmax.f32 %v501_v19, %v2316_v15 }
  0xfa   :  { %v2319_v23 = vpop.f32.mrf.mxu0 }
  0xfb   :  { %v809_v26 = vunpack.c.l.b16 %v777_v20  ;;  %v1385_v27 = vunpack.c.h.b16 %v777_v20 }
  0xfc   :  { %v514_v31 = vpop.f32.mrf.mxu0 }
  0xfd   :  { %v894_v33 = vrot.slane %v809_v26, 7  ;;  %v965_v34 = vrot.slane %v809_v26, 3  ;;  %v1036_v35 = vrot.slane %v809_v26, 4  ;;  %v1107_v36 = vrot.slane %v809_v26, 1 }
  0xfe   :  { %v1246_v37 = vrot.slane %v809_v26, 5  ;;  %v1392_v38 = vrot.slane %v1385_v27, 7  ;;  %v1452_v39 = vsel %vm817_vm2, %v1385_v27, %v1451_v29  ;;  %v1632_v40 = vrot.slane %v1385_v27, 1  ;;  %v2320_v41 = vpop.f32.mrf.mxu0 }
  0xff   :  { %v709_v42 = vmax.f32 %v514_v31, %v2319_v23  ;;  %v818_v44 = vsel %vm817_vm2, %v809_v26, %v816_v32  ;;  %v895_v46 = vsel %vm817_vm2, %v894_v33, %v808_v14  ;;  %v966_v48 = vsel %vm817_vm2, %v965_v34, %v964_v22 }
 0x100   :  { %v1393_v49 = vsel %vm817_vm2, %v1392_v38, %v1384_v18  ;;  %v517_v51 = vpop.f32.mrf.mxu0  ;;  %v1633_v52 = vsel %vm817_vm2, %v1632_v40, %v1631_v30  ;;  %v1037_v53 = vsel %vm817_vm2, %v1036_v35, %v1035_v24  ;;  %v1108_v54 = vsel %vm817_vm2, %v1107_v36, %v1106_v25 }
 0x101   :  { %v725_v55 = vmax.f32 %v693_v13, %v709_v42  ;;  %v710_v56 = vmax.f32 %v517_v51, %v2320_v41  ;;  %v1247_v57 = vsel %vm817_vm2, %v1246_v37, %v1245_v28 }
 0x102   :  { %v2323_v58 = vpop.f32.mrf.mxu0 }
 0x103   :  { %v748_v59 = vadd.f32 %v2851_v50, %v725_v55  ;;  %v726_v60 = vmax.f32 %v694_v21, %v710_v56 }
 0x104   :  { %v530_v61 = vpop.f32.mrf.mxu0 }
 0x105   :  { %v749_v62 = vadd.f32 %v2851_v50, %v726_v60  ;;  %v695_v63 = vmax.f32 %v530_v61, %v2323_v58  ;;  %v764_v1 = vmax.f32 %v748_v59, 0.0 }
 0x106   :  { %v2324_v0 = vpop.f32.mrf.mxu0 }
 0x107   :  { %v765_v2 = vmax.f32 %v749_v62, 0.0 }
 0x108   :  { %v533_v3 = vpop.f32.mrf.mxu0 }
 0x109   :  { %v778_v4 = vpack.c.bf16 %v765_v2, %v764_v1  ;;  %v696_v5 = vmax.f32 %v533_v3, %v2324_v0 }
 0x10a   :  { %v2327_v6 = vpop.f32.mrf.mxu0 }
 0x10b   :  { %v810_v7 = vunpack.c.l.b16 %v778_v4  ;;  %v1386_v8 = vunpack.c.h.b16 %v778_v4 }
 0x10c   :  { %v546_v9 = vpop.f32.mrf.mxu0 }
 0x10d   :  { %v896_v10 = vrot.slane %v810_v7, 6  ;;  %v967_v11 = vrot.slane %v810_v7, 2  ;;  %v1038_v12 = vrot.slane %v810_v7, 3  ;;  %v1248_v13 = vrot.slane %v810_v7, 4 }
 0x10e   :  { %v1394_v14 = vrot.slane %v1386_v8, 6  ;;  %v1453_v15 = vrot.slane %v1386_v8, 7  ;;  %v1634_v16 = vsel %vm820_vm3, %v1386_v8, %v1633_v52  ;;  %v711_v17 = vmax.f32 %v546_v9, %v2327_v6  ;;  %v2328_v18 = vpop.f32.mrf.mxu0 }
 0x10f   :  { %v819_v19 = vrot.slane %v810_v7, 7  ;;  %v897_v20 = vsel %vm820_vm3, %v896_v10, %v895_v46  ;;  %v968_v21 = vsel %vm820_vm3, %v967_v11, %v966_v48  ;;  %v1039_v22 = vsel %vm820_vm3, %v1038_v12, %v1037_v53 }
 0x110   :  { %v1395_v23 = vsel %vm820_vm3, %v1394_v14, %v1393_v49  ;;  %v1454_v24 = vsel %vm820_vm3, %v1453_v15, %v1452_v39  ;;  %v727_v25 = vmax.f32 %v695_v63, %v711_v17  ;;  %v549_v26 = vpop.f32.mrf.mxu0  ;;  %v1109_v27 = vsel %vm820_vm3, %v810_v7, %v1108_v54 }
 0x111   :  { %v712_v28 = vmax.f32 %v549_v26, %v2328_v18  ;;  %v821_v29 = vsel %vm820_vm3, %v819_v19, %v818_v44  ;;  %v1249_v30 = vsel %vm820_vm3, %v1248_v13, %v1247_v57 }
 0x112   :  { %v2331_v31 = vpop.f32.mrf.mxu0  ;;  %v750_v32 = vadd.f32 %v2851_v50, %v727_v25 }
 0x113   :  { %v728_v33 = vmax.f32 %v696_v5, %v712_v28 }
 0x114   :  { %v562_v34 = vpop.f32.mrf.mxu0  ;;  %v766_v37 = vmax.f32 %v750_v32, 0.0 }
 0x115   :  { %v751_v35 = vadd.f32 %v2851_v50, %v728_v33  ;;  %v697_v48 = vmax.f32 %v562_v34, %v2331_v31 }
 0x116   :  { %v2332_v36 = vpop.f32.mrf.mxu0 }
 0x117   :  { %v767_v38 = vmax.f32 %v751_v35, 0.0 }
 0x118   :  { %v565_v39 = vpop.f32.mrf.mxu0 }
 0x119   :  { %v779_v40 = vpack.c.bf16 %v767_v38, %v766_v37  ;;  %v698_v4 = vmax.f32 %v565_v39, %v2332_v36 }
 0x11a   :  { %v2335_v41 = vpop.f32.mrf.mxu0 }
 0x11b   :  { %v811_v42 = vunpack.c.l.b16 %v779_v40  ;;  %v1387_v46 = vunpack.c.h.b16 %v779_v40 }
 0x11c   :  { %v578_v44 = vpop.f32.mrf.mxu0 }
 0x11d   :  { %v1396_v49 = vrot.slane %v1387_v46, 5  ;;  %v1455_v51 = vrot.slane %v1387_v46, 6  ;;  %v1635_v52 = vrot.slane %v1387_v46, 7  ;;  %v713_v53 = vmax.f32 %v578_v44, %v2335_v41 }
 0x11e   :  { %v2336_v54 = vpop.f32.mrf.mxu0  ;;  %v822_v55 = vrot.slane %v811_v42, 6  ;;  %v898_v56 = vrot.slane %v811_v42, 5  ;;  %v969_v57 = vrot.slane %v811_v42, 1  ;;  %v1040_v58 = vrot.slane %v811_v42, 2 }
 0x11f   :  { %v1397_v59 = vsel %vm823_vm4, %v1396_v49, %v1395_v23  ;;  %v1456_v60 = vsel %vm823_vm4, %v1455_v51, %v1454_v24  ;;  %v1636_v61 = vsel %vm823_vm4, %v1635_v52, %v1634_v16  ;;  %v729_v62 = vmax.f32 %v697_v48, %v713_v53 }
 0x120   :  { %v581_v63 = vpop.f32.mrf.mxu0  ;;  %v2885_v0 = vsel %vm823_vm4, %v822_v55, %v821_v29  ;;  %v2888_v1 = vsel %vm823_vm4, %v898_v56, %v897_v20  ;;  %v2891_v2 = vsel %vm823_vm4, %v969_v57, %v968_v21  ;;  %v2894_v3 = vsel %vm823_vm4, %v1040_v58, %v1039_v22 }
 0x121   :  { %v714_v5 = vmax.f32 %v581_v63, %v2336_v54  ;;  %v1110_v6 = vrot.slane %v811_v42, 7  ;;  %v1250_v7 = vrot.slane %v811_v42, 3  ;;  %v752_v9 = vadd.f32 %v2851_v50, %v729_v62 }
 0x122   :  { %v2339_v8 = vpop.f32.mrf.mxu0 }
 0x123   :  { %v730_v10 = vmax.f32 %v698_v4, %v714_v5  ;;  %v2898_v11 = vsel %vm823_vm4, %v1110_v6, %v1109_v27  ;;  %v2901_v12 = vsel %vm823_vm4, %v1250_v7, %v1249_v30  ;;  %v768_v16 = vmax.f32 %v752_v9, 0.0 }
 0x124   :  { %v594_v13 = vpop.f32.mrf.mxu0 }
 0x125   :  { %v753_v14 = vadd.f32 %v2851_v50, %v730_v10  ;;  %v699_v22 = vmax.f32 %v594_v13, %v2339_v8 }
 0x126   :  { %v2340_v15 = vpop.f32.mrf.mxu0 }
 0x127   :  { %v769_v17 = vmax.f32 %v753_v14, 0.0 }
 0x128   :  { %v597_v18 = vpop.f32.mrf.mxu0 }
 0x129   :  { %v2904_v19 = vpack.c.bf16 %v769_v17, %v768_v16  ;;  %v700_v34 = vmax.f32 %v597_v18, %v2340_v15 }
 0x12a   :  { %v2343_v20 = vpop.f32.mrf.mxu0 }
 0x12b   :  { %v1388_v21 = vunpack.c.h.b16 %v2904_v19 }
 0x12c   :  { %v610_v23 = vpop.f32.mrf.mxu0 }
 0x12d   :  { %v1398_v24 = vrot.slane %v1388_v21, 4  ;;  %v1457_v25 = vrot.slane %v1388_v21, 5  ;;  %v1637_v26 = vrot.slane %v1388_v21, 6  ;;  %v715_v27 = vmax.f32 %v610_v23, %v2343_v20 }
 0x12e   :  { %v2344_v28 = vpop.f32.mrf.mxu0 }
 0x12f   :  { %v1399_v29 = vsel %vm826_vm5, %v1398_v24, %v1397_v59  ;;  %v1458_v30 = vsel %vm826_vm5, %v1457_v25, %v1456_v60  ;;  %v1638_v31 = vsel %vm826_vm5, %v1637_v26, %v1636_v61  ;;  %v731_v32 = vmax.f32 %v699_v22, %v715_v27 }
 0x130   :  { %v613_v33 = vpop.f32.mrf.mxu0 }
 0x131   :  { %v716_v35 = vmax.f32 %v613_v33, %v2344_v28  ;;  %v754_v37 = vadd.f32 %v2851_v50, %v731_v32 }
 0x132   :  { %v2347_v36 = vpop.f32.mrf.mxu0 }
 0x133   :  { %v732_v38 = vmax.f32 %v700_v34, %v716_v35  ;;  %v770_v42 = vmax.f32 %v754_v37, 0.0  ;;  %v2922_v37 = vunpack.c.l.b16 %v2904_v19 }
 0x134   :  { %v626_v39 = vpop.f32.mrf.mxu0 }
 0x135   :  { %v755_v40 = vadd.f32 %v2851_v50, %v732_v38  ;;  %v701_v55 = vmax.f32 %v626_v39, %v2347_v36 }
 0x136   :  { %v2348_v41 = vpop.f32.mrf.mxu0 }
 0x137   :  { %v771_v46 = vmax.f32 %v755_v40, 0.0 }
 0x138   :  { %v629_v48 = vpop.f32.mrf.mxu0 }
 0x139   :  { %v781_v44 = vpack.c.bf16 %v771_v46, %v770_v42  ;;  %v702_v63 = vmax.f32 %v629_v48, %v2348_v41  ;;  %v825_v46 = vrot.slane %v2922_v37, 5 }
 0x13a   :  { %v2351_v49 = vpop.f32.mrf.mxu0 }
 0x13b   :  { %v1389_v51 = vunpack.c.h.b16 %v781_v44  ;;  %v2924_v38 = vunpack.c.l.b16 %v781_v44  ;;  %v827_v19 = vsel %vm826_vm5, %v825_v46, %v2885_v0  ;;  %v2945_v0 = vld [vmem:[%s3247_s3 + $0x8] sm:$0xff]  }
 0x13c   :  { %v642_v52 = vpop.f32.mrf.mxu0 }
 0x13d   :  { %v1400_v53 = vrot.slane %v1389_v51, 3  ;;  %v1459_v54 = vrot.slane %v1389_v51, 4  ;;  %v717_v56 = vmax.f32 %v642_v52, %v2351_v49  ;;  %v1639_v57 = vrot.slane %v1389_v51, 5 }
 0x13e   :  { %v2352_v58 = vpop.f32.mrf.mxu0  ;;  %v828_v49 = vrot.slane %v2924_v38, 4 }
 0x13f   :  { %v733_v59 = vmax.f32 %v701_v55, %v717_v56  ;;  %v1401_v60 = vsel %vm829_vm6, %v1400_v53, %v1399_v29  ;;  %v1460_v62 = vsel %vm829_vm6, %v1459_v54, %v1458_v30  ;;  %v1640_v6 = vsel %vm829_vm6, %v1639_v57, %v1638_v31 }
 0x140   :  { %v645_v61 = vpop.f32.mrf.mxu0  ;;  %v830_v54 = vsel %vm829_vm6, %v828_v49, %v827_v19  ;;  %v900_v57 = vrot.slane %v2922_v37, 4  ;;  %v1254_v49 = vrot.slane %v2924_v38, 1 }
 0x141   :  { %v718_v4 = vmax.f32 %v645_v61, %v2352_v58  ;;  %v756_v7 = vadd.f32 %v2851_v50, %v733_v59  ;;  %v902_v58 = vrot.slane %v2924_v38, 3 }
 0x142   :  { %v2355_v5 = vpop.f32.mrf.mxu0 }
 0x143   :  { %v734_v8 = vmax.f32 %v702_v63, %v718_v4  ;;  %v772_v14 = vmax.f32 %v756_v7, 0.0  ;;  %v2965_v7 = vld [vmem:[%s3247_s3] sm:$0xff]  }
 0x144   :  { %v658_v9 = vpop.f32.mrf.mxu0 }
 0x145   :  { %v757_v10 = vadd.f32 %v2851_v50, %v734_v8  ;;  %v703_v24 = vmax.f32 %v658_v9, %v2355_v5 }
 0x146   :  { %v2356_v13 = vpop.f32.mrf.mxu0 }
 0x147   :  { %v773_v15 = vmax.f32 %v757_v10, 0.0 }
 0x148   :  { %v661_v16 = vpop.f32.mrf.mxu0 }
 0x149   :  { %v782_v17 = vpack.c.bf16 %v773_v15, %v772_v14  ;;  %v704_v31 = vmax.f32 %v661_v16, %v2356_v13  ;;  %v2980_v13 = vld [vmem:[%s3247_s3 + $0x28] sm:$0xff]   ;;  %v972_v14 = vrot.slane %v2924_v38, 7 }
 0x14a   :  { %v2359_v18 = vpop.f32.mrf.mxu0 }
 0x14b   :  { %v1390_v20 = vunpack.c.h.b16 %v782_v17  ;;  %v2927_v40 = vunpack.c.l.b16 %v782_v17 }
 0x14c   :  { %v674_v21 = vpop.f32.mrf.mxu0 }
 0x14d   :  { %v1402_v22 = vrot.slane %v1390_v20, 2  ;;  %v1461_v23 = vrot.slane %v1390_v20, 3  ;;  %v719_v25 = vmax.f32 %v674_v21, %v2359_v18  ;;  %v1641_v26 = vrot.slane %v1390_v20, 4  ;;  %v2994_v20 = vld [vmem:[%s3247_s3 + $0x20] sm:$0xff]  }
 0x14e   :  { %v2360_v27 = vpop.f32.mrf.mxu0  ;;  %v831_v51 = vrot.slane %v2927_v40, 3  ;;  %v904_v4 = vrot.slane %v2927_v40, 2  ;;  %v974_v16 = vrot.slane %v2927_v40, 6  ;;  %v971_v18 = vsel %vm826_vm5, %v2922_v37, %v2891_v2 }
 0x14f   :  { %v735_v28 = vmax.f32 %v703_v24, %v719_v25  ;;  %v1403_v29 = vsel %vm832_vm7, %v1402_v22, %v1401_v60  ;;  %v1462_v33 = vsel %vm832_vm7, %v1461_v23, %v1460_v62  ;;  %v1642_v34 = vsel %vm832_vm7, %v1641_v26, %v1640_v6  ;;  %v3007_v24 = vld [vmem:[%s3247_s3 + $0x38] sm:$0xff]  }
 0x150   :  { %v677_v30 = vpop.f32.mrf.mxu0  ;;  %v833_v56 = vsel %vm832_vm7, %v831_v51, %v830_v54  ;;  %v901_v6 = vsel %vm826_vm5, %v900_v57, %v2888_v1  ;;  %v973_v21 = vsel %vm829_vm6, %v972_v14, %v971_v18  ;;  %v1042_v2 = vrot.slane %v2922_v37, 1  ;;  %v2588_v54 = vld [vmem:[%s3249_s5] sm:$0xff]  }
 0x151   :  { %v720_v32 = vmax.f32 %v677_v30, %v2360_v27  ;;  %v758_v35 = vadd.f32 %v2851_v50, %v735_v28  ;;  %v903_v8 = vsel %vm829_vm6, %v902_v58, %v901_v6  ;;  %v975_v22 = vsel %vm832_vm7, %v974_v16, %v973_v21 }
 0x152   :  { %v905_v10 = vsel %vm832_vm7, %v904_v4, %v903_v8  ;;  %v1045_v26 = vrot.slane %v2927_v40, 7  ;;  %v1043_v28 = vsel %vm826_vm5, %v1042_v2, %v2894_v3  ;;  %v1112_v3 = vrot.slane %v2922_v37, 6 }
 0x153   :  { %v736_v36 = vmax.f32 %v704_v31, %v720_v32  ;;  %v774_v41 = vmax.f32 %v758_v35, 0.0  ;;  %v1044_v30 = vsel %vm829_vm6, %v2924_v38, %v1043_v28  ;;  %v1116_v35 = vrot.slane %v2927_v40, 4 }
 0x154   :  { %v1046_v31 = vsel %vm832_vm7, %v1045_v26, %v1044_v30 }
 0x155   :  { %v759_v39 = vadd.f32 %v2851_v50, %v736_v36 }
 0x157   :  { %v775_v42 = vmax.f32 %v759_v39, 0.0  ;;  %v1113_v39 = vsel %vm826_vm5, %v1112_v3, %v2898_v11  ;;  %v1252_v11 = vrot.slane %v2922_v37, 2 }
 0x159   :  { %v783_v48 = vpack.c.bf16 %v775_v42, %v774_v41 }
 0x15b   :  { %v2932_v52 = vunpack.c.l.b16 %v783_v48  ;;  %v1391_v53 = vunpack.c.h.b16 %v783_v48 }
 0x15d   :  { %v1404_v44 = vrot.slane %v1391_v53, 1  ;;  %v1463_v50 = vrot.slane %v1391_v53, 2  ;;  %v834_v55 = vrot.slane %v2932_v52, 2  ;;  %v1643_v59 = vrot.slane %v1391_v53, 3 }
 0x15e   :  { %v906_v5 = vrot.slane %v2932_v52, 1  ;;  %v976_v17 = vrot.slane %v2932_v52, 5  ;;  %v1047_v27 = vrot.slane %v2932_v52, 6  ;;  %v1118_v36 = vrot.slane %v2932_v52, 3 }
 0x15f   :  { %v836_v60 = vsel %vm835_vm8, %v834_v55, %v833_v56  ;;  %v2948_v61 = vsel %vm835_vm8, %v1404_v44, %v1403_v29  ;;  %v2951_v62 = vsel %vm835_vm8, %v1463_v50, %v1462_v33  ;;  %v2971_v9 = vsel %vm835_vm8, %v1643_v59, %v1642_v34  ;;  %v3022_v29 = vld [vmem:[%s3247_s3 + $0x30] sm:$0xff]   ;;  %v2587_v50 = vld [vmem:[%s3249_s5 + $0x8] sm:$0xff]  }
 0x160   :  { %v2953_v63 = vpack.c.b16 %v836_v60, %v836_v60  ;;  %v907_v1 = vsel %vm835_vm8, %v906_v5, %v905_v10  ;;  %v977_v23 = vsel %vm835_vm8, %v976_v17, %v975_v22  ;;  %v1048_v32 = vsel %vm835_vm8, %v1047_v27, %v1046_v31 }
 0x161   :  { %v908_v15 = vpack.c.b16 %v907_v1, %v907_v1  ;;  %v3010_v25 = vpack.c.b16 %v977_v23, %v977_v23  ;;  %v1114_v33 = vrot.slane %v2924_v38, 5  ;;  %v3035_v34 = vpack.c.b16 %v1048_v32, %v1048_v32 }
 0x162   :  { %2366 = vmatmul.mubr.msk.bf16.vlgmr.msra.gmra.mxu1 %vm850_vm9, %v2953_v63  ;;  %v1257_v51 = vrot.slane %v2932_v52, 7  ;;  %v1253_v53 = vsel %vm826_vm5, %v1252_v11, %v2901_v12  ;;  %v2585_v12 = vld [vmem:[%s3249_s5 + $0x18] sm:$0xff]   ;;  %v1465_v44 = vpack.c.b16 %v2951_v62, %v2951_v62 }
 0x163   :  { %2370 = vmatpush3.bf16.msra.mxu1 %v2945_v0  ;;  %2373 = vmatprep.mubr.msk.bf16.mxu1 %vm2619_vm1, %v2618_v45  ;;  %v1115_v41 = vsel %vm829_vm6, %v1114_v33, %v1113_v39  ;;  %v1255_v37 = vsel %vm829_vm6, %v1254_v49, %v1253_v53 }
 0x164   :  { %2371 = vmatprep.subr.bf16.mxu1 %v2618_v45  ;;  %v1117_v42 = vsel %vm832_vm7, %v1116_v35, %v1115_v41  ;;  %v1256_v38 = vsel %vm832_vm7, %v2927_v40, %v1255_v37  ;;  %2490 = vmatpush3.bf16.msra.mxu0 %v2585_v12  ;;  %v1406_v40 = vpack.c.b16 %v2948_v61, %v2948_v61 }
 0x165   :  { %v1119_v46 = vsel %vm835_vm8, %v1118_v36, %v1117_v42  ;;  %v1258_v52 = vsel %vm835_vm8, %v1257_v51, %v1256_v38  ;;  %2491 = vmatprep.subr.bf16.mxu0 %v2618_v45 }
 0x166   :  { %v1120_v48 = vpack.c.b16 %v1119_v46, %v1119_v46  ;;  %v1259_v19 = vpack.c.b16 %v1258_v52, %v1258_v52 }
 0x167   :  { %2372 = vmatpush3.bf16.msra.mxu1 %v2965_v7 }
 0x168   :  { %2377 = vmatprep.subr.bf16.mxu1 %v2618_v45 }
 0x16a   :  { %2374 = vmatmul.mubr.msk.bf16.vlgmr.msra.gmra.mxu1 %vm850_vm9, %v908_v15 }
 0x16b   :  { %2378 = vmatpush3.bf16.msra.mxu1 %v2980_v13  ;;  %2381 = vmatprep.mubr.msk.bf16.mxu1 %vm2619_vm1, %v2618_v45 }
 0x16c   :  { %2379 = vmatprep.subr.bf16.mxu1 %v2618_v45 }
 0x16f   :  { %2380 = vmatpush3.bf16.msra.mxu1 %v2994_v20 }
 0x170   :  { %2385 = vmatprep.subr.bf16.mxu1 %v2618_v45 }
 0x172   :  { %2382 = vmatmul.mubr.msk.bf16.vlgmr.msra.gmra.mxu1 %vm850_vm9, %v3010_v25 }
 0x173   :  { %2386 = vmatpush3.bf16.msra.mxu1 %v3007_v24  ;;  %2389 = vmatprep.mubr.msk.bf16.mxu1 %vm2619_vm1, %v2618_v45 }
 0x174   :  { %2387 = vmatprep.subr.bf16.mxu1 %v2618_v45 }
 0x177   :  { %2388 = vmatpush3.bf16.msra.mxu1 %v3022_v29 }
 0x178   :  { %2393 = vmatprep.subr.bf16.mxu1 %v2618_v45 }
 0x17a   :  { %2390 = vmatmul.mubr.msk.bf16.vlgmr.msra.gmra.mxu1 %vm850_vm9, %v3035_v34 }
 0x17b   :  { %2394 = vmatpush3.bf16.msra.mxu1 %v2833_v43  ;;  %2397 = vmatprep.mubr.msk.bf16.mxu1 %vm2619_vm1, %v2618_v45 }
 0x17c   :  { %2395 = vmatprep.subr.bf16.mxu1 %v2618_v45 }
 0x17f   :  { %2396 = vmatpush3.bf16.msra.mxu1 %v2841_v47 }
 0x180   :  { %2401 = vmatprep.subr.bf16.mxu1 %v2618_v45 }
 0x182   :  { %2398 = vmatmul.mubr.msk.bf16.vlgmr.msra.gmra.mxu1 %vm850_vm9, %v1120_v48 }
 0x183   :  { %2402 = vmatpush3.bf16.msra.mxu1 %v2945_v0  ;;  %2405 = vmatprep.mubr.msk.bf16.mxu1 %vm2619_vm1, %v2618_v45 }
 0x184   :  { %2403 = vmatprep.subr.bf16.mxu1 %v2618_v45 }
 0x187   :  { %2404 = vmatpush3.bf16.msra.mxu1 %v2965_v7 }
 0x188   :  { %2409 = vmatprep.subr.bf16.mxu1 %v2618_v45 }
 0x18a   :  { %2406 = vmatmul.mubr.msk.bf16.vlgmr.msra.gmra.mxu1 %vm850_vm9, %v2953_v63 }
 0x18b   :  { %2410 = vmatpush3.bf16.msra.mxu1 %v2980_v13  ;;  %2413 = vmatprep.mubr.msk.bf16.mxu1 %vm2619_vm1, %v2618_v45 }
 0x18c   :  { %2411 = vmatprep.subr.bf16.mxu1 %v2618_v45 }
 0x18f   :  { %2412 = vmatpush3.bf16.msra.mxu1 %v2994_v20 }
 0x190   :  { %2417 = vmatprep.subr.bf16.mxu1 %v2618_v45 }
 0x192   :  { %2414 = vmatmul.mubr.msk.bf16.vlgmr.msra.gmra.mxu1 %vm850_vm9, %v3035_v34 }
 0x193   :  { %2418 = vmatpush3.bf16.msra.mxu1 %v3007_v24  ;;  %2421 = vmatprep.mubr.msk.bf16.mxu1 %vm2619_vm1, %v2618_v45 }
 0x194   :  { %2419 = vmatprep.subr.bf16.mxu1 %v2618_v45 }
 0x197   :  { %2420 = vmatpush3.bf16.msra.mxu1 %v3022_v29 }
 0x198   :  { %2425 = vmatprep.subr.bf16.mxu1 %v2618_v45 }
 0x19a   :  { %2422 = vmatmul.mubr.msk.bf16.vlgmr.msra.gmra.mxu1 %vm850_vm9, %v1259_v19 }
 0x19b   :  { %2426 = vmatpush3.bf16.msra.mxu1 %v2833_v43  ;;  %2429 = vmatprep.mubr.msk.bf16.mxu1 %vm2619_vm1, %v2618_v45 }
 0x19c   :  { %2427 = vmatprep.subr.bf16.mxu1 %v2618_v45 }
 0x19f   :  { %2428 = vmatpush3.bf16.msra.mxu1 %v2841_v47 }
 0x1a0   :  { %2433 = vmatprep.subr.bf16.mxu1 %v2618_v45 }
 0x1a2   :  { %2430 = vmatmul.mubr.msk.bf16.vlgmr.msra.gmra.mxu1 %vm850_vm9, %v3035_v34 }
 0x1a3   :  { %2434 = vmatpush3.bf16.msra.mxu1 %v2945_v0  ;;  %2437 = vmatprep.mubr.msk.bf16.mxu1 %vm2619_vm1, %v2618_v45 }
 0x1a4   :  { %2435 = vmatprep.subr.bf16.mxu1 %v2618_v45 }
 0x1a7   :  { %2436 = vmatpush3.bf16.msra.mxu1 %v2965_v7 }
 0x1a8   :  { %2441 = vmatprep.subr.bf16.mxu1 %v2618_v45 }
 0x1aa   :  { %2438 = vmatmul.mubr.msk.bf16.vlgmr.msra.gmra.mxu1 %vm850_vm9, %v3010_v25 }
 0x1ab   :  { %2442 = vmatpush3.bf16.msra.mxu1 %v2980_v13  ;;  %2445 = vmatprep.mubr.msk.bf16.mxu1 %vm2619_vm1, %v2618_v45 }
 0x1ac   :  { %2443 = vmatprep.subr.bf16.mxu1 %v2618_v45 }
 0x1af   :  { %2444 = vmatpush3.bf16.msra.mxu1 %v2994_v20 }
 0x1b0   :  { %2449 = vmatprep.subr.bf16.mxu1 %v2618_v45 }
 0x1b2   :  { %2446 = vmatmul.mubr.msk.bf16.vlgmr.msra.gmra.mxu1 %vm850_vm9, %v1406_v40 }
 0x1b3   :  { %2450 = vmatpush3.bf16.msra.mxu1 %v3007_v24  ;;  %2453 = vmatprep.mubr.msk.bf16.mxu1 %vm2619_vm1, %v2618_v45 }
 0x1b4   :  { %2451 = vmatprep.subr.bf16.mxu1 %v2618_v45 }
 0x1b7   :  { %2452 = vmatpush3.bf16.msra.mxu1 %v3022_v29 }
 0x1b8   :  { %2457 = vmatprep.subr.bf16.mxu1 %v2618_v45 }
 0x1ba   :  { %2454 = vmatmul.mubr.msk.bf16.vlgmr.msra.gmra.mxu1 %vm850_vm9, %v1465_v44 }
 0x1bb   :  { %2458 = vmatpush3.bf16.msra.mxu1 %v2833_v43  ;;  %2461 = vmatprep.mubr.msk.bf16.mxu1 %vm2619_vm1, %v2618_v45  ;;  %v2586_v43 = vld [vmem:[%s3249_s5 + $0x10] sm:$0xff]  }
 0x1bc   :  { %2459 = vmatprep.subr.bf16.mxu1 %v2618_v45  ;;  %2492 = vmatpush3.bf16.msra.mxu0 %v2586_v43 }
 0x1bd   :  { %2493 = vmatprep.subr.bf16.mxu0 %v2618_v45 }
 0x1bf   :  { %2460 = vmatpush3.bf16.msra.mxu1 %v2841_v47  ;;  %v1645_v47 = vpack.c.b16 %v2971_v9, %v2971_v9 }
 0x1c0   :  { %2465 = vmatprep.subr.bf16.mxu1 %v2618_v45  ;;  %2494 = vmatpush3.bf16.msra.mxu0 %v2587_v50 }
 0x1c1   :  { %2495 = vmatprep.subr.bf16.mxu0 %v2618_v45 }
 0x1c2   :  { %2462 = vmatmul.mubr.msk.bf16.vlgmr.msra.gmra.mxu1 %vm850_vm9, %v1259_v19 }
 0x1c3   :  { %2466 = vmatpush3.bf16.msra.mxu1 %v2945_v0  ;;  %2469 = vmatprep.mubr.msk.bf16.mxu1 %vm2619_vm1, %v2618_v45 }
 0x1c4   :  { %2467 = vmatprep.subr.bf16.mxu1 %v2618_v45  ;;  %2496 = vmatpush3.bf16.msra.mxu0 %v2588_v54 }
 0x1c5   :  { %2521 = vmatprep.subr.bf16.mxu0 %v2618_v45 }
 0x1c7   :  { %2468 = vmatpush3.bf16.msra.mxu1 %v2965_v7 }
 0x1c8   :  { %2473 = vmatprep.subr.bf16.mxu1 %v2618_v45 }
 0x1ca   :  { %2470 = vmatmul.mubr.msk.bf16.vlgmr.msra.gmra.mxu1 %vm850_vm9, %v3035_v34 }
 0x1cb   :  { %2474 = vmatpush3.bf16.msra.mxu1 %v2980_v13  ;;  %2477 = vmatprep.mubr.msk.bf16.mxu1 %vm2619_vm1, %v2618_v45 }
 0x1cc   :  { %2475 = vmatprep.subr.bf16.mxu1 %v2618_v45 }
 0x1cf   :  { %2476 = vmatpush3.bf16.msra.mxu1 %v2994_v20 }
 0x1d0   :  { %2481 = vmatprep.subr.bf16.mxu1 %v2618_v45 }
 0x1d2   :  { %2478 = vmatmul.mubr.msk.bf16.vlgmr.msra.gmra.mxu1 %vm850_vm9, %v1465_v44 }
 0x1d3   :  { %2482 = vmatpush3.bf16.msra.mxu1 %v3007_v24  ;;  %2485 = vmatprep.mubr.msk.bf16.mxu1 %vm2619_vm1, %v2618_v45 }
 0x1d4   :  { %2483 = vmatprep.subr.bf16.mxu1 %v2618_v45 }
 0x1d7   :  { %2484 = vmatpush3.bf16.msra.mxu1 %v3022_v29 }
 0x1d8   :  { %2501 = vmatprep.subr.bf16.mxu1 %v2618_v45 }
 0x1da   :  { %2486 = vmatmul.mubr.msk.bf16.vlgmr.msra.gmra.mxu1 %vm850_vm9, %v1645_v47 }
 0x1db   :  { %2517 = vmatprep.mubr.msk.bf16.mxu1 %vm2619_vm1, %v2618_v45 }
 0x222   :  { %v888_v55 = vpop.f32.mrf.mxu1 }
 0x224   :  { %v2367_v56 = vpop.f32.mrf.mxu1 }
 0x226   :  { %v891_v57 = vpop.f32.mrf.mxu1 }
 0x228   :  { %v2368_v58 = vpop.f32.mrf.mxu1 }
 0x22a   :  { %v958_v59 = vpop.f32.mrf.mxu1 }
 0x22b   :  { %v959_v60 = vadd.f32 %v958_v59, %v888_v55 }
 0x22c   :  { %v2375_v0 = vpop.f32.mrf.mxu1 }
 0x22e   :  { %v961_v61 = vpop.f32.mrf.mxu1 }
 0x230   :  { %v2376_v62 = vpop.f32.mrf.mxu1 }
 0x232   :  { %v1028_v63 = vpop.f32.mrf.mxu1 }
 0x233   :  { %v1034_v4 = vadd.f32 %v1028_v63, %v959_v60 }
 0x234   :  { %v2383_v5 = vpop.f32.mrf.mxu1 }
 0x236   :  { %v1031_v6 = vpop.f32.mrf.mxu1 }
 0x238   :  { %v2384_v7 = vpop.f32.mrf.mxu1 }
 0x239   :  { %v2159_v7 = vld [vmem:[%s3250_s4] ss:$0 sm:$0xff] }
 0x23a   :  { %v1099_v8 = vpop.f32.mrf.mxu1 }
 0x23b   :  { %v3168_v9 = vadd.f32 %v1099_v8, %v1034_v4 }
 0x23c   :  { %v2391_v10 = vpop.f32.mrf.mxu1 }
 0x23e   :  { %v1102_v1 = vpop.f32.mrf.mxu1 }
 0x240   :  { %v2392_v13 = vpop.f32.mrf.mxu1 }
 0x242   :  { %v1158_v14 = vpop.f32.mrf.mxu1 }
 0x244   :  { %v2399_v15 = vpop.f32.mrf.mxu1 }
 0x245   :  { %v2589_v15 = vld [vmem:[%s3251_s7 + $0x38] sm:$0xff]  }
 0x246   :  { %v1161_v16 = vpop.f32.mrf.mxu1  ;;  %2502 = vmatpush3.bf16.msra.mxu1 %v2589_v15 }
 0x247   :  { %2503 = vmatprep.subr.bf16.mxu1 %v2618_v45  ;;  %v2590_v16 = vld [vmem:[%s3251_s7 + $0x30] sm:$0xff]  }
 0x248   :  { %v2400_v17 = vpop.f32.mrf.mxu1 }
 0x249   :  { %v2591_v17 = vld [vmem:[%s3251_s7 + $0x28] sm:$0xff]  }
 0x24a   :  { %v1198_v18 = vpop.f32.mrf.mxu1  ;;  %2504 = vmatpush3.bf16.msra.mxu1 %v2590_v16 }
 0x24b   :  { %v1199_v20 = vadd.f32 %v1198_v18, %v1158_v14  ;;  %2505 = vmatprep.subr.bf16.mxu1 %v2618_v45  ;;  %v2592_v18 = vld [vmem:[%s3251_s7 + $0x20] sm:$0xff]  }
 0x24c   :  { %v2407_v21 = vpop.f32.mrf.mxu1 }
 0x24d   :  { %v2594_v21 = vld [vmem:[%s3251_s7 + $0x10] sm:$0xff]  }
 0x24e   :  { %v1201_v22 = vpop.f32.mrf.mxu1  ;;  %2506 = vmatpush3.bf16.msra.mxu1 %v2591_v17 }
 0x24f   :  { %2507 = vmatprep.subr.bf16.mxu1 %v2618_v45  ;;  %v2595_v22 = vld [vmem:[%s3251_s7 + $0x8] sm:$0xff]  }
 0x250   :  { %v2408_v23 = vpop.f32.mrf.mxu1 }
 0x251   :  { %v2596_v23 = vld [vmem:[%s3251_s7] sm:$0xff]  }
 0x252   :  { %v1238_v2 = vpop.f32.mrf.mxu1  ;;  %2508 = vmatpush3.bf16.msra.mxu1 %v2592_v18 }
 0x253   :  { %v1244_v24 = vadd.f32 %v1238_v2, %v1199_v20  ;;  %v2593_v20 = vld [vmem:[%s3251_s7 + $0x18] sm:$0xff]   ;;  %2509 = vmatprep.subr.bf16.mxu1 %v2618_v45  ;;  %v2160_v2 = vld [vmem:[%s3252_s6] ss:$0 sm:$0xff] }
 0x254   :  { %v2415_v25 = vpop.f32.mrf.mxu1 }
 0x256   :  { %v1241_v26 = vpop.f32.mrf.mxu1  ;;  %2510 = vmatpush3.bf16.msra.mxu1 %v2593_v20 }
 0x257   :  { %2511 = vmatprep.subr.bf16.mxu1 %v2618_v45 }
 0x258   :  { %v2416_v27 = vpop.f32.mrf.mxu1 }
 0x25a   :  { %v1297_v28 = vpop.f32.mrf.mxu1  ;;  %2512 = vmatpush3.bf16.msra.mxu1 %v2594_v21 }
 0x25b   :  { %v1303_v29 = vadd.f32 %v1297_v28, %v1244_v24  ;;  %2513 = vmatprep.subr.bf16.mxu1 %v2618_v45 }
 0x25c   :  { %v2423_v30 = vpop.f32.mrf.mxu1 }
 0x25d   :  { %v1690_v31 = vmax.f32 %v3168_v9, %v1303_v29 }
 0x25e   :  { %v1300_v32 = vpop.f32.mrf.mxu1  ;;  %2514 = vmatpush3.bf16.msra.mxu1 %v2595_v22 }
 0x25f   :  { %2515 = vmatprep.subr.bf16.mxu1 %v2618_v45 }
 0x260   :  { %v2424_v3 = vpop.f32.mrf.mxu1 }
 0x262   :  { %v1338_v33 = vpop.f32.mrf.mxu1  ;;  %2516 = vmatpush3.bf16.msra.mxu1 %v2596_v23 }
 0x264   :  { %v2431_v34 = vpop.f32.mrf.mxu1 }
 0x265   :  { %v2597_v34 = vld [vmem:[%s3253_s9 + $0x18] sm:$0xff]  }
 0x266   :  { %v1341_v35 = vpop.f32.mrf.mxu1 }
 0x267   :  { %v2598_v35 = vld [vmem:[%s3253_s9 + $0x10] sm:$0xff]  }
 0x268   :  { %v2432_v36 = vpop.f32.mrf.mxu1 }
 0x269   :  { %v2599_v36 = vld [vmem:[%s3253_s9 + $0x8] sm:$0xff]  }
 0x26a   :  { %v1378_v39 = vpop.f32.mrf.mxu1 }
 0x26b   :  { %v1379_v58 = vadd.f32 %v1378_v39, %v1338_v33  ;;  %v2600_v39 = vld [vmem:[%s3253_s9] sm:$0xff]  }
 0x26c   :  { %v2439_v41 = vpop.f32.mrf.mxu1 }
 0x26d   :  { %v2166_v41 = vld [vmem:[%s3254_s8] ss:$0 sm:$0xff] }
 0x26e   :  { %v1381_v42 = vpop.f32.mrf.mxu1 }
 0x270   :  { %v2440_v46 = vpop.f32.mrf.mxu1 }
 0x272   :  { %v1444_v48 = vpop.f32.mrf.mxu1 }
 0x273   :  { %v1450_v0 = vadd.f32 %v1444_v48, %v1379_v58 }
 0x274   :  { %v2447_v11 = vpop.f32.mrf.mxu1 }
 0x276   :  { %v1447_v49 = vpop.f32.mrf.mxu1 }
 0x278   :  { %v2448_v51 = vpop.f32.mrf.mxu1 }
 0x27a   :  { %v1503_v53 = vpop.f32.mrf.mxu1 }
 0x27b   :  { %v1509_v63 = vadd.f32 %v1503_v53, %v1450_v0 }
 0x27c   :  { %v2455_v37 = vpop.f32.mrf.mxu1 }
 0x27e   :  { %v1506_v38 = vpop.f32.mrf.mxu1 }
 0x280   :  { %v2456_v52 = vpop.f32.mrf.mxu1 }
 0x282   :  { %v1544_v19 = vpop.f32.mrf.mxu1 }
 0x284   :  { %v2463_v12 = vpop.f32.mrf.mxu1 }
 0x285   :  { %v2601_v12 = vld [vmem:[%s3255_s11] sm:$0xff]  }
 0x286   :  { %v1547_v40 = vpop.f32.mrf.mxu1 }
 0x287   :  { %v18_v40 = vstv %s3256_s12 }
 0x288   :  { %v2464_v44 = vpop.f32.mrf.mxu1  ;;  %19 = vst [vmem:[#allocation2] sm:$0x1] %v18_v40 }
 0x289   :  { %v2175_v44 = vld [vmem:[%s3257_s10] ss:$0 sm:$0xff] }
 0x28a   :  { %v1584_v43 = vpop.f32.mrf.mxu1 }
 0x28b   :  { %v1585_v59 = vadd.f32 %v1584_v43, %v1544_v19 }
 0x28c   :  { %v2471_v47 = vpop.f32.mrf.mxu1 }
 0x28e   :  { %v1587_v50 = vpop.f32.mrf.mxu1 }
 0x28f   :  { %v2181_v0 = vld [vmem:[#allocation2] ss:$0 sm:$0xff] }
 0x290   :  { %v2472_v54 = vpop.f32.mrf.mxu1 }
 0x292   :  { %v1624_v55 = vpop.f32.mrf.mxu1 }
 0x293   :  { %v1630_v61 = vadd.f32 %v1624_v55, %v1585_v59 }
 0x294   :  { %v2479_v56 = vpop.f32.mrf.mxu1 }
 0x296   :  { %v1627_v57 = vpop.f32.mrf.mxu1 }
 0x298   :  { %v2480_v60 = vpop.f32.mrf.mxu1 }
 0x29a   :  { %v1683_v62 = vpop.f32.mrf.mxu1 }
 0x29b   :  { %v1689_v4 = vadd.f32 %v1683_v62, %v1630_v61 }
 0x29c   :  { %v2487_v5 = vpop.f32.mrf.mxu1 }
 0x29d   :  { %v1691_v6 = vmax.f32 %v1509_v63, %v1689_v4 }
 0x29e   :  { %v1686_v8 = vpop.f32.mrf.mxu1 }
 0x29f   :  { %v1692_v9 = vmax.f32 %v1690_v31, %v1691_v6 }
 0x2a0   :  { %v2488_v10 = vpop.f32.mrf.mxu1 }
 0x2a1   :  { %v1700_v1 = vadd.f32 %v2159_v7, %v1692_v9 }
 0x2a3   :  { %v1701_v13 = vmax.f32 %v1700_v1, 0.0 }
 0x2a5   :  { %v1702_v14 = vpack.c.bf16 %v1701_v13, %v1701_v13 }
 0x2a7   :  { %2498 = vmatmul.mubr.msk.bf16.vlgmr.msra.gmra.mxu0 %vm303_vm0, %v1702_v14 }
 0x2a8   :  { %2529 = vmatprep.mubr.msk.bf16.mxu0 %vm2619_vm1, %v2618_v45  ;;  %2522 = vmatpush3.bf16.msra.mxu0 %v2597_v34 }
 0x2a9   :  { %2523 = vmatprep.subr.bf16.mxu0 %v2618_v45 }
 0x2ac   :  { %2524 = vmatpush3.bf16.msra.mxu0 %v2598_v35 }
 0x2ad   :  { %2525 = vmatprep.subr.bf16.mxu0 %v2618_v45 }
 0x2b0   :  { %2526 = vmatpush3.bf16.msra.mxu0 %v2599_v36 }
 0x2b1   :  { %2527 = vmatprep.subr.bf16.mxu0 %v2618_v45 }
 0x2b4   :  { %2528 = vmatpush3.bf16.msra.mxu0 %v2600_v39 }
 0x2b5   :  { %2533 = vmatprep.subr.bf16.mxu0 %v2618_v45 }
 0x367   :  { %v1779_v24 = vpop.f32.mrf.mxu0 }
 0x368   :  { %v1780_v25 = vadd.f32 %v2160_v2, %v1779_v24 }
 0x369   :  { %v2499_v26 = vpop.f32.mrf.mxu0 }
 0x36a   :  { %v1785_v27 = vsub.f32 0.0, %v1780_v25 }
 0x36b   :  { %v1782_v28 = vpop.f32.mrf.mxu0 }
 0x36c   :  { %v1786_v29 = vmul.f32 1.442695, %v1785_v27 }
 0x36d   :  { %v2500_v30 = vpop.f32.mrf.mxu0 }
 0x36e   :  { %2602 = vpow2.f32 %v1786_v29 }
 0x37b   :  { %v2603_v31 = vpop.eup %2602 }
 0x37c   :  { %v1788_v32 = vadd.f32 1.0, %v2603_v31 }
 0x37e   :  { %2604 = vrcp.f32 %v1788_v32 }
 0x38b   :  { %v2605_v3 = vpop.eup %2604 }
 0x38c   :  { %v1790_v33 = vpack.c.bf16 %v2605_v3, %v2605_v3 }
 0x38e   :  { %2518 = vmatmul.mubr.bf16.vlgmr.msra.gmra.mxu1 %v1790_v33 }
 0x44e   :  { %v1896_v42 = vpop.f32.mrf.mxu1 }
 0x44f   :  { %v1897_v46 = vadd.f32 %v2166_v41, %v1896_v42 }
 0x450   :  { %v2519_v48 = vpop.f32.mrf.mxu1 }
 0x451   :  { %v1902_v11 = vsub.f32 0.0, %v1897_v46 }
 0x452   :  { %v1899_v49 = vpop.f32.mrf.mxu1 }
 0x453   :  { %v1903_v51 = vmul.f32 1.442695, %v1902_v11 }
 0x454   :  { %v2520_v53 = vpop.f32.mrf.mxu1 }
 0x455   :  { %2606 = vpow2.f32 %v1903_v51 }
 0x462   :  { %v2607_v37 = vpop.eup %2606 }
 0x463   :  { %v1905_v38 = vadd.f32 1.0, %v2607_v37 }
 0x465   :  { %2608 = vrcp.f32 %v1905_v38 }
 0x472   :  { %v2609_v52 = vpop.eup %2608 }
 0x473   :  { %v1907_v19 = vpack.c.bf16 %v2609_v52, %v2609_v52 }
 0x475   :  { %2530 = vmatmul.mubr.msk.bf16.vlgmr.msra.gmra.mxu0 %vm303_vm0, %v1907_v19 }
 0x476   :  { %2535 = vmatprep.mubr.msk.bf16.mxu0 %vm2619_vm1, %v2618_v45  ;;  %2534 = vmatpush3.bf16.msra.mxu0 %v2601_v12 }
 0x535   :  { %v1984_v43 = vpop.f32.mrf.mxu0 }
 0x536   :  { %v1985_v47 = vadd.f32 %v2175_v44, %v1984_v43 }
 0x537   :  { %v2531_v50 = vpop.f32.mrf.mxu0 }
 0x538   :  { %v1990_v54 = vsub.f32 0.0, %v1985_v47 }
 0x539   :  { %v1987_v55 = vpop.f32.mrf.mxu0 }
 0x53a   :  { %v1991_v45 = vmul.f32 1.442695, %v1990_v54 }
 0x53b   :  { %v2532_v56 = vpop.f32.mrf.mxu0 }
 0x53c   :  { %2610 = vpow2.f32 %v1991_v45 }
 0x549   :  { %v2611_v57 = vpop.eup %2610 }
 0x54a   :  { %v1993_v58 = vadd.f32 1.0, %v2611_v57 }
 0x54c   :  { %2612 = vrcp.f32 %v1993_v58 }
 0x559   :  { %v2613_v59 = vpop.eup %2612 }
 0x55a   :  { %v1995_v60 = vpack.c.bf16 %v2613_v59, %v2613_v59 }
 0x55c   :  { %2536 = vmatmul.mubr.msk.bf16.vlgmr.msra.gmra.mxu0 %vm2011_vm10, %v1995_v60 }
 0x61c   :  { %v2049_v61 = vpop.f32.mrf.mxu0 }
 0x61d   :  { %v2050_v62 = vadd.f32 %v2181_v0, %v2049_v61 }
 0x61e   :  { %v2537_v63 = vpop.f32.mrf.mxu0 }
 0x61f   :  { %v2055_v4 = vsub.f32 0.0, %v2050_v62 }
 0x620   :  { %v2052_v5 = vpop.f32.mrf.mxu0 }
 0x621   :  { %v2056_v6 = vmul.f32 1.442695, %v2055_v4 }
 0x622   :  { %v2538_v7 = vpop.f32.mrf.mxu0 }
 0x623   :  { %2614 = vpow2.f32 %v2056_v6 }
 0x630   :  { %v2615_v8 = vpop.eup %2614 }
 0x631   :  { %v2058_v9 = vadd.f32 1.0, %v2615_v8 }
 0x633   :  { %2616 = vrcp.f32 %v2058_v9 }
 0x640   :  { %v2617_v10 = vpop.eup %2616 }
 0x641   :  { %2061 = vst.msk [vmem:[%s3258_s13] sm:$0xff] %vm2060_vm11, %v2617_v10 }

</bundles_post_ra>
